<compile_context>
chip_gen: v7x
topology: tpu7x:2x2x1
jax: 0.10.0
libtpu: 0.0.40
codegen_flags: <defaults>
</compile_context>

<pallas_src>
import functools

import jax
import jax.numpy as jnp
from jax import lax
from jax.experimental import pallas as pl
from jax.experimental.pallas import tpu as pltpu


def _round_up(x, m):
    return (x + m - 1) // m * m


def _hw_config():
    """Generation-aware tiling / dtype / VMEM config (conservative default)."""
    kind = ""
    try:
        kind = jax.devices()[0].device_kind.lower()
    except Exception:  # pragma: no cover - defensive
        pass
    if "v5" in kind:
        # v5e/v5p: 128-wide MXU rows, 128 MiB VMEM, no bf16 VPU/EUP -> f32 gates.
        return dict(mxu_rows=128, cores=1,
                    vmem_limit=96 * 1024 * 1024,
                    chunk_budget=28 * 1024 * 1024, s_cap=512,
                    gx_dtype=jnp.float32, gate_dtype=jnp.float32,
                    dense_blk=1024)
    if "v6" in kind:
        # v6e: 256-wide MXU, 128 MiB VMEM, bf16 VPU/EUP.
        return dict(mxu_rows=256, cores=1,
                    vmem_limit=96 * 1024 * 1024,
                    chunk_budget=28 * 1024 * 1024, s_cap=512,
                    gx_dtype=jnp.bfloat16, gate_dtype=jnp.bfloat16,
                    dense_blk=1024)
    # v7x (and unknown chips): 64 MiB VMEM per TC, 2 TCs -> conservative limits.
    return dict(mxu_rows=256, cores=2,
                vmem_limit=40 * 1024 * 1024,
                chunk_budget=14 * 1024 * 1024, s_cap=256,
                gx_dtype=jnp.bfloat16, gate_dtype=jnp.bfloat16,
                dense_blk=512)


def _pick_s_block(S, b_blk, f_pad, h_pad, *, gx_bytes, budget_bytes, cap):
    # VMEM per time step: double-buffered x / out chunks (bf16) + gx scratch.
    per_step = b_blk * (4 * f_pad + 4 * h_pad + 4 * h_pad * gx_bytes)
    s_blk = max(1, budget_bytes // max(per_step, 1))
    return int(min(s_blk, cap, S))


# --------------------------------------------------------------------------
# Pallas kernel 1: one LSTM layer, sequence streamed in chunks.
#   grid = (nb, ns); batch axis "parallel", sequence axis "arbitrary".
#   x_ref   : (S_blk, B_blk, F_pad)  bf16   time-major input chunk
#   wih_ref : (F_pad, 4*H_pad)       bf16   W_ih^T, gate-block padded (i,f,g,o)
#   whh_ref : (H_pad, 4*H_pad)       bf16   W_hh^T, gate-block padded
#   b_ref   : (1, 4*H_pad)           f32    b_ih + b_hh, gate-block padded
#   h0_ref / c0_ref : (B_blk, H_pad) f32    initial states
#   out_ref : (S_blk, B_blk, H_pad)  bf16   hidden-state chunk
#   hN_ref / cN_ref : (B_blk, H_pad) f32    final states (written on last chunk)
#   h_sc / c_sc     : VMEM f32              carries across sequence chunks
#   gx_sc   : (S_blk*B_blk, 4*H_pad)        hoisted x@W_ih + b for this chunk
# --------------------------------------------------------------------------
def lstm_layer_kernel(x_ref, wih_ref, whh_ref, b_ref, h0_ref, c0_ref,
                      out_ref, hN_ref, cN_ref,
                      h_sc, c_sc, gx_sc,
                      *, s_blk, b_blk, h_pad, s_real, mask_tail, unroll,
                      gate_dtype):
    s_idx = pl.program_id(1)
    ns = pl.num_programs(1)

    @pl.when(s_idx == 0)
    def _():
        h_sc[...] = h0_ref[...]
        c_sc[...] = c0_ref[...]

    f_pad = x_ref.shape[-1]
    # Hoisted input projection (+ folded bias): one big MXU matmul per chunk.
    x_flat = x_ref[...].reshape(s_blk * b_blk, f_pad)              # bf16
    gx_sc[...] = (jnp.dot(x_flat, wih_ref[...],
                          preferred_element_type=jnp.float32)
                  + b_ref[...]).astype(gx_sc.dtype)

    whh = whh_ref[...]                                             # bf16
    t0 = s_idx * s_blk

    def run_chunk(masked):
        def step(t, carry):
            h, c = carry                                           # f32 (B_blk, H_pad)
            row = pl.multiple_of(t * b_blk, b_blk)
            gates = (gx_sc[pl.ds(row, b_blk), :].astype(jnp.float32)
                     + jnp.dot(h.astype(whh.dtype), whh,
                               preferred_element_type=jnp.float32))  # (B_blk, 4H) f32
            # Gate nonlinearities in gate_dtype (bf16 on v6e/v7x, f32 on v5e);
            # c/h accumulation stays f32.
            ga = gates.astype(gate_dtype)
            i_g = jax.nn.sigmoid(ga[:, 0 * h_pad:1 * h_pad])
            f_g = jax.nn.sigmoid(ga[:, 1 * h_pad:2 * h_pad])
            g_g = jnp.tanh(ga[:, 2 * h_pad:3 * h_pad])
            o_g = jax.nn.sigmoid(ga[:, 3 * h_pad:4 * h_pad])
            c_new = (f_g * c + i_g * g_g).astype(jnp.float32)
            h_new = (o_g * jnp.tanh(c_new)).astype(jnp.float32)
            # Padded timesteps (t >= s_real) store the unmasked h_new; those rows
            # are sliced off later, so this is benign — do NOT "fix" by masking.
            out_ref[t] = h_new.astype(out_ref.dtype)
            if masked:  # only traced for the last sequence chunk
                valid = (t0 + t) < s_real
                h_new = jnp.where(valid, h_new, h)
                c_new = jnp.where(valid, c_new, c)
            return h_new, c_new

        h, c = lax.fori_loop(0, s_blk, step, (h_sc[...], c_sc[...]),
                             unroll=unroll)
        h_sc[...] = h
        c_sc[...] = c

    if mask_tail:  # only when S was padded up to a chunk multiple
        @pl.when(s_idx != ns - 1)
        def _():
            run_chunk(False)

        @pl.when(s_idx == ns - 1)
        def _():
            run_chunk(True)
    else:
        run_chunk(False)

    @pl.when(s_idx == ns - 1)
    def _():
        hN_ref[...] = h_sc[...]
        cN_ref[...] = c_sc[...]


def run_lstm_layer(x_tm, wih_t, whh_t, bias, h0, c0, *, s_real, s_blk, b_blk,
                   gx_dtype, gate_dtype, vmem_limit, unroll):
    """x_tm: (S_pad, B_pad, F_pad) bf16 -> out (S_pad,B_pad,H_pad) bf16, hN, cN f32."""
    S_pad, B_pad, F_pad = x_tm.shape
    H_pad = whh_t.shape[0]
    G = 4 * H_pad
    assert S_pad % s_blk == 0 and B_pad % b_blk == 0
    nb, ns = B_pad // b_blk, S_pad // s_blk

    kernel = functools.partial(
        lstm_layer_kernel, s_blk=s_blk, b_blk=b_blk, h_pad=H_pad,
        s_real=s_real, mask_tail=(S_pad != s_real), unroll=unroll,
        gate_dtype=gate_dtype)

    out_shapes = (
        jax.ShapeDtypeStruct((S_pad, B_pad, H_pad), jnp.bfloat16),
        jax.ShapeDtypeStruct((B_pad, H_pad), jnp.float32),
        jax.ShapeDtypeStruct((B_pad, H_pad), jnp.float32),
    )
    return pl.pallas_call(
        kernel,
        out_shape=out_shapes,
        grid=(nb, ns),
        in_specs=[
            pl.BlockSpec((s_blk, b_blk, F_pad), lambda b, s: (s, b, 0)),
            pl.BlockSpec((F_pad, G), lambda b, s: (0, 0)),
            pl.BlockSpec((H_pad, G), lambda b, s: (0, 0)),
            pl.BlockSpec((1, G), lambda b, s: (0, 0)),
            pl.BlockSpec((b_blk, H_pad), lambda b, s: (b, 0)),
            pl.BlockSpec((b_blk, H_pad), lambda b, s: (b, 0)),
        ],
        out_specs=(
            pl.BlockSpec((s_blk, b_blk, H_pad), lambda b, s: (s, b, 0)),
            pl.BlockSpec((b_blk, H_pad), lambda b, s: (b, 0)),
            pl.BlockSpec((b_blk, H_pad), lambda b, s: (b, 0)),
        ),
        scratch_shapes=[
            pltpu.VMEM((b_blk, H_pad), jnp.float32),
            pltpu.VMEM((b_blk, H_pad), jnp.float32),
            pltpu.VMEM((s_blk * b_blk, G), gx_dtype),
        ],
        compiler_params=pltpu.CompilerParams(
            dimension_semantics=("parallel", "arbitrary"),
            vmem_limit_bytes=vmem_limit),
    )(x_tm, wih_t, whh_t, bias, h0, c0)


# --------------------------------------------------------------------------
# Pallas kernel 2: dense (Linear) + LogSoftmax, row-tiled, lane-dense output.
# --------------------------------------------------------------------------
def dense_logsoftmax_kernel(x_ref, w_ref, b_ref, o_ref):
    y = (jnp.dot(x_ref[...], w_ref[...], preferred_element_type=jnp.float32)
         + b_ref[...])                      # padded logit cols get bias -1e30
    m = jnp.max(y, axis=-1, keepdims=True)
    z = y - m
    lse = jnp.log(jnp.sum(jnp.exp(z), axis=-1, keepdims=True))
    o_ref[...] = z - lse


def run_dense_logsoftmax(x_flat, w_t, bias, *, blk_target, vmem_limit):
    N, H_pad = x_flat.shape
    O_pad = w_t.shape[-1]
    blk = min(blk_target, _round_up(N, 16))
    N_pad = _round_up(N, blk)
    if N_pad != N:
        x_flat = jnp.pad(x_flat, ((0, N_pad - N), (0, 0)))
    out = pl.pallas_call(
        dense_logsoftmax_kernel,
        out_shape=jax.ShapeDtypeStruct((N_pad, O_pad), jnp.float32),
        grid=(N_pad // blk,),
        in_specs=[
            pl.BlockSpec((blk, H_pad), lambda i: (i, 0)),
            pl.BlockSpec((H_pad, O_pad), lambda i: (0, 0)),
            pl.BlockSpec((1, O_pad), lambda i: (0, 0)),
        ],
        out_specs=pl.BlockSpec((blk, O_pad), lambda i: (i, 0)),
        compiler_params=pltpu.CompilerParams(
            dimension_semantics=("parallel",),
            vmem_limit_bytes=vmem_limit),
    )(x_flat, w_t, bias)
    return out[:N]


# --------------------------------------------------------------------------
# Parameter construction (PyTorch-layout, uniform(-1/sqrt(H), 1/sqrt(H))).
# --------------------------------------------------------------------------
def init_params(key, input_size, output_size, rnn_size, n_layers):
    params = {"layers": []}
    k = 1.0 / (rnn_size ** 0.5)
    keys = jax.random.split(key, 4 * n_layers + 2)
    for l in range(n_layers):
        in_sz = input_size if l == 0 else rnn_size
        k0, k1, k2, k3 = keys[4 * l:4 * l + 4]
        params["layers"].append({
            "w_ih": jax.random.uniform(k0, (4 * rnn_size, in_sz), jnp.float32, -k, k),
            "w_hh": jax.random.uniform(k1, (4 * rnn_size, rnn_size), jnp.float32, -k, k),
            "b_ih": jax.random.uniform(k2, (4 * rnn_size,), jnp.float32, -k, k),
            "b_hh": jax.random.uniform(k3, (4 * rnn_size,), jnp.float32, -k, k),
        })
    params["dense_w"] = jax.random.uniform(keys[-2], (output_size, rnn_size),
                                           jnp.float32, -k, k)
    params["dense_b"] = jax.random.uniform(keys[-1], (output_size,), jnp.float32, -k, k)
    return params


def _pack_gate_weight(w, h, h_pad, in_pad, dtype):
    """(4H, in) PyTorch layout -> (in_pad, 4*h_pad) transposed, gate-block padded."""
    in_dim = w.shape[1]
    w4 = w.reshape(4, h, in_dim)
    out = jnp.zeros((4, h_pad, in_pad), jnp.float32).at[:, :h, :in_dim].set(w4)
    return out.transpose(2, 0, 1).reshape(in_pad, 4 * h_pad).astype(dtype)


def _pack_gate_bias(b_ih, b_hh, h, h_pad):
    b = (b_ih + b_hh).reshape(4, h)
    out = jnp.zeros((4, h_pad), jnp.float32).at[:, :h].set(b)
    return out.reshape(1, 4 * h_pad)


def prepare_packed_params(params, input_size, rnn_size):
    """Pack / pad all weights ONCE outside the jitted forward path."""
    # TODO(synk): if production rnn_size is not a multiple of 128, the per-gate
    # H->H_pad padding multiplies W_hh MAC work by (H_pad/H)^2 — revisit packing.
    H = rnn_size
    H_pad = _round_up(H, 128)
    F_pad = _round_up(input_size, 128)
    O = params["dense_w"].shape[0]
    O_pad = _round_up(O, 128)
    layers = []
    for l, lp in enumerate(params["layers"]):
        in_pad = F_pad if l == 0 else H_pad
        layers.append({
            # W_hh kept bf16 (MXU operand); re-validate accuracy for long S.
            "wih": _pack_gate_weight(lp["w_ih"], H, H_pad, in_pad, jnp.bfloat16),
            "whh": _pack_gate_weight(lp["w_hh"], H, H_pad, H_pad, jnp.bfloat16),
            "bias": _pack_gate_bias(lp["b_ih"], lp["b_hh"], H, H_pad),
        })
    w_d = jnp.zeros((H_pad, O_pad), jnp.float32)
    w_d = w_d.at[:H, :O].set(params["dense_w"].T).astype(jnp.bfloat16)
    b_d = jnp.full((1, O_pad), -1e30, jnp.float32).at[0, :O].set(params["dense_b"])
    return {"layers": layers, "dense_w": w_d, "dense_b": b_d}


# --------------------------------------------------------------------------
# Forward pass equivalent to LSTM.forward(input_batch, lengths, h=None).
# Returns (logsoft (B, S, O), (h_n, c_n)) with h_n, c_n of shape (L, B, H).
# --------------------------------------------------------------------------
@functools.partial(jax.jit,
                   static_argnames=("n_layers", "rnn_size", "output_size"))
def lstm_forward(packed, input_batch, lengths, n_layers, rnn_size, output_size):
    # TODO(synk): `lengths` is unused (reference forward does not pack either);
    # the recurrence runs over the full padded sequence like nn.LSTM on raw input.
    del lengths
    B, S, F = input_batch.shape
    H, O = rnn_size, output_size
    hw = _hw_config()

    H_pad = _round_up(H, 128)
    F_pad = _round_up(F, 128)
    O_pad = _round_up(O, 128)

    B_pad = _round_up(B, 16)              # sublane padding (bf16 tile = 16)
    b_blk = min(B_pad, hw["mxu_rows"])    # fill the MXU row dimension
    if hw["cores"] >= 2 and B_pad >= 256:
        # Guarantee nb >= 2 so the "parallel" batch axis shards across both TCs.
        b_blk = min(b_blk, _round_up(-(-B_pad // 2), 16))
    # (If B is small, nb == 1 and the second TensorCore on v7x simply idles.)
    B_pad = _round_up(B_pad, b_blk)

    # Unroll tied to b_blk to avoid vreg spills once the gate block is large.
    if b_blk <= 32:
        unroll = 8
    elif b_blk <= 64:
        unroll = 4
    else:
        unroll = 2

    gx_bytes = jnp.dtype(hw["gx_dtype"]).itemsize
    s_blk = _pick_s_block(S, b_blk, max(F_pad, H_pad), H_pad,
                          gx_bytes=gx_bytes,
                          budget_bytes=hw["chunk_budget"],
                          cap=hw["s_cap"])
    S_pad = _round_up(S, s_blk)
    unroll = max(1, min(unroll, s_blk))

    # Time-major, padded, bf16 activations (cast BEFORE transpose/pad -> fewer bytes).
    x = jnp.transpose(input_batch.astype(jnp.bfloat16), (1, 0, 2))   # (S, B, F)
    x = jnp.pad(x, ((0, S_pad - S), (0, B_pad - B), (0, F_pad - F)))

    h0 = jnp.zeros((B_pad, H_pad), jnp.float32)
    c0 = jnp.zeros((B_pad, H_pad), jnp.float32)

    h_finals, c_finals = [], []
    for l in range(n_layers):
        lp = packed["layers"][l]
        x, hN, cN = run_lstm_layer(x, lp["wih"], lp["whh"], lp["bias"], h0, c0,
                                   s_real=S, s_blk=s_blk, b_blk=b_blk,
                                   gx_dtype=hw["gx_dtype"],
                                   gate_dtype=hw["gate_dtype"],
                                   vmem_limit=hw["vmem_limit"],
                                   unroll=unroll)
        h_finals.append(hN[:B, :H])
        c_finals.append(cN[:B, :H])
        # TODO(synk): inter-layer / output dropout treated as identity (eval mode).

    h_n = jnp.stack(h_finals, axis=0)       # (L, B, H)
    c_n = jnp.stack(c_finals, axis=0)       # (L, B, H)

    # Dense + log-softmax on the time-major flatten (no (B,S,H) transpose).
    flat = x[:S].reshape(S * B_pad, H_pad)                           # bf16
    logits = run_dense_logsoftmax(flat, packed["dense_w"], packed["dense_b"],
                                  blk_target=hw["dense_blk"],
                                  vmem_limit=hw["vmem_limit"])
    logsoft = logits.reshape(S, B_pad, O_pad)[:, :B, :O]
    logsoft = jnp.transpose(logsoft, (1, 0, 2))                      # (B, S, O)
    return logsoft, (h_n, c_n)


# --------------------------------------------------------------------------
# Pure-JAX reference (f32) for a sanity check of the kernel path.
# --------------------------------------------------------------------------
def _reference_forward(params, input_batch, n_layers, rnn_size):
    B, S, F = input_batch.shape
    H = rnn_size
    x = input_batch.astype(jnp.float32)
    h_fin, c_fin = [], []
    for l in range(n_layers):
        lp = params["layers"][l]
        w_ih, w_hh = lp["w_ih"], lp["w_hh"]
        b = lp["b_ih"] + lp["b_hh"]

        def step(carry, x_t):
            h, c = carry
            g = x_t @ w_ih.T + h @ w_hh.T + b
            i = jax.nn.sigmoid(g[:, 0 * H:1 * H])
            f = jax.nn.sigmoid(g[:, 1 * H:2 * H])
            gg = jnp.tanh(g[:, 2 * H:3 * H])
            o = jax.nn.sigmoid(g[:, 3 * H:4 * H])
            c = f * c + i * gg
            h = o * jnp.tanh(c)
            return (h, c), h

        (hN, cN), ys = lax.scan(step,
                                (jnp.zeros((B, H)), jnp.zeros((B, H))),
                                jnp.transpose(x, (1, 0, 2)))
        x = jnp.transpose(ys, (1, 0, 2))
        h_fin.append(hN)
        c_fin.append(cN)
    logits = x @ params["dense_w"].T + params["dense_b"]
    return jax.nn.log_softmax(logits, axis=-1), (jnp.stack(h_fin), jnp.stack(c_fin))


if __name__ == "__main__":
    # input_batch: (batch, seq_len + 1, feat) ; lengths: (batch,)
    batch, seq, feat = 2, 8, 16
    rnn_size, output_size, n_layers = 32, 10, 2

    key = jax.random.PRNGKey(0)
    k_param, k_x = jax.random.split(key)
    params = init_params(k_param, feat, output_size, rnn_size, n_layers)
    packed = prepare_packed_params(params, feat, rnn_size)   # once, outside jit
    input_batch = jax.random.normal(k_x, (batch, seq, feat), jnp.float32)
    lengths = jnp.full((batch,), seq, jnp.int32)

    logsoft, (h_n, c_n) = lstm_forward(packed, input_batch, lengths,
                                       n_layers=n_layers, rnn_size=rnn_size,
                                       output_size=output_size)
    jax.block_until_ready((logsoft, h_n, c_n))

    assert logsoft.shape == (batch, seq, output_size)
    assert h_n.shape == (n_layers, batch, rnn_size)
    assert c_n.shape == (n_layers, batch, rnn_size)
    # log-softmax rows should sum (in prob space) to ~1
    assert jnp.allclose(jnp.sum(jnp.exp(logsoft), axis=-1), 1.0, atol=1e-4)
    assert bool(jnp.isfinite(logsoft).all())
    assert bool(jnp.isfinite(h_n).all()) and bool(jnp.isfinite(c_n).all())

    # Loose numerical sanity check vs a pure-JAX f32 reference (kernel uses
    # bf16 matmul operands / gates, so allow bf16-level tolerance).
    ref_ls, (ref_h, ref_c) = _reference_forward(params, input_batch,
                                                n_layers, rnn_size)
    assert float(jnp.max(jnp.abs(logsoft - ref_ls))) < 0.2
    assert float(jnp.max(jnp.abs(h_n - ref_h))) < 0.2

    print("KERNEL_OK")
</pallas_src>

<mosaic_0001>
module attributes {stable_mosaic.version = 11 : i64} {
  func.func @lstm_layer_kernel(%arg0: i32, %arg1: i32, %arg2: memref<8x16x128xbf16, #tpu.memory_space<vmem>>, %arg3: memref<128x512xbf16, #tpu.memory_space<vmem>>, %arg4: memref<128x512xbf16, #tpu.memory_space<vmem>>, %arg5: memref<1x512xf32, #tpu.memory_space<vmem>>, %arg6: memref<16x128xf32, #tpu.memory_space<vmem>>, %arg7: memref<16x128xf32, #tpu.memory_space<vmem>>, %arg8: memref<8x16x128xbf16, #tpu.memory_space<vmem>>, %arg9: memref<16x128xf32, #tpu.memory_space<vmem>>, %arg10: memref<16x128xf32, #tpu.memory_space<vmem>>, %arg11: memref<16x128xf32, #tpu.memory_space<vmem>>, %arg12: memref<16x128xf32, #tpu.memory_space<vmem>>, %arg13: memref<128x512xbf16, #tpu.memory_space<vmem>>) attributes {dimension_semantics = [#tpu.dimension_semantics<parallel>, #tpu.dimension_semantics<arbitrary>], iteration_bounds = array<i64: 1, 1>, scalar_prefetch = 0 : i64, scratch_operands = 3 : i64, tpu.core_type = #tpu.core_type<tc>, window_params = [{transform_indices = @transform_0, window_bounds = array<i64: 8, 16, 128>}, {pipeline_mode = #tpu.pipeline_mode<synchronous>, transform_indices = @transform_1, window_bounds = array<i64: 128, 512>}, {pipeline_mode = #tpu.pipeline_mode<synchronous>, transform_indices = @transform_2, window_bounds = array<i64: 128, 512>}, {pipeline_mode = #tpu.pipeline_mode<synchronous>, transform_indices = @transform_3, window_bounds = array<i64: 1, 512>}, {transform_indices = @transform_4, window_bounds = array<i64: 16, 128>}, {transform_indices = @transform_5, window_bounds = array<i64: 16, 128>}, {transform_indices = @transform_6, window_bounds = array<i64: 8, 16, 128>}, {transform_indices = @transform_7, window_bounds = array<i64: 16, 128>}, {transform_indices = @transform_8, window_bounds = array<i64: 16, 128>}]} {
    %c0_i32 = arith.constant 0 : i32
    %0 = arith.cmpi eq, %arg1, %c0_i32 : i32
    %1 = arith.extui %0 : i1 to i32
    %c0_i32_0 = arith.constant 0 : i32
    %2 = arith.cmpi ne, %1, %c0_i32_0 : i32
    scf.if %2 {
      %c0_85 = arith.constant 0 : index
      %c0_86 = arith.constant 0 : index
      %356 = vector.load %arg6[%c0_85, %c0_86] : memref<16x128xf32, #tpu.memory_space<vmem>>, vector<16x128xf32>
      %c0_87 = arith.constant 0 : index
      %c0_88 = arith.constant 0 : index
      %357 = vector.load %arg11[%c0_87, %c0_88] : memref<16x128xf32, #tpu.memory_space<vmem>>, vector<16x128xf32>
      tpu.vector_store %arg11[%c0_87, %c0_88], %356 {strides = array<i32>} : memref<16x128xf32, #tpu.memory_space<vmem>>, vector<16x128xf32>,
      %c0_89 = arith.constant 0 : index
      %c0_90 = arith.constant 0 : index
      %358 = vector.load %arg7[%c0_89, %c0_90] : memref<16x128xf32, #tpu.memory_space<vmem>>, vector<16x128xf32>
      %c0_91 = arith.constant 0 : index
      %c0_92 = arith.constant 0 : index
      %359 = vector.load %arg12[%c0_91, %c0_92] : memref<16x128xf32, #tpu.memory_space<vmem>>, vector<16x128xf32>
      tpu.vector_store %arg12[%c0_91, %c0_92], %358 {strides = array<i32>} : memref<16x128xf32, #tpu.memory_space<vmem>>, vector<16x128xf32>,
    } else {
    }
    %c0 = arith.constant 0 : index
    %c0_1 = arith.constant 0 : index
    %c0_2 = arith.constant 0 : index
    %3 = vector.load %arg2[%c0, %c0_1, %c0_2] : memref<8x16x128xbf16, #tpu.memory_space<vmem>>, vector<8x16x128xbf16>
    %4 = vector.shape_cast %3 : vector<8x16x128xbf16> to vector<128x128xbf16>
    %c0_3 = arith.constant 0 : index
    %c0_4 = arith.constant 0 : index
    %5 = vector.load %arg3[%c0_3, %c0_4] : memref<128x512xbf16, #tpu.memory_space<vmem>>, vector<128x512xbf16>
    %cst = arith.constant dense<0.000000e+00> : vector<128x512xf32>
    %6 = tpu.matmul %4, %5, %cst {dimension_numbers = #tpu.dot_dimension_numbers<[1], [0], [0], [1], [0, 0, 1, 1], [], []>} : vector<128x128xbf16>, vector<128x512xbf16>, vector<128x512xf32> -> vector<128x512xf32>
    %c0_5 = arith.constant 0 : index
    %c0_6 = arith.constant 0 : index
    %7 = vector.load %arg5[%c0_5, %c0_6] : memref<1x512xf32, #tpu.memory_space<vmem>>, vector<1x512xf32>
    %8 = vector.broadcast %7 : vector<1x512xf32> to vector<128x512xf32>
    %9 = arith.addf %6, %8 : vector<128x512xf32>
    %10 = arith.truncf %9 : vector<128x512xf32> to vector<128x512xbf16>
    %c0_7 = arith.constant 0 : index
    %c0_8 = arith.constant 0 : index
    %11 = vector.load %arg13[%c0_7, %c0_8] : memref<128x512xbf16, #tpu.memory_space<vmem>>, vector<128x512xbf16>
    tpu.vector_store %arg13[%c0_7, %c0_8], %10 {strides = array<i32>} : memref<128x512xbf16, #tpu.memory_space<vmem>>, vector<128x512xbf16>,
    %c0_9 = arith.constant 0 : index
    %c0_10 = arith.constant 0 : index
    %12 = vector.load %arg4[%c0_9, %c0_10] : memref<128x512xbf16, #tpu.memory_space<vmem>>, vector<128x512xbf16>
    %c0_11 = arith.constant 0 : index
    %c0_12 = arith.constant 0 : index
    %13 = vector.load %arg11[%c0_11, %c0_12] : memref<16x128xf32, #tpu.memory_space<vmem>>, vector<16x128xf32>
    %c0_13 = arith.constant 0 : index
    %c0_14 = arith.constant 0 : index
    %14 = vector.load %arg12[%c0_13, %c0_14] : memref<16x128xf32, #tpu.memory_space<vmem>>, vector<16x128xf32>
    %c0_i32_15 = arith.constant 0 : i32
    %c16_i32 = arith.constant 16 : i32
    %15 = arith.muli %c0_i32_15, %c16_i32 : i32
    %16 = tpu.assume_multiple %15, 16 : i32
    %17 = arith.index_cast %16 : i32 to index
    %c0_16 = arith.constant 0 : index
    %18 = vector.load %arg13[%17, %c0_16] : memref<128x512xbf16, #tpu.memory_space<vmem>>, vector<16x512xbf16>
    %19 = arith.extf %18 : vector<16x512xbf16> to vector<16x512xf32>
    %20 = arith.truncf %13 : vector<16x128xf32> to vector<16x128xbf16>
    %cst_17 = arith.constant dense<0.000000e+00> : vector<16x512xf32>
    %21 = tpu.matmul %20, %12, %cst_17 {dimension_numbers = #tpu.dot_dimension_numbers<[1], [0], [0], [1], [0, 0, 1, 1], [], []>} : vector<16x128xbf16>, vector<128x512xbf16>, vector<16x512xf32> -> vector<16x512xf32>
    %22 = arith.addf %19, %21 : vector<16x512xf32>
    %23 = arith.truncf %22 : vector<16x512xf32> to vector<16x512xbf16>
    %24 = vector.extract_strided_slice %23 {offsets = [0, 0], sizes = [16, 128], strides = [1, 1]} : vector<16x512xbf16> to vector<16x128xbf16>
    %25 = arith.negf %24 : vector<16x128xbf16>
    %26 = math.exp %25 : vector<16x128xbf16>
    %cst_18 = arith.constant 1.000000e+00 : bf16
    %27 = vector.broadcast %cst_18 : bf16 to vector<16x128xbf16>
    %28 = arith.addf %27, %26 : vector<16x128xbf16>
    %29 = arith.divf %27, %28 : vector<16x128xbf16>
    %30 = vector.extract_strided_slice %23 {offsets = [0, 128], sizes = [16, 128], strides = [1, 1]} : vector<16x512xbf16> to vector<16x128xbf16>
    %31 = arith.negf %30 : vector<16x128xbf16>
    %32 = math.exp %31 : vector<16x128xbf16>
    %cst_19 = arith.constant 1.000000e+00 : bf16
    %33 = vector.broadcast %cst_19 : bf16 to vector<16x128xbf16>
    %34 = arith.addf %33, %32 : vector<16x128xbf16>
    %35 = arith.divf %33, %34 : vector<16x128xbf16>
    %36 = vector.extract_strided_slice %23 {offsets = [0, 256], sizes = [16, 128], strides = [1, 1]} : vector<16x512xbf16> to vector<16x128xbf16>
    %37 = math.tanh %36 : vector<16x128xbf16>
    %38 = vector.extract_strided_slice %23 {offsets = [0, 384], sizes = [16, 128], strides = [1, 1]} : vector<16x512xbf16> to vector<16x128xbf16>
    %39 = arith.negf %38 : vector<16x128xbf16>
    %40 = math.exp %39 : vector<16x128xbf16>
    %cst_20 = arith.constant 1.000000e+00 : bf16
    %41 = vector.broadcast %cst_20 : bf16 to vector<16x128xbf16>
    %42 = arith.addf %41, %40 : vector<16x128xbf16>
    %43 = arith.divf %41, %42 : vector<16x128xbf16>
    %44 = arith.extf %35 : vector<16x128xbf16> to vector<16x128xf32>
    %45 = arith.mulf %44, %14 : vector<16x128xf32>
    %46 = arith.mulf %29, %37 : vector<16x128xbf16>
    %47 = arith.extf %46 : vector<16x128xbf16> to vector<16x128xf32>
    %48 = arith.addf %45, %47 : vector<16x128xf32>
    %49 = math.tanh %48 : vector<16x128xf32>
    %50 = arith.extf %43 : vector<16x128xbf16> to vector<16x128xf32>
    %51 = arith.mulf %50, %49 : vector<16x128xf32>
    %52 = arith.truncf %51 : vector<16x128xf32> to vector<16x128xbf16>
    %53 = arith.index_cast %c0_i32_15 : i32 to index
    %c0_21 = arith.constant 0 : index
    %c0_22 = arith.constant 0 : index
    %54 = vector.load %arg8[%53, %c0_21, %c0_22] : memref<8x16x128xbf16, #tpu.memory_space<vmem>>, vector<1x16x128xbf16>
    %55 = vector.shape_cast %54 : vector<1x16x128xbf16> to vector<16x128xbf16>
    %56 = vector.shape_cast %52 : vector<16x128xbf16> to vector<1x16x128xbf16>
    tpu.vector_store %arg8[%53, %c0_21, %c0_22], %56 {strides = array<i32>} : memref<8x16x128xbf16, #tpu.memory_space<vmem>>, vector<1x16x128xbf16>,
    %c1_i32 = arith.constant 1 : i32
    %c16_i32_23 = arith.constant 16 : i32
    %57 = arith.muli %c1_i32, %c16_i32_23 : i32
    %58 = tpu.assume_multiple %57, 16 : i32
    %59 = arith.index_cast %58 : i32 to index
    %c0_24 = arith.constant 0 : index
    %60 = vector.load %arg13[%59, %c0_24] : memref<128x512xbf16, #tpu.memory_space<vmem>>, vector<16x512xbf16>
    %61 = arith.extf %60 : vector<16x512xbf16> to vector<16x512xf32>
    %62 = arith.truncf %51 : vector<16x128xf32> to vector<16x128xbf16>
    %cst_25 = arith.constant dense<0.000000e+00> : vector<16x512xf32>
    %63 = tpu.matmul %62, %12, %cst_25 {dimension_numbers = #tpu.dot_dimension_numbers<[1], [0], [0], [1], [0, 0, 1, 1], [], []>} : vector<16x128xbf16>, vector<128x512xbf16>, vector<16x512xf32> -> vector<16x512xf32>
    %64 = arith.addf %61, %63 : vector<16x512xf32>
    %65 = arith.truncf %64 : vector<16x512xf32> to vector<16x512xbf16>
    %66 = vector.extract_strided_slice %65 {offsets = [0, 0], sizes = [16, 128], strides = [1, 1]} : vector<16x512xbf16> to vector<16x128xbf16>
    %67 = arith.negf %66 : vector<16x128xbf16>
    %68 = math.exp %67 : vector<16x128xbf16>
    %cst_26 = arith.constant 1.000000e+00 : bf16
    %69 = vector.broadcast %cst_26 : bf16 to vector<16x128xbf16>
    %70 = arith.addf %69, %68 : vector<16x128xbf16>
    %71 = arith.divf %69, %70 : vector<16x128xbf16>
    %72 = vector.extract_strided_slice %65 {offsets = [0, 128], sizes = [16, 128], strides = [1, 1]} : vector<16x512xbf16> to vector<16x128xbf16>
    %73 = arith.negf %72 : vector<16x128xbf16>
    %74 = math.exp %73 : vector<16x128xbf16>
    %cst_27 = arith.constant 1.000000e+00 : bf16
    %75 = vector.broadcast %cst_27 : bf16 to vector<16x128xbf16>
    %76 = arith.addf %75, %74 : vector<16x128xbf16>
    %77 = arith.divf %75, %76 : vector<16x128xbf16>
    %78 = vector.extract_strided_slice %65 {offsets = [0, 256], sizes = [16, 128], strides = [1, 1]} : vector<16x512xbf16> to vector<16x128xbf16>
    %79 = math.tanh %78 : vector<16x128xbf16>
    %80 = vector.extract_strided_slice %65 {offsets = [0, 384], sizes = [16, 128], strides = [1, 1]} : vector<16x512xbf16> to vector<16x128xbf16>
    %81 = arith.negf %80 : vector<16x128xbf16>
    %82 = math.exp %81 : vector<16x128xbf16>
    %cst_28 = arith.constant 1.000000e+00 : bf16
    %83 = vector.broadcast %cst_28 : bf16 to vector<16x128xbf16>
    %84 = arith.addf %83, %82 : vector<16x128xbf16>
    %85 = arith.divf %83, %84 : vector<16x128xbf16>
    %86 = arith.extf %77 : vector<16x128xbf16> to vector<16x128xf32>
    %87 = arith.mulf %86, %48 : vector<16x128xf32>
    %88 = arith.mulf %71, %79 : vector<16x128xbf16>
    %89 = arith.extf %88 : vector<16x128xbf16> to vector<16x128xf32>
    %90 = arith.addf %87, %89 : vector<16x128xf32>
    %91 = math.tanh %90 : vector<16x128xf32>
    %92 = arith.extf %85 : vector<16x128xbf16> to vector<16x128xf32>
    %93 = arith.mulf %92, %91 : vector<16x128xf32>
    %94 = arith.truncf %93 : vector<16x128xf32> to vector<16x128xbf16>
    %95 = arith.index_cast %c1_i32 : i32 to index
    %c0_29 = arith.constant 0 : index
    %c0_30 = arith.constant 0 : index
    %96 = vector.load %arg8[%95, %c0_29, %c0_30] : memref<8x16x128xbf16, #tpu.memory_space<vmem>>, vector<1x16x128xbf16>
    %97 = vector.shape_cast %96 : vector<1x16x128xbf16> to vector<16x128xbf16>
    %98 = vector.shape_cast %94 : vector<16x128xbf16> to vector<1x16x128xbf16>
    tpu.vector_store %arg8[%95, %c0_29, %c0_30], %98 {strides = array<i32>} : memref<8x16x128xbf16, #tpu.memory_space<vmem>>, vector<1x16x128xbf16>,
    %c2_i32 = arith.constant 2 : i32
    %c16_i32_31 = arith.constant 16 : i32
    %99 = arith.muli %c2_i32, %c16_i32_31 : i32
    %100 = tpu.assume_multiple %99, 16 : i32
    %101 = arith.index_cast %100 : i32 to index
    %c0_32 = arith.constant 0 : index
    %102 = vector.load %arg13[%101, %c0_32] : memref<128x512xbf16, #tpu.memory_space<vmem>>, vector<16x512xbf16>
    %103 = arith.extf %102 : vector<16x512xbf16> to vector<16x512xf32>
    %104 = arith.truncf %93 : vector<16x128xf32> to vector<16x128xbf16>
    %cst_33 = arith.constant dense<0.000000e+00> : vector<16x512xf32>
    %105 = tpu.matmul %104, %12, %cst_33 {dimension_numbers = #tpu.dot_dimension_numbers<[1], [0], [0], [1], [0, 0, 1, 1], [], []>} : vector<16x128xbf16>, vector<128x512xbf16>, vector<16x512xf32> -> vector<16x512xf32>
    %106 = arith.addf %103, %105 : vector<16x512xf32>
    %107 = arith.truncf %106 : vector<16x512xf32> to vector<16x512xbf16>
    %108 = vector.extract_strided_slice %107 {offsets = [0, 0], sizes = [16, 128], strides = [1, 1]} : vector<16x512xbf16> to vector<16x128xbf16>
    %109 = arith.negf %108 : vector<16x128xbf16>
    %110 = math.exp %109 : vector<16x128xbf16>
    %cst_34 = arith.constant 1.000000e+00 : bf16
    %111 = vector.broadcast %cst_34 : bf16 to vector<16x128xbf16>
    %112 = arith.addf %111, %110 : vector<16x128xbf16>
    %113 = arith.divf %111, %112 : vector<16x128xbf16>
    %114 = vector.extract_strided_slice %107 {offsets = [0, 128], sizes = [16, 128], strides = [1, 1]} : vector<16x512xbf16> to vector<16x128xbf16>
    %115 = arith.negf %114 : vector<16x128xbf16>
    %116 = math.exp %115 : vector<16x128xbf16>
    %cst_35 = arith.constant 1.000000e+00 : bf16
    %117 = vector.broadcast %cst_35 : bf16 to vector<16x128xbf16>
    %118 = arith.addf %117, %116 : vector<16x128xbf16>
    %119 = arith.divf %117, %118 : vector<16x128xbf16>
    %120 = vector.extract_strided_slice %107 {offsets = [0, 256], sizes = [16, 128], strides = [1, 1]} : vector<16x512xbf16> to vector<16x128xbf16>
    %121 = math.tanh %120 : vector<16x128xbf16>
    %122 = vector.extract_strided_slice %107 {offsets = [0, 384], sizes = [16, 128], strides = [1, 1]} : vector<16x512xbf16> to vector<16x128xbf16>
    %123 = arith.negf %122 : vector<16x128xbf16>
    %124 = math.exp %123 : vector<16x128xbf16>
    %cst_36 = arith.constant 1.000000e+00 : bf16
    %125 = vector.broadcast %cst_36 : bf16 to vector<16x128xbf16>
    %126 = arith.addf %125, %124 : vector<16x128xbf16>
    %127 = arith.divf %125, %126 : vector<16x128xbf16>
    %128 = arith.extf %119 : vector<16x128xbf16> to vector<16x128xf32>
    %129 = arith.mulf %128, %90 : vector<16x128xf32>
    %130 = arith.mulf %113, %121 : vector<16x128xbf16>
    %131 = arith.extf %130 : vector<16x128xbf16> to vector<16x128xf32>
    %132 = arith.addf %129, %131 : vector<16x128xf32>
    %133 = math.tanh %132 : vector<16x128xf32>
    %134 = arith.extf %127 : vector<16x128xbf16> to vector<16x128xf32>
    %135 = arith.mulf %134, %133 : vector<16x128xf32>
    %136 = arith.truncf %135 : vector<16x128xf32> to vector<16x128xbf16>
    %137 = arith.index_cast %c2_i32 : i32 to index
    %c0_37 = arith.constant 0 : index
    %c0_38 = arith.constant 0 : index
    %138 = vector.load %arg8[%137, %c0_37, %c0_38] : memref<8x16x128xbf16, #tpu.memory_space<vmem>>, vector<1x16x128xbf16>
    %139 = vector.shape_cast %138 : vector<1x16x128xbf16> to vector<16x128xbf16>
    %140 = vector.shape_cast %136 : vector<16x128xbf16> to vector<1x16x128xbf16>
    tpu.vector_store %arg8[%137, %c0_37, %c0_38], %140 {strides = array<i32>} : memref<8x16x128xbf16, #tpu.memory_space<vmem>>, vector<1x16x128xbf16>,
    %c3_i32 = arith.constant 3 : i32
    %c16_i32_39 = arith.constant 16 : i32
    %141 = arith.muli %c3_i32, %c16_i32_39 : i32
    %142 = tpu.assume_multiple %141, 16 : i32
    %143 = arith.index_cast %142 : i32 to index
    %c0_40 = arith.constant 0 : index
    %144 = vector.load %arg13[%143, %c0_40] : memref<128x512xbf16, #tpu.memory_space<vmem>>, vector<16x512xbf16>
    %145 = arith.extf %144 : vector<16x512xbf16> to vector<16x512xf32>
    %146 = arith.truncf %135 : vector<16x128xf32> to vector<16x128xbf16>
    %cst_41 = arith.constant dense<0.000000e+00> : vector<16x512xf32>
    %147 = tpu.matmul %146, %12, %cst_41 {dimension_numbers = #tpu.dot_dimension_numbers<[1], [0], [0], [1], [0, 0, 1, 1], [], []>} : vector<16x128xbf16>, vector<128x512xbf16>, vector<16x512xf32> -> vector<16x512xf32>
    %148 = arith.addf %145, %147 : vector<16x512xf32>
    %149 = arith.truncf %148 : vector<16x512xf32> to vector<16x512xbf16>
    %150 = vector.extract_strided_slice %149 {offsets = [0, 0], sizes = [16, 128], strides = [1, 1]} : vector<16x512xbf16> to vector<16x128xbf16>
    %151 = arith.negf %150 : vector<16x128xbf16>
    %152 = math.exp %151 : vector<16x128xbf16>
    %cst_42 = arith.constant 1.000000e+00 : bf16
    %153 = vector.broadcast %cst_42 : bf16 to vector<16x128xbf16>
    %154 = arith.addf %153, %152 : vector<16x128xbf16>
    %155 = arith.divf %153, %154 : vector<16x128xbf16>
    %156 = vector.extract_strided_slice %149 {offsets = [0, 128], sizes = [16, 128], strides = [1, 1]} : vector<16x512xbf16> to vector<16x128xbf16>
    %157 = arith.negf %156 : vector<16x128xbf16>
    %158 = math.exp %157 : vector<16x128xbf16>
    %cst_43 = arith.constant 1.000000e+00 : bf16
    %159 = vector.broadcast %cst_43 : bf16 to vector<16x128xbf16>
    %160 = arith.addf %159, %158 : vector<16x128xbf16>
    %161 = arith.divf %159, %160 : vector<16x128xbf16>
    %162 = vector.extract_strided_slice %149 {offsets = [0, 256], sizes = [16, 128], strides = [1, 1]} : vector<16x512xbf16> to vector<16x128xbf16>
    %163 = math.tanh %162 : vector<16x128xbf16>
    %164 = vector.extract_strided_slice %149 {offsets = [0, 384], sizes = [16, 128], strides = [1, 1]} : vector<16x512xbf16> to vector<16x128xbf16>
    %165 = arith.negf %164 : vector<16x128xbf16>
    %166 = math.exp %165 : vector<16x128xbf16>
    %cst_44 = arith.constant 1.000000e+00 : bf16
    %167 = vector.broadcast %cst_44 : bf16 to vector<16x128xbf16>
    %168 = arith.addf %167, %166 : vector<16x128xbf16>
    %169 = arith.divf %167, %168 : vector<16x128xbf16>
    %170 = arith.extf %161 : vector<16x128xbf16> to vector<16x128xf32>
    %171 = arith.mulf %170, %132 : vector<16x128xf32>
    %172 = arith.mulf %155, %163 : vector<16x128xbf16>
    %173 = arith.extf %172 : vector<16x128xbf16> to vector<16x128xf32>
    %174 = arith.addf %171, %173 : vector<16x128xf32>
    %175 = math.tanh %174 : vector<16x128xf32>
    %176 = arith.extf %169 : vector<16x128xbf16> to vector<16x128xf32>
    %177 = arith.mulf %176, %175 : vector<16x128xf32>
    %178 = arith.truncf %177 : vector<16x128xf32> to vector<16x128xbf16>
    %179 = arith.index_cast %c3_i32 : i32 to index
    %c0_45 = arith.constant 0 : index
    %c0_46 = arith.constant 0 : index
    %180 = vector.load %arg8[%179, %c0_45, %c0_46] : memref<8x16x128xbf16, #tpu.memory_space<vmem>>, vector<1x16x128xbf16>
    %181 = vector.shape_cast %180 : vector<1x16x128xbf16> to vector<16x128xbf16>
    %182 = vector.shape_cast %178 : vector<16x128xbf16> to vector<1x16x128xbf16>
    tpu.vector_store %arg8[%179, %c0_45, %c0_46], %182 {strides = array<i32>} : memref<8x16x128xbf16, #tpu.memory_space<vmem>>, vector<1x16x128xbf16>,
    %c4_i32 = arith.constant 4 : i32
    %c16_i32_47 = arith.constant 16 : i32
    %183 = arith.muli %c4_i32, %c16_i32_47 : i32
    %184 = tpu.assume_multiple %183, 16 : i32
    %185 = arith.index_cast %184 : i32 to index
    %c0_48 = arith.constant 0 : index
    %186 = vector.load %arg13[%185, %c0_48] : memref<128x512xbf16, #tpu.memory_space<vmem>>, vector<16x512xbf16>
    %187 = arith.extf %186 : vector<16x512xbf16> to vector<16x512xf32>
    %188 = arith.truncf %177 : vector<16x128xf32> to vector<16x128xbf16>
    %cst_49 = arith.constant dense<0.000000e+00> : vector<16x512xf32>
    %189 = tpu.matmul %188, %12, %cst_49 {dimension_numbers = #tpu.dot_dimension_numbers<[1], [0], [0], [1], [0, 0, 1, 1], [], []>} : vector<16x128xbf16>, vector<128x512xbf16>, vector<16x512xf32> -> vector<16x512xf32>
    %190 = arith.addf %187, %189 : vector<16x512xf32>
    %191 = arith.truncf %190 : vector<16x512xf32> to vector<16x512xbf16>
    %192 = vector.extract_strided_slice %191 {offsets = [0, 0], sizes = [16, 128], strides = [1, 1]} : vector<16x512xbf16> to vector<16x128xbf16>
    %193 = arith.negf %192 : vector<16x128xbf16>
    %194 = math.exp %193 : vector<16x128xbf16>
    %cst_50 = arith.constant 1.000000e+00 : bf16
    %195 = vector.broadcast %cst_50 : bf16 to vector<16x128xbf16>
    %196 = arith.addf %195, %194 : vector<16x128xbf16>
    %197 = arith.divf %195, %196 : vector<16x128xbf16>
    %198 = vector.extract_strided_slice %191 {offsets = [0, 128], sizes = [16, 128], strides = [1, 1]} : vector<16x512xbf16> to vector<16x128xbf16>
    %199 = arith.negf %198 : vector<16x128xbf16>
    %200 = math.exp %199 : vector<16x128xbf16>
    %cst_51 = arith.constant 1.000000e+00 : bf16
    %201 = vector.broadcast %cst_51 : bf16 to vector<16x128xbf16>
    %202 = arith.addf %201, %200 : vector<16x128xbf16>
    %203 = arith.divf %201, %202 : vector<16x128xbf16>
    %204 = vector.extract_strided_slice %191 {offsets = [0, 256], sizes = [16, 128], strides = [1, 1]} : vector<16x512xbf16> to vector<16x128xbf16>
    %205 = math.tanh %204 : vector<16x128xbf16>
    %206 = vector.extract_strided_slice %191 {offsets = [0, 384], sizes = [16, 128], strides = [1, 1]} : vector<16x512xbf16> to vector<16x128xbf16>
    %207 = arith.negf %206 : vector<16x128xbf16>
    %208 = math.exp %207 : vector<16x128xbf16>
    %cst_52 = arith.constant 1.000000e+00 : bf16
    %209 = vector.broadcast %cst_52 : bf16 to vector<16x128xbf16>
    %210 = arith.addf %209, %208 : vector<16x128xbf16>
    %211 = arith.divf %209, %210 : vector<16x128xbf16>
    %212 = arith.extf %203 : vector<16x128xbf16> to vector<16x128xf32>
    %213 = arith.mulf %212, %174 : vector<16x128xf32>
    %214 = arith.mulf %197, %205 : vector<16x128xbf16>
    %215 = arith.extf %214 : vector<16x128xbf16> to vector<16x128xf32>
    %216 = arith.addf %213, %215 : vector<16x128xf32>
    %217 = math.tanh %216 : vector<16x128xf32>
    %218 = arith.extf %211 : vector<16x128xbf16> to vector<16x128xf32>
    %219 = arith.mulf %218, %217 : vector<16x128xf32>
    %220 = arith.truncf %219 : vector<16x128xf32> to vector<16x128xbf16>
    %221 = arith.index_cast %c4_i32 : i32 to index
    %c0_53 = arith.constant 0 : index
    %c0_54 = arith.constant 0 : index
    %222 = vector.load %arg8[%221, %c0_53, %c0_54] : memref<8x16x128xbf16, #tpu.memory_space<vmem>>, vector<1x16x128xbf16>
    %223 = vector.shape_cast %222 : vector<1x16x128xbf16> to vector<16x128xbf16>
    %224 = vector.shape_cast %220 : vector<16x128xbf16> to vector<1x16x128xbf16>
    tpu.vector_store %arg8[%221, %c0_53, %c0_54], %224 {strides = array<i32>} : memref<8x16x128xbf16, #tpu.memory_space<vmem>>, vector<1x16x128xbf16>,
    %c5_i32 = arith.constant 5 : i32
    %c16_i32_55 = arith.constant 16 : i32
    %225 = arith.muli %c5_i32, %c16_i32_55 : i32
    %226 = tpu.assume_multiple %225, 16 : i32
    %227 = arith.index_cast %226 : i32 to index
    %c0_56 = arith.constant 0 : index
    %228 = vector.load %arg13[%227, %c0_56] : memref<128x512xbf16, #tpu.memory_space<vmem>>, vector<16x512xbf16>
    %229 = arith.extf %228 : vector<16x512xbf16> to vector<16x512xf32>
    %230 = arith.truncf %219 : vector<16x128xf32> to vector<16x128xbf16>
    %cst_57 = arith.constant dense<0.000000e+00> : vector<16x512xf32>
    %231 = tpu.matmul %230, %12, %cst_57 {dimension_numbers = #tpu.dot_dimension_numbers<[1], [0], [0], [1], [0, 0, 1, 1], [], []>} : vector<16x128xbf16>, vector<128x512xbf16>, vector<16x512xf32> -> vector<16x512xf32>
    %232 = arith.addf %229, %231 : vector<16x512xf32>
    %233 = arith.truncf %232 : vector<16x512xf32> to vector<16x512xbf16>
    %234 = vector.extract_strided_slice %233 {offsets = [0, 0], sizes = [16, 128], strides = [1, 1]} : vector<16x512xbf16> to vector<16x128xbf16>
    %235 = arith.negf %234 : vector<16x128xbf16>
    %236 = math.exp %235 : vector<16x128xbf16>
    %cst_58 = arith.constant 1.000000e+00 : bf16
    %237 = vector.broadcast %cst_58 : bf16 to vector<16x128xbf16>
    %238 = arith.addf %237, %236 : vector<16x128xbf16>
    %239 = arith.divf %237, %238 : vector<16x128xbf16>
    %240 = vector.extract_strided_slice %233 {offsets = [0, 128], sizes = [16, 128], strides = [1, 1]} : vector<16x512xbf16> to vector<16x128xbf16>
    %241 = arith.negf %240 : vector<16x128xbf16>
    %242 = math.exp %241 : vector<16x128xbf16>
    %cst_59 = arith.constant 1.000000e+00 : bf16
    %243 = vector.broadcast %cst_59 : bf16 to vector<16x128xbf16>
    %244 = arith.addf %243, %242 : vector<16x128xbf16>
    %245 = arith.divf %243, %244 : vector<16x128xbf16>
    %246 = vector.extract_strided_slice %233 {offsets = [0, 256], sizes = [16, 128], strides = [1, 1]} : vector<16x512xbf16> to vector<16x128xbf16>
    %247 = math.tanh %246 : vector<16x128xbf16>
    %248 = vector.extract_strided_slice %233 {offsets = [0, 384], sizes = [16, 128], strides = [1, 1]} : vector<16x512xbf16> to vector<16x128xbf16>
    %249 = arith.negf %248 : vector<16x128xbf16>
    %250 = math.exp %249 : vector<16x128xbf16>
    %cst_60 = arith.constant 1.000000e+00 : bf16
    %251 = vector.broadcast %cst_60 : bf16 to vector<16x128xbf16>
    %252 = arith.addf %251, %250 : vector<16x128xbf16>
    %253 = arith.divf %251, %252 : vector<16x128xbf16>
    %254 = arith.extf %245 : vector<16x128xbf16> to vector<16x128xf32>
    %255 = arith.mulf %254, %216 : vector<16x128xf32>
    %256 = arith.mulf %239, %247 : vector<16x128xbf16>
    %257 = arith.extf %256 : vector<16x128xbf16> to vector<16x128xf32>
    %258 = arith.addf %255, %257 : vector<16x128xf32>
    %259 = math.tanh %258 : vector<16x128xf32>
    %260 = arith.extf %253 : vector<16x128xbf16> to vector<16x128xf32>
    %261 = arith.mulf %260, %259 : vector<16x128xf32>
    %262 = arith.truncf %261 : vector<16x128xf32> to vector<16x128xbf16>
    %263 = arith.index_cast %c5_i32 : i32 to index
    %c0_61 = arith.constant 0 : index
    %c0_62 = arith.constant 0 : index
    %264 = vector.load %arg8[%263, %c0_61, %c0_62] : memref<8x16x128xbf16, #tpu.memory_space<vmem>>, vector<1x16x128xbf16>
    %265 = vector.shape_cast %264 : vector<1x16x128xbf16> to vector<16x128xbf16>
    %266 = vector.shape_cast %262 : vector<16x128xbf16> to vector<1x16x128xbf16>
    tpu.vector_store %arg8[%263, %c0_61, %c0_62], %266 {strides = array<i32>} : memref<8x16x128xbf16, #tpu.memory_space<vmem>>, vector<1x16x128xbf16>,
    %c6_i32 = arith.constant 6 : i32
    %c16_i32_63 = arith.constant 16 : i32
    %267 = arith.muli %c6_i32, %c16_i32_63 : i32
    %268 = tpu.assume_multiple %267, 16 : i32
    %269 = arith.index_cast %268 : i32 to index
    %c0_64 = arith.constant 0 : index
    %270 = vector.load %arg13[%269, %c0_64] : memref<128x512xbf16, #tpu.memory_space<vmem>>, vector<16x512xbf16>
    %271 = arith.extf %270 : vector<16x512xbf16> to vector<16x512xf32>
    %272 = arith.truncf %261 : vector<16x128xf32> to vector<16x128xbf16>
    %cst_65 = arith.constant dense<0.000000e+00> : vector<16x512xf32>
    %273 = tpu.matmul %272, %12, %cst_65 {dimension_numbers = #tpu.dot_dimension_numbers<[1], [0], [0], [1], [0, 0, 1, 1], [], []>} : vector<16x128xbf16>, vector<128x512xbf16>, vector<16x512xf32> -> vector<16x512xf32>
    %274 = arith.addf %271, %273 : vector<16x512xf32>
    %275 = arith.truncf %274 : vector<16x512xf32> to vector<16x512xbf16>
    %276 = vector.extract_strided_slice %275 {offsets = [0, 0], sizes = [16, 128], strides = [1, 1]} : vector<16x512xbf16> to vector<16x128xbf16>
    %277 = arith.negf %276 : vector<16x128xbf16>
    %278 = math.exp %277 : vector<16x128xbf16>
    %cst_66 = arith.constant 1.000000e+00 : bf16
    %279 = vector.broadcast %cst_66 : bf16 to vector<16x128xbf16>
    %280 = arith.addf %279, %278 : vector<16x128xbf16>
    %281 = arith.divf %279, %280 : vector<16x128xbf16>
    %282 = vector.extract_strided_slice %275 {offsets = [0, 128], sizes = [16, 128], strides = [1, 1]} : vector<16x512xbf16> to vector<16x128xbf16>
    %283 = arith.negf %282 : vector<16x128xbf16>
    %284 = math.exp %283 : vector<16x128xbf16>
    %cst_67 = arith.constant 1.000000e+00 : bf16
    %285 = vector.broadcast %cst_67 : bf16 to vector<16x128xbf16>
    %286 = arith.addf %285, %284 : vector<16x128xbf16>
    %287 = arith.divf %285, %286 : vector<16x128xbf16>
    %288 = vector.extract_strided_slice %275 {offsets = [0, 256], sizes = [16, 128], strides = [1, 1]} : vector<16x512xbf16> to vector<16x128xbf16>
    %289 = math.tanh %288 : vector<16x128xbf16>
    %290 = vector.extract_strided_slice %275 {offsets = [0, 384], sizes = [16, 128], strides = [1, 1]} : vector<16x512xbf16> to vector<16x128xbf16>
    %291 = arith.negf %290 : vector<16x128xbf16>
    %292 = math.exp %291 : vector<16x128xbf16>
    %cst_68 = arith.constant 1.000000e+00 : bf16
    %293 = vector.broadcast %cst_68 : bf16 to vector<16x128xbf16>
    %294 = arith.addf %293, %292 : vector<16x128xbf16>
    %295 = arith.divf %293, %294 : vector<16x128xbf16>
    %296 = arith.extf %287 : vector<16x128xbf16> to vector<16x128xf32>
    %297 = arith.mulf %296, %258 : vector<16x128xf32>
    %298 = arith.mulf %281, %289 : vector<16x128xbf16>
    %299 = arith.extf %298 : vector<16x128xbf16> to vector<16x128xf32>
    %300 = arith.addf %297, %299 : vector<16x128xf32>
    %301 = math.tanh %300 : vector<16x128xf32>
    %302 = arith.extf %295 : vector<16x128xbf16> to vector<16x128xf32>
    %303 = arith.mulf %302, %301 : vector<16x128xf32>
    %304 = arith.truncf %303 : vector<16x128xf32> to vector<16x128xbf16>
    %305 = arith.index_cast %c6_i32 : i32 to index
    %c0_69 = arith.constant 0 : index
    %c0_70 = arith.constant 0 : index
    %306 = vector.load %arg8[%305, %c0_69, %c0_70] : memref<8x16x128xbf16, #tpu.memory_space<vmem>>, vector<1x16x128xbf16>
    %307 = vector.shape_cast %306 : vector<1x16x128xbf16> to vector<16x128xbf16>
    %308 = vector.shape_cast %304 : vector<16x128xbf16> to vector<1x16x128xbf16>
    tpu.vector_store %arg8[%305, %c0_69, %c0_70], %308 {strides = array<i32>} : memref<8x16x128xbf16, #tpu.memory_space<vmem>>, vector<1x16x128xbf16>,
    %c7_i32 = arith.constant 7 : i32
    %c16_i32_71 = arith.constant 16 : i32
    %309 = arith.muli %c7_i32, %c16_i32_71 : i32
    %310 = tpu.assume_multiple %309, 16 : i32
    %311 = arith.index_cast %310 : i32 to index
    %c0_72 = arith.constant 0 : index
    %312 = vector.load %arg13[%311, %c0_72] : memref<128x512xbf16, #tpu.memory_space<vmem>>, vector<16x512xbf16>
    %313 = arith.extf %312 : vector<16x512xbf16> to vector<16x512xf32>
    %314 = arith.truncf %303 : vector<16x128xf32> to vector<16x128xbf16>
    %cst_73 = arith.constant dense<0.000000e+00> : vector<16x512xf32>
    %315 = tpu.matmul %314, %12, %cst_73 {dimension_numbers = #tpu.dot_dimension_numbers<[1], [0], [0], [1], [0, 0, 1, 1], [], []>} : vector<16x128xbf16>, vector<128x512xbf16>, vector<16x512xf32> -> vector<16x512xf32>
    %316 = arith.addf %313, %315 : vector<16x512xf32>
    %317 = arith.truncf %316 : vector<16x512xf32> to vector<16x512xbf16>
    %318 = vector.extract_strided_slice %317 {offsets = [0, 0], sizes = [16, 128], strides = [1, 1]} : vector<16x512xbf16> to vector<16x128xbf16>
    %319 = arith.negf %318 : vector<16x128xbf16>
    %320 = math.exp %319 : vector<16x128xbf16>
    %cst_74 = arith.constant 1.000000e+00 : bf16
    %321 = vector.broadcast %cst_74 : bf16 to vector<16x128xbf16>
    %322 = arith.addf %321, %320 : vector<16x128xbf16>
    %323 = arith.divf %321, %322 : vector<16x128xbf16>
    %324 = vector.extract_strided_slice %317 {offsets = [0, 128], sizes = [16, 128], strides = [1, 1]} : vector<16x512xbf16> to vector<16x128xbf16>
    %325 = arith.negf %324 : vector<16x128xbf16>
    %326 = math.exp %325 : vector<16x128xbf16>
    %cst_75 = arith.constant 1.000000e+00 : bf16
    %327 = vector.broadcast %cst_75 : bf16 to vector<16x128xbf16>
    %328 = arith.addf %327, %326 : vector<16x128xbf16>
    %329 = arith.divf %327, %328 : vector<16x128xbf16>
    %330 = vector.extract_strided_slice %317 {offsets = [0, 256], sizes = [16, 128], strides = [1, 1]} : vector<16x512xbf16> to vector<16x128xbf16>
    %331 = math.tanh %330 : vector<16x128xbf16>
    %332 = vector.extract_strided_slice %317 {offsets = [0, 384], sizes = [16, 128], strides = [1, 1]} : vector<16x512xbf16> to vector<16x128xbf16>
    %333 = arith.negf %332 : vector<16x128xbf16>
    %334 = math.exp %333 : vector<16x128xbf16>
    %cst_76 = arith.constant 1.000000e+00 : bf16
    %335 = vector.broadcast %cst_76 : bf16 to vector<16x128xbf16>
    %336 = arith.addf %335, %334 : vector<16x128xbf16>
    %337 = arith.divf %335, %336 : vector<16x128xbf16>
    %338 = arith.extf %329 : vector<16x128xbf16> to vector<16x128xf32>
    %339 = arith.mulf %338, %300 : vector<16x128xf32>
    %340 = arith.mulf %323, %331 : vector<16x128xbf16>
    %341 = arith.extf %340 : vector<16x128xbf16> to vector<16x128xf32>
    %342 = arith.addf %339, %341 : vector<16x128xf32>
    %343 = math.tanh %342 : vector<16x128xf32>
    %344 = arith.extf %337 : vector<16x128xbf16> to vector<16x128xf32>
    %345 = arith.mulf %344, %343 : vector<16x128xf32>
    %346 = arith.truncf %345 : vector<16x128xf32> to vector<16x128xbf16>
    %347 = arith.index_cast %c7_i32 : i32 to index
    %c0_77 = arith.constant 0 : index
    %c0_78 = arith.constant 0 : index
    %348 = vector.load %arg8[%347, %c0_77, %c0_78] : memref<8x16x128xbf16, #tpu.memory_space<vmem>>, vector<1x16x128xbf16>
    %349 = vector.shape_cast %348 : vector<1x16x128xbf16> to vector<16x128xbf16>
    %350 = vector.shape_cast %346 : vector<16x128xbf16> to vector<1x16x128xbf16>
    tpu.vector_store %arg8[%347, %c0_77, %c0_78], %350 {strides = array<i32>} : memref<8x16x128xbf16, #tpu.memory_space<vmem>>, vector<1x16x128xbf16>,
    %c8_i32 = arith.constant 8 : i32
    %c0_79 = arith.constant 0 : index
    %c0_80 = arith.constant 0 : index
    %351 = vector.load %arg11[%c0_79, %c0_80] : memref<16x128xf32, #tpu.memory_space<vmem>>, vector<16x128xf32>
    tpu.vector_store %arg11[%c0_79, %c0_80], %345 {strides = array<i32>} : memref<16x128xf32, #tpu.memory_space<vmem>>, vector<16x128xf32>,
    %c0_81 = arith.constant 0 : index
    %c0_82 = arith.constant 0 : index
    %352 = vector.load %arg12[%c0_81, %c0_82] : memref<16x128xf32, #tpu.memory_space<vmem>>, vector<16x128xf32>
    tpu.vector_store %arg12[%c0_81, %c0_82], %342 {strides = array<i32>} : memref<16x128xf32, #tpu.memory_space<vmem>>, vector<16x128xf32>,
    %c0_i32_83 = arith.constant 0 : i32
    %353 = arith.cmpi eq, %arg1, %c0_i32_83 : i32
    %354 = arith.extui %353 : i1 to i32
    %c0_i32_84 = arith.constant 0 : i32
    %355 = arith.cmpi ne, %354, %c0_i32_84 : i32
    scf.if %355 {
      %c0_85 = arith.constant 0 : index
      %c0_86 = arith.constant 0 : index
      %356 = vector.load %arg11[%c0_85, %c0_86] : memref<16x128xf32, #tpu.memory_space<vmem>>, vector<16x128xf32>
      %c0_87 = arith.constant 0 : index
      %c0_88 = arith.constant 0 : index
      %357 = vector.load %arg9[%c0_87, %c0_88] : memref<16x128xf32, #tpu.memory_space<vmem>>, vector<16x128xf32>
      tpu.vector_store %arg9[%c0_87, %c0_88], %356 {strides = array<i32>} : memref<16x128xf32, #tpu.memory_space<vmem>>, vector<16x128xf32>,
      %c0_89 = arith.constant 0 : index
      %c0_90 = arith.constant 0 : index
      %358 = vector.load %arg12[%c0_89, %c0_90] : memref<16x128xf32, #tpu.memory_space<vmem>>, vector<16x128xf32>
      %c0_91 = arith.constant 0 : index
      %c0_92 = arith.constant 0 : index
      %359 = vector.load %arg10[%c0_91, %c0_92] : memref<16x128xf32, #tpu.memory_space<vmem>>, vector<16x128xf32>
      tpu.vector_store %arg10[%c0_91, %c0_92], %358 {strides = array<i32>} : memref<16x128xf32, #tpu.memory_space<vmem>>, vector<16x128xf32>,
    } else {
    }
    return
  }
  func.func @transform_0(%arg0: i32, %arg1: i32) -> (i32, i32, i32) {
    %c0_i32 = arith.constant 0 : i32
    %c0_i32_0 = arith.constant 0 : i32
    return %arg1, %arg0, %c0_i32 : i32, i32, i32
  }
  func.func @transform_1(%arg0: i32, %arg1: i32) -> (i32, i32) {
    %c0_i32 = arith.constant 0 : i32
    %c0_i32_0 = arith.constant 0 : i32
    %c0_i32_1 = arith.constant 0 : i32
    return %c0_i32, %c0_i32_0 : i32, i32
  }
  func.func @transform_2(%arg0: i32, %arg1: i32) -> (i32, i32) {
    %c0_i32 = arith.constant 0 : i32
    %c0_i32_0 = arith.constant 0 : i32
    %c0_i32_1 = arith.constant 0 : i32
    return %c0_i32, %c0_i32_0 : i32, i32
  }
  func.func @transform_3(%arg0: i32, %arg1: i32) -> (i32, i32) {
    %c0_i32 = arith.constant 0 : i32
    %c0_i32_0 = arith.constant 0 : i32
    %c0_i32_1 = arith.constant 0 : i32
    return %c0_i32, %c0_i32_0 : i32, i32
  }
  func.func @transform_4(%arg0: i32, %arg1: i32) -> (i32, i32) {
    %c0_i32 = arith.constant 0 : i32
    %c0_i32_0 = arith.constant 0 : i32
    return %arg0, %c0_i32 : i32, i32
  }
  func.func @transform_5(%arg0: i32, %arg1: i32) -> (i32, i32) {
    %c0_i32 = arith.constant 0 : i32
    %c0_i32_0 = arith.constant 0 : i32
    return %arg0, %c0_i32 : i32, i32
  }
  func.func @transform_6(%arg0: i32, %arg1: i32) -> (i32, i32, i32) {
    %c0_i32 = arith.constant 0 : i32
    %c0_i32_0 = arith.constant 0 : i32
    return %arg1, %arg0, %c0_i32 : i32, i32, i32
  }
  func.func @transform_7(%arg0: i32, %arg1: i32) -> (i32, i32) {
    %c0_i32 = arith.constant 0 : i32
    %c0_i32_0 = arith.constant 0 : i32
    return %arg0, %c0_i32 : i32, i32
  }
  func.func @transform_8(%arg0: i32, %arg1: i32) -> (i32, i32) {
    %c0_i32 = arith.constant 0 : i32
    %c0_i32_0 = arith.constant 0 : i32
    return %arg0, %c0_i32 : i32, i32
  }
}

module attributes {stable_mosaic.version = 11 : i64} {
  func.func @dense_logsoftmax_kernel(%arg0: i32, %arg1: memref<128x128xbf16, #tpu.memory_space<vmem>>, %arg2: memref<128x128xbf16, #tpu.memory_space<vmem>>, %arg3: memref<1x128xf32, #tpu.memory_space<vmem>>, %arg4: memref<128x128xf32, #tpu.memory_space<vmem>>) attributes {dimension_semantics = [#tpu.dimension_semantics<parallel>], iteration_bounds = array<i64: 1>, scalar_prefetch = 0 : i64, scratch_operands = 0 : i64, tpu.core_type = #tpu.core_type<tc>, window_params = [{transform_indices = @transform_0, window_bounds = array<i64: 128, 128>}, {pipeline_mode = #tpu.pipeline_mode<synchronous>, transform_indices = @transform_1, window_bounds = array<i64: 128, 128>}, {pipeline_mode = #tpu.pipeline_mode<synchronous>, transform_indices = @transform_2, window_bounds = array<i64: 1, 128>}, {transform_indices = @transform_3, window_bounds = array<i64: 128, 128>}]} {
    %c0 = arith.constant 0 : index
    %c0_0 = arith.constant 0 : index
    %0 = vector.load %arg1[%c0, %c0_0] : memref<128x128xbf16, #tpu.memory_space<vmem>>, vector<128x128xbf16>
    %c0_1 = arith.constant 0 : index
    %c0_2 = arith.constant 0 : index
    %1 = vector.load %arg2[%c0_1, %c0_2] : memref<128x128xbf16, #tpu.memory_space<vmem>>, vector<128x128xbf16>
    %cst = arith.constant dense<0.000000e+00> : vector<128x128xf32>
    %2 = tpu.matmul %0, %1, %cst {dimension_numbers = #tpu.dot_dimension_numbers<[1], [0], [0], [1], [0, 0, 1, 1], [], []>} : vector<128x128xbf16>, vector<128x128xbf16>, vector<128x128xf32> -> vector<128x128xf32>
    %c0_3 = arith.constant 0 : index
    %c0_4 = arith.constant 0 : index
    %3 = vector.load %arg3[%c0_3, %c0_4] : memref<1x128xf32, #tpu.memory_space<vmem>>, vector<1x128xf32>
    %4 = vector.broadcast %3 : vector<1x128xf32> to vector<128x128xf32>
    %5 = arith.addf %2, %4 : vector<128x128xf32>
    %cst_5 = arith.constant dense<0xFF800000> : vector<128xf32>
    %6 = vector.multi_reduction <maximumf>, %5, %cst_5 [1] : vector<128x128xf32> to vector<128xf32>
    %7 = vector.shape_cast %6 : vector<128xf32> to vector<128x1xf32>
    %8 = vector.broadcast %7 : vector<128x1xf32> to vector<128x128xf32>
    %9 = arith.subf %5, %8 : vector<128x128xf32>
    %10 = math.exp %9 : vector<128x128xf32>
    %cst_6 = arith.constant dense<0.000000e+00> : vector<128xf32>
    %11 = vector.multi_reduction <add>, %10, %cst_6 [1] : vector<128x128xf32> to vector<128xf32>
    %12 = vector.shape_cast %11 : vector<128xf32> to vector<128x1xf32>
    %13 = math.log %12 : vector<128x1xf32>
    %14 = vector.broadcast %13 : vector<128x1xf32> to vector<128x128xf32>
    %15 = arith.subf %9, %14 : vector<128x128xf32>
    %c0_7 = arith.constant 0 : index
    %c0_8 = arith.constant 0 : index
    %16 = vector.load %arg4[%c0_7, %c0_8] : memref<128x128xf32, #tpu.memory_space<vmem>>, vector<128x128xf32>
    tpu.vector_store %arg4[%c0_7, %c0_8], %15 {strides = array<i32>} : memref<128x128xf32, #tpu.memory_space<vmem>>, vector<128x128xf32>,
    return
  }
  func.func @transform_0(%arg0: i32) -> (i32, i32) {
    %c0_i32 = arith.constant 0 : i32
    %c0_i32_0 = arith.constant 0 : i32
    return %arg0, %c0_i32 : i32, i32
  }
  func.func @transform_1(%arg0: i32) -> (i32, i32) {
    %c0_i32 = arith.constant 0 : i32
    %c0_i32_0 = arith.constant 0 : i32
    %c0_i32_1 = arith.constant 0 : i32
    return %c0_i32, %c0_i32_0 : i32, i32
  }
  func.func @transform_2(%arg0: i32) -> (i32, i32) {
    %c0_i32 = arith.constant 0 : i32
    %c0_i32_0 = arith.constant 0 : i32
    %c0_i32_1 = arith.constant 0 : i32
    return %c0_i32, %c0_i32_0 : i32, i32
  }
  func.func @transform_3(%arg0: i32) -> (i32, i32) {
    %c0_i32 = arith.constant 0 : i32
    %c0_i32_0 = arith.constant 0 : i32
    return %arg0, %c0_i32 : i32, i32
  }
}

module attributes {stable_mosaic.version = 11 : i64} {
  func.func @lstm_layer_kernel(%arg0: i32, %arg1: i32, %arg2: memref<8x16x128xbf16, #tpu.memory_space<vmem>>, %arg3: memref<128x512xbf16, #tpu.memory_space<vmem>>, %arg4: memref<128x512xbf16, #tpu.memory_space<vmem>>, %arg5: memref<1x512xf32, #tpu.memory_space<vmem>>, %arg6: memref<16x128xf32, #tpu.memory_space<vmem>>, %arg7: memref<16x128xf32, #tpu.memory_space<vmem>>, %arg8: memref<8x16x128xbf16, #tpu.memory_space<vmem>>, %arg9: memref<16x128xf32, #tpu.memory_space<vmem>>, %arg10: memref<16x128xf32, #tpu.memory_space<vmem>>, %arg11: memref<16x128xf32, #tpu.memory_space<vmem>>, %arg12: memref<16x128xf32, #tpu.memory_space<vmem>>, %arg13: memref<128x512xbf16, #tpu.memory_space<vmem>>) attributes {dimension_semantics = [#tpu.dimension_semantics<parallel>, #tpu.dimension_semantics<arbitrary>], iteration_bounds = array<i64: 1, 1>, scalar_prefetch = 0 : i64, scratch_operands = 3 : i64, tpu.core_type = #tpu.core_type<tc>, window_params = [{transform_indices = @transform_0, window_bounds = array<i64: 8, 16, 128>}, {pipeline_mode = #tpu.pipeline_mode<synchronous>, transform_indices = @transform_1, window_bounds = array<i64: 128, 512>}, {pipeline_mode = #tpu.pipeline_mode<synchronous>, transform_indices = @transform_2, window_bounds = array<i64: 128, 512>}, {pipeline_mode = #tpu.pipeline_mode<synchronous>, transform_indices = @transform_3, window_bounds = array<i64: 1, 512>}, {transform_indices = @transform_4, window_bounds = array<i64: 16, 128>}, {transform_indices = @transform_5, window_bounds = array<i64: 16, 128>}, {transform_indices = @transform_6, window_bounds = array<i64: 8, 16, 128>}, {transform_indices = @transform_7, window_bounds = array<i64: 16, 128>}, {transform_indices = @transform_8, window_bounds = array<i64: 16, 128>}]} {
    %c0_i32 = arith.constant 0 : i32
    %0 = arith.cmpi eq, %arg1, %c0_i32 : i32
    %1 = arith.extui %0 : i1 to i32
    %c0_i32_0 = arith.constant 0 : i32
    %2 = arith.cmpi ne, %1, %c0_i32_0 : i32
    scf.if %2 {
      %c0_85 = arith.constant 0 : index
      %c0_86 = arith.constant 0 : index
      %356 = vector.load %arg6[%c0_85, %c0_86] : memref<16x128xf32, #tpu.memory_space<vmem>>, vector<16x128xf32>
      %c0_87 = arith.constant 0 : index
      %c0_88 = arith.constant 0 : index
      %357 = vector.load %arg11[%c0_87, %c0_88] : memref<16x128xf32, #tpu.memory_space<vmem>>, vector<16x128xf32>
      tpu.vector_store %arg11[%c0_87, %c0_88], %356 {strides = array<i32>} : memref<16x128xf32, #tpu.memory_space<vmem>>, vector<16x128xf32>,
      %c0_89 = arith.constant 0 : index
      %c0_90 = arith.constant 0 : index
      %358 = vector.load %arg7[%c0_89, %c0_90] : memref<16x128xf32, #tpu.memory_space<vmem>>, vector<16x128xf32>
      %c0_91 = arith.constant 0 : index
      %c0_92 = arith.constant 0 : index
      %359 = vector.load %arg12[%c0_91, %c0_92] : memref<16x128xf32, #tpu.memory_space<vmem>>, vector<16x128xf32>
      tpu.vector_store %arg12[%c0_91, %c0_92], %358 {strides = array<i32>} : memref<16x128xf32, #tpu.memory_space<vmem>>, vector<16x128xf32>,
    } else {
    }
    %c0 = arith.constant 0 : index
    %c0_1 = arith.constant 0 : index
    %c0_2 = arith.constant 0 : index
    %3 = vector.load %arg2[%c0, %c0_1, %c0_2] : memref<8x16x128xbf16, #tpu.memory_space<vmem>>, vector<8x16x128xbf16>
    %4 = vector.shape_cast %3 : vector<8x16x128xbf16> to vector<128x128xbf16>
    %c0_3 = arith.constant 0 : index
    %c0_4 = arith.constant 0 : index
    %5 = vector.load %arg3[%c0_3, %c0_4] : memref<128x512xbf16, #tpu.memory_space<vmem>>, vector<128x512xbf16>
    %cst = arith.constant dense<0.000000e+00> : vector<128x512xf32>
    %6 = tpu.matmul %4, %5, %cst {dimension_numbers = #tpu.dot_dimension_numbers<[1], [0], [0], [1], [0, 0, 1, 1], [], []>} : vector<128x128xbf16>, vector<128x512xbf16>, vector<128x512xf32> -> vector<128x512xf32>
    %c0_5 = arith.constant 0 : index
    %c0_6 = arith.constant 0 : index
    %7 = vector.load %arg5[%c0_5, %c0_6] : memref<1x512xf32, #tpu.memory_space<vmem>>, vector<1x512xf32>
    %8 = vector.broadcast %7 : vector<1x512xf32> to vector<128x512xf32>
    %9 = arith.addf %6, %8 : vector<128x512xf32>
    %10 = arith.truncf %9 : vector<128x512xf32> to vector<128x512xbf16>
    %c0_7 = arith.constant 0 : index
    %c0_8 = arith.constant 0 : index
    %11 = vector.load %arg13[%c0_7, %c0_8] : memref<128x512xbf16, #tpu.memory_space<vmem>>, vector<128x512xbf16>
    tpu.vector_store %arg13[%c0_7, %c0_8], %10 {strides = array<i32>} : memref<128x512xbf16, #tpu.memory_space<vmem>>, vector<128x512xbf16>,
    %c0_9 = arith.constant 0 : index
    %c0_10 = arith.constant 0 : index
    %12 = vector.load %arg4[%c0_9, %c0_10] : memref<128x512xbf16, #tpu.memory_space<vmem>>, vector<128x512xbf16>
    %c0_11 = arith.constant 0 : index
    %c0_12 = arith.constant 0 : index
    %13 = vector.load %arg11[%c0_11, %c0_12] : memref<16x128xf32, #tpu.memory_space<vmem>>, vector<16x128xf32>
    %c0_13 = arith.constant 0 : index
    %c0_14 = arith.constant 0 : index
    %14 = vector.load %arg12[%c0_13, %c0_14] : memref<16x128xf32, #tpu.memory_space<vmem>>, vector<16x128xf32>
    %c0_i32_15 = arith.constant 0 : i32
    %c16_i32 = arith.constant 16 : i32
    %15 = arith.muli %c0_i32_15, %c16_i32 : i32
    %16 = tpu.assume_multiple %15, 16 : i32
    %17 = arith.index_cast %16 : i32 to index
    %c0_16 = arith.constant 0 : index
    %18 = vector.load %arg13[%17, %c0_16] : memref<128x512xbf16, #tpu.memory_space<vmem>>, vector<16x512xbf16>
    %19 = arith.extf %18 : vector<16x512xbf16> to vector<16x512xf32>
    %20 = arith.truncf %13 : vector<16x128xf32> to vector<16x128xbf16>
    %cst_17 = arith.constant dense<0.000000e+00> : vector<16x512xf32>
    %21 = tpu.matmul %20, %12, %cst_17 {dimension_numbers = #tpu.dot_dimension_numbers<[1], [0], [0], [1], [0, 0, 1, 1], [], []>} : vector<16x128xbf16>, vector<128x512xbf16>, vector<16x512xf32> -> vector<16x512xf32>
    %22 = arith.addf %19, %21 : vector<16x512xf32>
    %23 = arith.truncf %22 : vector<16x512xf32> to vector<16x512xbf16>
    %24 = vector.extract_strided_slice %23 {offsets = [0, 0], sizes = [16, 128], strides = [1, 1]} : vector<16x512xbf16> to vector<16x128xbf16>
    %25 = arith.negf %24 : vector<16x128xbf16>
    %26 = math.exp %25 : vector<16x128xbf16>
    %cst_18 = arith.constant 1.000000e+00 : bf16
    %27 = vector.broadcast %cst_18 : bf16 to vector<16x128xbf16>
    %28 = arith.addf %27, %26 : vector<16x128xbf16>
    %29 = arith.divf %27, %28 : vector<16x128xbf16>
    %30 = vector.extract_strided_slice %23 {offsets = [0, 128], sizes = [16, 128], strides = [1, 1]} : vector<16x512xbf16> to vector<16x128xbf16>
    %31 = arith.negf %30 : vector<16x128xbf16>
    %32 = math.exp %31 : vector<16x128xbf16>
    %cst_19 = arith.constant 1.000000e+00 : bf16
    %33 = vector.broadcast %cst_19 : bf16 to vector<16x128xbf16>
    %34 = arith.addf %33, %32 : vector<16x128xbf16>
    %35 = arith.divf %33, %34 : vector<16x128xbf16>
    %36 = vector.extract_strided_slice %23 {offsets = [0, 256], sizes = [16, 128], strides = [1, 1]} : vector<16x512xbf16> to vector<16x128xbf16>
    %37 = math.tanh %36 : vector<16x128xbf16>
    %38 = vector.extract_strided_slice %23 {offsets = [0, 384], sizes = [16, 128], strides = [1, 1]} : vector<16x512xbf16> to vector<16x128xbf16>
    %39 = arith.negf %38 : vector<16x128xbf16>
    %40 = math.exp %39 : vector<16x128xbf16>
    %cst_20 = arith.constant 1.000000e+00 : bf16
    %41 = vector.broadcast %cst_20 : bf16 to vector<16x128xbf16>
    %42 = arith.addf %41, %40 : vector<16x128xbf16>
    %43 = arith.divf %41, %42 : vector<16x128xbf16>
    %44 = arith.extf %35 : vector<16x128xbf16> to vector<16x128xf32>
    %45 = arith.mulf %44, %14 : vector<16x128xf32>
    %46 = arith.mulf %29, %37 : vector<16x128xbf16>
    %47 = arith.extf %46 : vector<16x128xbf16> to vector<16x128xf32>
    %48 = arith.addf %45, %47 : vector<16x128xf32>
    %49 = math.tanh %48 : vector<16x128xf32>
    %50 = arith.extf %43 : vector<16x128xbf16> to vector<16x128xf32>
    %51 = arith.mulf %50, %49 : vector<16x128xf32>
    %52 = arith.truncf %51 : vector<16x128xf32> to vector<16x128xbf16>
    %53 = arith.index_cast %c0_i32_15 : i32 to index
    %c0_21 = arith.constant 0 : index
    %c0_22 = arith.constant 0 : index
    %54 = vector.load %arg8[%53, %c0_21, %c0_22] : memref<8x16x128xbf16, #tpu.memory_space<vmem>>, vector<1x16x128xbf16>
    %55 = vector.shape_cast %54 : vector<1x16x128xbf16> to vector<16x128xbf16>
    %56 = vector.shape_cast %52 : vector<16x128xbf16> to vector<1x16x128xbf16>
    tpu.vector_store %arg8[%53, %c0_21, %c0_22], %56 {strides = array<i32>} : memref<8x16x128xbf16, #tpu.memory_space<vmem>>, vector<1x16x128xbf16>,
    %c1_i32 = arith.constant 1 : i32
    %c16_i32_23 = arith.constant 16 : i32
    %57 = arith.muli %c1_i32, %c16_i32_23 : i32
    %58 = tpu.assume_multiple %57, 16 : i32
    %59 = arith.index_cast %58 : i32 to index
    %c0_24 = arith.constant 0 : index
    %60 = vector.load %arg13[%59, %c0_24] : memref<128x512xbf16, #tpu.memory_space<vmem>>, vector<16x512xbf16>
    %61 = arith.extf %60 : vector<16x512xbf16> to vector<16x512xf32>
    %62 = arith.truncf %51 : vector<16x128xf32> to vector<16x128xbf16>
    %cst_25 = arith.constant dense<0.000000e+00> : vector<16x512xf32>
    %63 = tpu.matmul %62, %12, %cst_25 {dimension_numbers = #tpu.dot_dimension_numbers<[1], [0], [0], [1], [0, 0, 1, 1], [], []>} : vector<16x128xbf16>, vector<128x512xbf16>, vector<16x512xf32> -> vector<16x512xf32>
    %64 = arith.addf %61, %63 : vector<16x512xf32>
    %65 = arith.truncf %64 : vector<16x512xf32> to vector<16x512xbf16>
    %66 = vector.extract_strided_slice %65 {offsets = [0, 0], sizes = [16, 128], strides = [1, 1]} : vector<16x512xbf16> to vector<16x128xbf16>
    %67 = arith.negf %66 : vector<16x128xbf16>
    %68 = math.exp %67 : vector<16x128xbf16>
    %cst_26 = arith.constant 1.000000e+00 : bf16
    %69 = vector.broadcast %cst_26 : bf16 to vector<16x128xbf16>
    %70 = arith.addf %69, %68 : vector<16x128xbf16>
    %71 = arith.divf %69, %70 : vector<16x128xbf16>
    %72 = vector.extract_strided_slice %65 {offsets = [0, 128], sizes = [16, 128], strides = [1, 1]} : vector<16x512xbf16> to vector<16x128xbf16>
    %73 = arith.negf %72 : vector<16x128xbf16>
    %74 = math.exp %73 : vector<16x128xbf16>
    %cst_27 = arith.constant 1.000000e+00 : bf16
    %75 = vector.broadcast %cst_27 : bf16 to vector<16x128xbf16>
    %76 = arith.addf %75, %74 : vector<16x128xbf16>
    %77 = arith.divf %75, %76 : vector<16x128xbf16>
    %78 = vector.extract_strided_slice %65 {offsets = [0, 256], sizes = [16, 128], strides = [1, 1]} : vector<16x512xbf16> to vector<16x128xbf16>
    %79 = math.tanh %78 : vector<16x128xbf16>
    %80 = vector.extract_strided_slice %65 {offsets = [0, 384], sizes = [16, 128], strides = [1, 1]} : vector<16x512xbf16> to vector<16x128xbf16>
    %81 = arith.negf %80 : vector<16x128xbf16>
    %82 = math.exp %81 : vector<16x128xbf16>
    %cst_28 = arith.constant 1.000000e+00 : bf16
    %83 = vector.broadcast %cst_28 : bf16 to vector<16x128xbf16>
    %84 = arith.addf %83, %82 : vector<16x128xbf16>
    %85 = arith.divf %83, %84 : vector<16x128xbf16>
    %86 = arith.extf %77 : vector<16x128xbf16> to vector<16x128xf32>
    %87 = arith.mulf %86, %48 : vector<16x128xf32>
    %88 = arith.mulf %71, %79 : vector<16x128xbf16>
    %89 = arith.extf %88 : vector<16x128xbf16> to vector<16x128xf32>
    %90 = arith.addf %87, %89 : vector<16x128xf32>
    %91 = math.tanh %90 : vector<16x128xf32>
    %92 = arith.extf %85 : vector<16x128xbf16> to vector<16x128xf32>
    %93 = arith.mulf %92, %91 : vector<16x128xf32>
    %94 = arith.truncf %93 : vector<16x128xf32> to vector<16x128xbf16>
    %95 = arith.index_cast %c1_i32 : i32 to index
    %c0_29 = arith.constant 0 : index
    %c0_30 = arith.constant 0 : index
    %96 = vector.load %arg8[%95, %c0_29, %c0_30] : memref<8x16x128xbf16, #tpu.memory_space<vmem>>, vector<1x16x128xbf16>
    %97 = vector.shape_cast %96 : vector<1x16x128xbf16> to vector<16x128xbf16>
    %98 = vector.shape_cast %94 : vector<16x128xbf16> to vector<1x16x128xbf16>
    tpu.vector_store %arg8[%95, %c0_29, %c0_30], %98 {strides = array<i32>} : memref<8x16x128xbf16, #tpu.memory_space<vmem>>, vector<1x16x128xbf16>,
    %c2_i32 = arith.constant 2 : i32
    %c16_i32_31 = arith.constant 16 : i32
    %99 = arith.muli %c2_i32, %c16_i32_31 : i32
    %100 = tpu.assume_multiple %99, 16 : i32
    %101 = arith.index_cast %100 : i32 to index
    %c0_32 = arith.constant 0 : index
    %102 = vector.load %arg13[%101, %c0_32] : memref<128x512xbf16, #tpu.memory_space<vmem>>, vector<16x512xbf16>
    %103 = arith.extf %102 : vector<16x512xbf16> to vector<16x512xf32>
    %104 = arith.truncf %93 : vector<16x128xf32> to vector<16x128xbf16>
    %cst_33 = arith.constant dense<0.000000e+00> : vector<16x512xf32>
    %105 = tpu.matmul %104, %12, %cst_33 {dimension_numbers = #tpu.dot_dimension_numbers<[1], [0], [0], [1], [0, 0, 1, 1], [], []>} : vector<16x128xbf16>, vector<128x512xbf16>, vector<16x512xf32> -> vector<16x512xf32>
    %106 = arith.addf %103, %105 : vector<16x512xf32>
    %107 = arith.truncf %106 : vector<16x512xf32> to vector<16x512xbf16>
    %108 = vector.extract_strided_slice %107 {offsets = [0, 0], sizes = [16, 128], strides = [1, 1]} : vector<16x512xbf16> to vector<16x128xbf16>
    %109 = arith.negf %108 : vector<16x128xbf16>
    %110 = math.exp %109 : vector<16x128xbf16>
    %cst_34 = arith.constant 1.000000e+00 : bf16
    %111 = vector.broadcast %cst_34 : bf16 to vector<16x128xbf16>
    %112 = arith.addf %111, %110 : vector<16x128xbf16>
    %113 = arith.divf %111, %112 : vector<16x128xbf16>
    %114 = vector.extract_strided_slice %107 {offsets = [0, 128], sizes = [16, 128], strides = [1, 1]} : vector<16x512xbf16> to vector<16x128xbf16>
    %115 = arith.negf %114 : vector<16x128xbf16>
    %116 = math.exp %115 : vector<16x128xbf16>
    %cst_35 = arith.constant 1.000000e+00 : bf16
    %117 = vector.broadcast %cst_35 : bf16 to vector<16x128xbf16>
    %118 = arith.addf %117, %116 : vector<16x128xbf16>
    %119 = arith.divf %117, %118 : vector<16x128xbf16>
    %120 = vector.extract_strided_slice %107 {offsets = [0, 256], sizes = [16, 128], strides = [1, 1]} : vector<16x512xbf16> to vector<16x128xbf16>
    %121 = math.tanh %120 : vector<16x128xbf16>
    %122 = vector.extract_strided_slice %107 {offsets = [0, 384], sizes = [16, 128], strides = [1, 1]} : vector<16x512xbf16> to vector<16x128xbf16>
    %123 = arith.negf %122 : vector<16x128xbf16>
    %124 = math.exp %123 : vector<16x128xbf16>
    %cst_36 = arith.constant 1.000000e+00 : bf16
    %125 = vector.broadcast %cst_36 : bf16 to vector<16x128xbf16>
    %126 = arith.addf %125, %124 : vector<16x128xbf16>
    %127 = arith.divf %125, %126 : vector<16x128xbf16>
    %128 = arith.extf %119 : vector<16x128xbf16> to vector<16x128xf32>
    %129 = arith.mulf %128, %90 : vector<16x128xf32>
    %130 = arith.mulf %113, %121 : vector<16x128xbf16>
    %131 = arith.extf %130 : vector<16x128xbf16> to vector<16x128xf32>
    %132 = arith.addf %129, %131 : vector<16x128xf32>
    %133 = math.tanh %132 : vector<16x128xf32>
    %134 = arith.extf %127 : vector<16x128xbf16> to vector<16x128xf32>
    %135 = arith.mulf %134, %133 : vector<16x128xf32>
    %136 = arith.truncf %135 : vector<16x128xf32> to vector<16x128xbf16>
    %137 = arith.index_cast %c2_i32 : i32 to index
    %c0_37 = arith.constant 0 : index
    %c0_38 = arith.constant 0 : index
    %138 = vector.load %arg8[%137, %c0_37, %c0_38] : memref<8x16x128xbf16, #tpu.memory_space<vmem>>, vector<1x16x128xbf16>
    %139 = vector.shape_cast %138 : vector<1x16x128xbf16> to vector<16x128xbf16>
    %140 = vector.shape_cast %136 : vector<16x128xbf16> to vector<1x16x128xbf16>
    tpu.vector_store %arg8[%137, %c0_37, %c0_38], %140 {strides = array<i32>} : memref<8x16x128xbf16, #tpu.memory_space<vmem>>, vector<1x16x128xbf16>,
    %c3_i32 = arith.constant 3 : i32
    %c16_i32_39 = arith.constant 16 : i32
    %141 = arith.muli %c3_i32, %c16_i32_39 : i32
    %142 = tpu.assume_multiple %141, 16 : i32
    %143 = arith.index_cast %142 : i32 to index
    %c0_40 = arith.constant 0 : index
    %144 = vector.load %arg13[%143, %c0_40] : memref<128x512xbf16, #tpu.memory_space<vmem>>, vector<16x512xbf16>
    %145 = arith.extf %144 : vector<16x512xbf16> to vector<16x512xf32>
    %146 = arith.truncf %135 : vector<16x128xf32> to vector<16x128xbf16>
    %cst_41 = arith.constant dense<0.000000e+00> : vector<16x512xf32>
    %147 = tpu.matmul %146, %12, %cst_41 {dimension_numbers = #tpu.dot_dimension_numbers<[1], [0], [0], [1], [0, 0, 1, 1], [], []>} : vector<16x128xbf16>, vector<128x512xbf16>, vector<16x512xf32> -> vector<16x512xf32>
    %148 = arith.addf %145, %147 : vector<16x512xf32>
    %149 = arith.truncf %148 : vector<16x512xf32> to vector<16x512xbf16>
    %150 = vector.extract_strided_slice %149 {offsets = [0, 0], sizes = [16, 128], strides = [1, 1]} : vector<16x512xbf16> to vector<16x128xbf16>
    %151 = arith.negf %150 : vector<16x128xbf16>
    %152 = math.exp %151 : vector<16x128xbf16>
    %cst_42 = arith.constant 1.000000e+00 : bf16
    %153 = vector.broadcast %cst_42 : bf16 to vector<16x128xbf16>
    %154 = arith.addf %153, %152 : vector<16x128xbf16>
    %155 = arith.divf %153, %154 : vector<16x128xbf16>
    %156 = vector.extract_strided_slice %149 {offsets = [0, 128], sizes = [16, 128], strides = [1, 1]} : vector<16x512xbf16> to vector<16x128xbf16>
    %157 = arith.negf %156 : vector<16x128xbf16>
    %158 = math.exp %157 : vector<16x128xbf16>
    %cst_43 = arith.constant 1.000000e+00 : bf16
    %159 = vector.broadcast %cst_43 : bf16 to vector<16x128xbf16>
    %160 = arith.addf %159, %158 : vector<16x128xbf16>
    %161 = arith.divf %159, %160 : vector<16x128xbf16>
    %162 = vector.extract_strided_slice %149 {offsets = [0, 256], sizes = [16, 128], strides = [1, 1]} : vector<16x512xbf16> to vector<16x128xbf16>
    %163 = math.tanh %162 : vector<16x128xbf16>
    %164 = vector.extract_strided_slice %149 {offsets = [0, 384], sizes = [16, 128], strides = [1, 1]} : vector<16x512xbf16> to vector<16x128xbf16>
    %165 = arith.negf %164 : vector<16x128xbf16>
    %166 = math.exp %165 : vector<16x128xbf16>
    %cst_44 = arith.constant 1.000000e+00 : bf16
    %167 = vector.broadcast %cst_44 : bf16 to vector<16x128xbf16>
    %168 = arith.addf %167, %166 : vector<16x128xbf16>
    %169 = arith.divf %167, %168 : vector<16x128xbf16>
    %170 = arith.extf %161 : vector<16x128xbf16> to vector<16x128xf32>
    %171 = arith.mulf %170, %132 : vector<16x128xf32>
    %172 = arith.mulf %155, %163 : vector<16x128xbf16>
    %173 = arith.extf %172 : vector<16x128xbf16> to vector<16x128xf32>
    %174 = arith.addf %171, %173 : vector<16x128xf32>
    %175 = math.tanh %174 : vector<16x128xf32>
    %176 = arith.extf %169 : vector<16x128xbf16> to vector<16x128xf32>
    %177 = arith.mulf %176, %175 : vector<16x128xf32>
    %178 = arith.truncf %177 : vector<16x128xf32> to vector<16x128xbf16>
    %179 = arith.index_cast %c3_i32 : i32 to index
    %c0_45 = arith.constant 0 : index
    %c0_46 = arith.constant 0 : index
    %180 = vector.load %arg8[%179, %c0_45, %c0_46] : memref<8x16x128xbf16, #tpu.memory_space<vmem>>, vector<1x16x128xbf16>
    %181 = vector.shape_cast %180 : vector<1x16x128xbf16> to vector<16x128xbf16>
    %182 = vector.shape_cast %178 : vector<16x128xbf16> to vector<1x16x128xbf16>
    tpu.vector_store %arg8[%179, %c0_45, %c0_46], %182 {strides = array<i32>} : memref<8x16x128xbf16, #tpu.memory_space<vmem>>, vector<1x16x128xbf16>,
    %c4_i32 = arith.constant 4 : i32
    %c16_i32_47 = arith.constant 16 : i32
    %183 = arith.muli %c4_i32, %c16_i32_47 : i32
    %184 = tpu.assume_multiple %183, 16 : i32
    %185 = arith.index_cast %184 : i32 to index
    %c0_48 = arith.constant 0 : index
    %186 = vector.load %arg13[%185, %c0_48] : memref<128x512xbf16, #tpu.memory_space<vmem>>, vector<16x512xbf16>
    %187 = arith.extf %186 : vector<16x512xbf16> to vector<16x512xf32>
    %188 = arith.truncf %177 : vector<16x128xf32> to vector<16x128xbf16>
    %cst_49 = arith.constant dense<0.000000e+00> : vector<16x512xf32>
    %189 = tpu.matmul %188, %12, %cst_49 {dimension_numbers = #tpu.dot_dimension_numbers<[1], [0], [0], [1], [0, 0, 1, 1], [], []>} : vector<16x128xbf16>, vector<128x512xbf16>, vector<16x512xf32> -> vector<16x512xf32>
    %190 = arith.addf %187, %189 : vector<16x512xf32>
    %191 = arith.truncf %190 : vector<16x512xf32> to vector<16x512xbf16>
    %192 = vector.extract_strided_slice %191 {offsets = [0, 0], sizes = [16, 128], strides = [1, 1]} : vector<16x512xbf16> to vector<16x128xbf16>
    %193 = arith.negf %192 : vector<16x128xbf16>
    %194 = math.exp %193 : vector<16x128xbf16>
    %cst_50 = arith.constant 1.000000e+00 : bf16
    %195 = vector.broadcast %cst_50 : bf16 to vector<16x128xbf16>
    %196 = arith.addf %195, %194 : vector<16x128xbf16>
    %197 = arith.divf %195, %196 : vector<16x128xbf16>
    %198 = vector.extract_strided_slice %191 {offsets = [0, 128], sizes = [16, 128], strides = [1, 1]} : vector<16x512xbf16> to vector<16x128xbf16>
    %199 = arith.negf %198 : vector<16x128xbf16>
    %200 = math.exp %199 : vector<16x128xbf16>
    %cst_51 = arith.constant 1.000000e+00 : bf16
    %201 = vector.broadcast %cst_51 : bf16 to vector<16x128xbf16>
    %202 = arith.addf %201, %200 : vector<16x128xbf16>
    %203 = arith.divf %201, %202 : vector<16x128xbf16>
    %204 = vector.extract_strided_slice %191 {offsets = [0, 256], sizes = [16, 128], strides = [1, 1]} : vector<16x512xbf16> to vector<16x128xbf16>
    %205 = math.tanh %204 : vector<16x128xbf16>
    %206 = vector.extract_strided_slice %191 {offsets = [0, 384], sizes = [16, 128], strides = [1, 1]} : vector<16x512xbf16> to vector<16x128xbf16>
    %207 = arith.negf %206 : vector<16x128xbf16>
    %208 = math.exp %207 : vector<16x128xbf16>
    %cst_52 = arith.constant 1.000000e+00 : bf16
    %209 = vector.broadcast %cst_52 : bf16 to vector<16x128xbf16>
    %210 = arith.addf %209, %208 : vector<16x128xbf16>
    %211 = arith.divf %209, %210 : vector<16x128xbf16>
    %212 = arith.extf %203 : vector<16x128xbf16> to vector<16x128xf32>
    %213 = arith.mulf %212, %174 : vector<16x128xf32>
    %214 = arith.mulf %197, %205 : vector<16x128xbf16>
    %215 = arith.extf %214 : vector<16x128xbf16> to vector<16x128xf32>
    %216 = arith.addf %213, %215 : vector<16x128xf32>
    %217 = math.tanh %216 : vector<16x128xf32>
    %218 = arith.extf %211 : vector<16x128xbf16> to vector<16x128xf32>
    %219 = arith.mulf %218, %217 : vector<16x128xf32>
    %220 = arith.truncf %219 : vector<16x128xf32> to vector<16x128xbf16>
    %221 = arith.index_cast %c4_i32 : i32 to index
    %c0_53 = arith.constant 0 : index
    %c0_54 = arith.constant 0 : index
    %222 = vector.load %arg8[%221, %c0_53, %c0_54] : memref<8x16x128xbf16, #tpu.memory_space<vmem>>, vector<1x16x128xbf16>
    %223 = vector.shape_cast %222 : vector<1x16x128xbf16> to vector<16x128xbf16>
    %224 = vector.shape_cast %220 : vector<16x128xbf16> to vector<1x16x128xbf16>
    tpu.vector_store %arg8[%221, %c0_53, %c0_54], %224 {strides = array<i32>} : memref<8x16x128xbf16, #tpu.memory_space<vmem>>, vector<1x16x128xbf16>,
    %c5_i32 = arith.constant 5 : i32
    %c16_i32_55 = arith.constant 16 : i32
    %225 = arith.muli %c5_i32, %c16_i32_55 : i32
    %226 = tpu.assume_multiple %225, 16 : i32
    %227 = arith.index_cast %226 : i32 to index
    %c0_56 = arith.constant 0 : index
    %228 = vector.load %arg13[%227, %c0_56] : memref<128x512xbf16, #tpu.memory_space<vmem>>, vector<16x512xbf16>
    %229 = arith.extf %228 : vector<16x512xbf16> to vector<16x512xf32>
    %230 = arith.truncf %219 : vector<16x128xf32> to vector<16x128xbf16>
    %cst_57 = arith.constant dense<0.000000e+00> : vector<16x512xf32>
    %231 = tpu.matmul %230, %12, %cst_57 {dimension_numbers = #tpu.dot_dimension_numbers<[1], [0], [0], [1], [0, 0, 1, 1], [], []>} : vector<16x128xbf16>, vector<128x512xbf16>, vector<16x512xf32> -> vector<16x512xf32>
    %232 = arith.addf %229, %231 : vector<16x512xf32>
    %233 = arith.truncf %232 : vector<16x512xf32> to vector<16x512xbf16>
    %234 = vector.extract_strided_slice %233 {offsets = [0, 0], sizes = [16, 128], strides = [1, 1]} : vector<16x512xbf16> to vector<16x128xbf16>
    %235 = arith.negf %234 : vector<16x128xbf16>
    %236 = math.exp %235 : vector<16x128xbf16>
    %cst_58 = arith.constant 1.000000e+00 : bf16
    %237 = vector.broadcast %cst_58 : bf16 to vector<16x128xbf16>
    %238 = arith.addf %237, %236 : vector<16x128xbf16>
    %239 = arith.divf %237, %238 : vector<16x128xbf16>
    %240 = vector.extract_strided_slice %233 {offsets = [0, 128], sizes = [16, 128], strides = [1, 1]} : vector<16x512xbf16> to vector<16x128xbf16>
    %241 = arith.negf %240 : vector<16x128xbf16>
    %242 = math.exp %241 : vector<16x128xbf16>
    %cst_59 = arith.constant 1.000000e+00 : bf16
    %243 = vector.broadcast %cst_59 : bf16 to vector<16x128xbf16>
    %244 = arith.addf %243, %242 : vector<16x128xbf16>
    %245 = arith.divf %243, %244 : vector<16x128xbf16>
    %246 = vector.extract_strided_slice %233 {offsets = [0, 256], sizes = [16, 128], strides = [1, 1]} : vector<16x512xbf16> to vector<16x128xbf16>
    %247 = math.tanh %246 : vector<16x128xbf16>
    %248 = vector.extract_strided_slice %233 {offsets = [0, 384], sizes = [16, 128], strides = [1, 1]} : vector<16x512xbf16> to vector<16x128xbf16>
    %249 = arith.negf %248 : vector<16x128xbf16>
    %250 = math.exp %249 : vector<16x128xbf16>
    %cst_60 = arith.constant 1.000000e+00 : bf16
    %251 = vector.broadcast %cst_60 : bf16 to vector<16x128xbf16>
    %252 = arith.addf %251, %250 : vector<16x128xbf16>
    %253 = arith.divf %251, %252 : vector<16x128xbf16>
    %254 = arith.extf %245 : vector<16x128xbf16> to vector<16x128xf32>
    %255 = arith.mulf %254, %216 : vector<16x128xf32>
    %256 = arith.mulf %239, %247 : vector<16x128xbf16>
    %257 = arith.extf %256 : vector<16x128xbf16> to vector<16x128xf32>
    %258 = arith.addf %255, %257 : vector<16x128xf32>
    %259 = math.tanh %258 : vector<16x128xf32>
    %260 = arith.extf %253 : vector<16x128xbf16> to vector<16x128xf32>
    %261 = arith.mulf %260, %259 : vector<16x128xf32>
    %262 = arith.truncf %261 : vector<16x128xf32> to vector<16x128xbf16>
    %263 = arith.index_cast %c5_i32 : i32 to index
    %c0_61 = arith.constant 0 : index
    %c0_62 = arith.constant 0 : index
    %264 = vector.load %arg8[%263, %c0_61, %c0_62] : memref<8x16x128xbf16, #tpu.memory_space<vmem>>, vector<1x16x128xbf16>
    %265 = vector.shape_cast %264 : vector<1x16x128xbf16> to vector<16x128xbf16>
    %266 = vector.shape_cast %262 : vector<16x128xbf16> to vector<1x16x128xbf16>
    tpu.vector_store %arg8[%263, %c0_61, %c0_62], %266 {strides = array<i32>} : memref<8x16x128xbf16, #tpu.memory_space<vmem>>, vector<1x16x128xbf16>,
    %c6_i32 = arith.constant 6 : i32
    %c16_i32_63 = arith.constant 16 : i32
    %267 = arith.muli %c6_i32, %c16_i32_63 : i32
    %268 = tpu.assume_multiple %267, 16 : i32
    %269 = arith.index_cast %268 : i32 to index
    %c0_64 = arith.constant 0 : index
    %270 = vector.load %arg13[%269, %c0_64] : memref<128x512xbf16, #tpu.memory_space<vmem>>, vector<16x512xbf16>
    %271 = arith.extf %270 : vector<16x512xbf16> to vector<16x512xf32>
    %272 = arith.truncf %261 : vector<16x128xf32> to vector<16x128xbf16>
    %cst_65 = arith.constant dense<0.000000e+00> : vector<16x512xf32>
    %273 = tpu.matmul %272, %12, %cst_65 {dimension_numbers = #tpu.dot_dimension_numbers<[1], [0], [0], [1], [0, 0, 1, 1], [], []>} : vector<16x128xbf16>, vector<128x512xbf16>, vector<16x512xf32> -> vector<16x512xf32>
    %274 = arith.addf %271, %273 : vector<16x512xf32>
    %275 = arith.truncf %274 : vector<16x512xf32> to vector<16x512xbf16>
    %276 = vector.extract_strided_slice %275 {offsets = [0, 0], sizes = [16, 128], strides = [1, 1]} : vector<16x512xbf16> to vector<16x128xbf16>
    %277 = arith.negf %276 : vector<16x128xbf16>
    %278 = math.exp %277 : vector<16x128xbf16>
    %cst_66 = arith.constant 1.000000e+00 : bf16
    %279 = vector.broadcast %cst_66 : bf16 to vector<16x128xbf16>
    %280 = arith.addf %279, %278 : vector<16x128xbf16>
    %281 = arith.divf %279, %280 : vector<16x128xbf16>
    %282 = vector.extract_strided_slice %275 {offsets = [0, 128], sizes = [16, 128], strides = [1, 1]} : vector<16x512xbf16> to vector<16x128xbf16>
    %283 = arith.negf %282 : vector<16x128xbf16>
    %284 = math.exp %283 : vector<16x128xbf16>
    %cst_67 = arith.constant 1.000000e+00 : bf16
    %285 = vector.broadcast %cst_67 : bf16 to vector<16x128xbf16>
    %286 = arith.addf %285, %284 : vector<16x128xbf16>
    %287 = arith.divf %285, %286 : vector<16x128xbf16>
    %288 = vector.extract_strided_slice %275 {offsets = [0, 256], sizes = [16, 128], strides = [1, 1]} : vector<16x512xbf16> to vector<16x128xbf16>
    %289 = math.tanh %288 : vector<16x128xbf16>
    %290 = vector.extract_strided_slice %275 {offsets = [0, 384], sizes = [16, 128], strides = [1, 1]} : vector<16x512xbf16> to vector<16x128xbf16>
    %291 = arith.negf %290 : vector<16x128xbf16>
    %292 = math.exp %291 : vector<16x128xbf16>
    %cst_68 = arith.constant 1.000000e+00 : bf16
    %293 = vector.broadcast %cst_68 : bf16 to vector<16x128xbf16>
    %294 = arith.addf %293, %292 : vector<16x128xbf16>
    %295 = arith.divf %293, %294 : vector<16x128xbf16>
    %296 = arith.extf %287 : vector<16x128xbf16> to vector<16x128xf32>
    %297 = arith.mulf %296, %258 : vector<16x128xf32>
    %298 = arith.mulf %281, %289 : vector<16x128xbf16>
    %299 = arith.extf %298 : vector<16x128xbf16> to vector<16x128xf32>
    %300 = arith.addf %297, %299 : vector<16x128xf32>
    %301 = math.tanh %300 : vector<16x128xf32>
    %302 = arith.extf %295 : vector<16x128xbf16> to vector<16x128xf32>
    %303 = arith.mulf %302, %301 : vector<16x128xf32>
    %304 = arith.truncf %303 : vector<16x128xf32> to vector<16x128xbf16>
    %305 = arith.index_cast %c6_i32 : i32 to index
    %c0_69 = arith.constant 0 : index
    %c0_70 = arith.constant 0 : index
    %306 = vector.load %arg8[%305, %c0_69, %c0_70] : memref<8x16x128xbf16, #tpu.memory_space<vmem>>, vector<1x16x128xbf16>
    %307 = vector.shape_cast %306 : vector<1x16x128xbf16> to vector<16x128xbf16>
    %308 = vector.shape_cast %304 : vector<16x128xbf16> to vector<1x16x128xbf16>
    tpu.vector_store %arg8[%305, %c0_69, %c0_70], %308 {strides = array<i32>} : memref<8x16x128xbf16, #tpu.memory_space<vmem>>, vector<1x16x128xbf16>,
    %c7_i32 = arith.constant 7 : i32
    %c16_i32_71 = arith.constant 16 : i32
    %309 = arith.muli %c7_i32, %c16_i32_71 : i32
    %310 = tpu.assume_multiple %309, 16 : i32
    %311 = arith.index_cast %310 : i32 to index
    %c0_72 = arith.constant 0 : index
    %312 = vector.load %arg13[%311, %c0_72] : memref<128x512xbf16, #tpu.memory_space<vmem>>, vector<16x512xbf16>
    %313 = arith.extf %312 : vector<16x512xbf16> to vector<16x512xf32>
    %314 = arith.truncf %303 : vector<16x128xf32> to vector<16x128xbf16>
    %cst_73 = arith.constant dense<0.000000e+00> : vector<16x512xf32>
    %315 = tpu.matmul %314, %12, %cst_73 {dimension_numbers = #tpu.dot_dimension_numbers<[1], [0], [0], [1], [0, 0, 1, 1], [], []>} : vector<16x128xbf16>, vector<128x512xbf16>, vector<16x512xf32> -> vector<16x512xf32>
    %316 = arith.addf %313, %315 : vector<16x512xf32>
    %317 = arith.truncf %316 : vector<16x512xf32> to vector<16x512xbf16>
    %318 = vector.extract_strided_slice %317 {offsets = [0, 0], sizes = [16, 128], strides = [1, 1]} : vector<16x512xbf16> to vector<16x128xbf16>
    %319 = arith.negf %318 : vector<16x128xbf16>
    %320 = math.exp %319 : vector<16x128xbf16>
    %cst_74 = arith.constant 1.000000e+00 : bf16
    %321 = vector.broadcast %cst_74 : bf16 to vector<16x128xbf16>
    %322 = arith.addf %321, %320 : vector<16x128xbf16>
    %323 = arith.divf %321, %322 : vector<16x128xbf16>
    %324 = vector.extract_strided_slice %317 {offsets = [0, 128], sizes = [16, 128], strides = [1, 1]} : vector<16x512xbf16> to vector<16x128xbf16>
    %325 = arith.negf %324 : vector<16x128xbf16>
    %326 = math.exp %325 : vector<16x128xbf16>
    %cst_75 = arith.constant 1.000000e+00 : bf16
    %327 = vector.broadcast %cst_75 : bf16 to vector<16x128xbf16>
    %328 = arith.addf %327, %326 : vector<16x128xbf16>
    %329 = arith.divf %327, %328 : vector<16x128xbf16>
    %330 = vector.extract_strided_slice %317 {offsets = [0, 256], sizes = [16, 128], strides = [1, 1]} : vector<16x512xbf16> to vector<16x128xbf16>
    %331 = math.tanh %330 : vector<16x128xbf16>
    %332 = vector.extract_strided_slice %317 {offsets = [0, 384], sizes = [16, 128], strides = [1, 1]} : vector<16x512xbf16> to vector<16x128xbf16>
    %333 = arith.negf %332 : vector<16x128xbf16>
    %334 = math.exp %333 : vector<16x128xbf16>
    %cst_76 = arith.constant 1.000000e+00 : bf16
    %335 = vector.broadcast %cst_76 : bf16 to vector<16x128xbf16>
    %336 = arith.addf %335, %334 : vector<16x128xbf16>
    %337 = arith.divf %335, %336 : vector<16x128xbf16>
    %338 = arith.extf %329 : vector<16x128xbf16> to vector<16x128xf32>
    %339 = arith.mulf %338, %300 : vector<16x128xf32>
    %340 = arith.mulf %323, %331 : vector<16x128xbf16>
    %341 = arith.extf %340 : vector<16x128xbf16> to vector<16x128xf32>
    %342 = arith.addf %339, %341 : vector<16x128xf32>
    %343 = math.tanh %342 : vector<16x128xf32>
    %344 = arith.extf %337 : vector<16x128xbf16> to vector<16x128xf32>
    %345 = arith.mulf %344, %343 : vector<16x128xf32>
    %346 = arith.truncf %345 : vector<16x128xf32> to vector<16x128xbf16>
    %347 = arith.index_cast %c7_i32 : i32 to index
    %c0_77 = arith.constant 0 : index
    %c0_78 = arith.constant 0 : index
    %348 = vector.load %arg8[%347, %c0_77, %c0_78] : memref<8x16x128xbf16, #tpu.memory_space<vmem>>, vector<1x16x128xbf16>
    %349 = vector.shape_cast %348 : vector<1x16x128xbf16> to vector<16x128xbf16>
    %350 = vector.shape_cast %346 : vector<16x128xbf16> to vector<1x16x128xbf16>
    tpu.vector_store %arg8[%347, %c0_77, %c0_78], %350 {strides = array<i32>} : memref<8x16x128xbf16, #tpu.memory_space<vmem>>, vector<1x16x128xbf16>,
    %c8_i32 = arith.constant 8 : i32
    %c0_79 = arith.constant 0 : index
    %c0_80 = arith.constant 0 : index
    %351 = vector.load %arg11[%c0_79, %c0_80] : memref<16x128xf32, #tpu.memory_space<vmem>>, vector<16x128xf32>
    tpu.vector_store %arg11[%c0_79, %c0_80], %345 {strides = array<i32>} : memref<16x128xf32, #tpu.memory_space<vmem>>, vector<16x128xf32>,
    %c0_81 = arith.constant 0 : index
    %c0_82 = arith.constant 0 : index
    %352 = vector.load %arg12[%c0_81, %c0_82] : memref<16x128xf32, #tpu.memory_space<vmem>>, vector<16x128xf32>
    tpu.vector_store %arg12[%c0_81, %c0_82], %342 {strides = array<i32>} : memref<16x128xf32, #tpu.memory_space<vmem>>, vector<16x128xf32>,
    %c0_i32_83 = arith.constant 0 : i32
    %353 = arith.cmpi eq, %arg1, %c0_i32_83 : i32
    %354 = arith.extui %353 : i1 to i32
    %c0_i32_84 = arith.constant 0 : i32
    %355 = arith.cmpi ne, %354, %c0_i32_84 : i32
    scf.if %355 {
      %c0_85 = arith.constant 0 : index
      %c0_86 = arith.constant 0 : index
      %356 = vector.load %arg11[%c0_85, %c0_86] : memref<16x128xf32, #tpu.memory_space<vmem>>, vector<16x128xf32>
      %c0_87 = arith.constant 0 : index
      %c0_88 = arith.constant 0 : index
      %357 = vector.load %arg9[%c0_87, %c0_88] : memref<16x128xf32, #tpu.memory_space<vmem>>, vector<16x128xf32>
      tpu.vector_store %arg9[%c0_87, %c0_88], %356 {strides = array<i32>} : memref<16x128xf32, #tpu.memory_space<vmem>>, vector<16x128xf32>,
      %c0_89 = arith.constant 0 : index
      %c0_90 = arith.constant 0 : index
      %358 = vector.load %arg12[%c0_89, %c0_90] : memref<16x128xf32, #tpu.memory_space<vmem>>, vector<16x128xf32>
      %c0_91 = arith.constant 0 : index
      %c0_92 = arith.constant 0 : index
      %359 = vector.load %arg10[%c0_91, %c0_92] : memref<16x128xf32, #tpu.memory_space<vmem>>, vector<16x128xf32>
      tpu.vector_store %arg10[%c0_91, %c0_92], %358 {strides = array<i32>} : memref<16x128xf32, #tpu.memory_space<vmem>>, vector<16x128xf32>,
    } else {
    }
    return
  }
  func.func @transform_0(%arg0: i32, %arg1: i32) -> (i32, i32, i32) {
    %c0_i32 = arith.constant 0 : i32
    %c0_i32_0 = arith.constant 0 : i32
    return %arg1, %arg0, %c0_i32 : i32, i32, i32
  }
  func.func @transform_1(%arg0: i32, %arg1: i32) -> (i32, i32) {
    %c0_i32 = arith.constant 0 : i32
    %c0_i32_0 = arith.constant 0 : i32
    %c0_i32_1 = arith.constant 0 : i32
    return %c0_i32, %c0_i32_0 : i32, i32
  }
  func.func @transform_2(%arg0: i32, %arg1: i32) -> (i32, i32) {
    %c0_i32 = arith.constant 0 : i32
    %c0_i32_0 = arith.constant 0 : i32
    %c0_i32_1 = arith.constant 0 : i32
    return %c0_i32, %c0_i32_0 : i32, i32
  }
  func.func @transform_3(%arg0: i32, %arg1: i32) -> (i32, i32) {
    %c0_i32 = arith.constant 0 : i32
    %c0_i32_0 = arith.constant 0 : i32
    %c0_i32_1 = arith.constant 0 : i32
    return %c0_i32, %c0_i32_0 : i32, i32
  }
  func.func @transform_4(%arg0: i32, %arg1: i32) -> (i32, i32) {
    %c0_i32 = arith.constant 0 : i32
    %c0_i32_0 = arith.constant 0 : i32
    return %arg0, %c0_i32 : i32, i32
  }
  func.func @transform_5(%arg0: i32, %arg1: i32) -> (i32, i32) {
    %c0_i32 = arith.constant 0 : i32
    %c0_i32_0 = arith.constant 0 : i32
    return %arg0, %c0_i32 : i32, i32
  }
  func.func @transform_6(%arg0: i32, %arg1: i32) -> (i32, i32, i32) {
    %c0_i32 = arith.constant 0 : i32
    %c0_i32_0 = arith.constant 0 : i32
    return %arg1, %arg0, %c0_i32 : i32, i32, i32
  }
  func.func @transform_7(%arg0: i32, %arg1: i32) -> (i32, i32) {
    %c0_i32 = arith.constant 0 : i32
    %c0_i32_0 = arith.constant 0 : i32
    return %arg0, %c0_i32 : i32, i32
  }
  func.func @transform_8(%arg0: i32, %arg1: i32) -> (i32, i32) {
    %c0_i32 = arith.constant 0 : i32
    %c0_i32_0 = arith.constant 0 : i32
    return %arg0, %c0_i32 : i32, i32
  }
}

</mosaic_0001>

<bundles_post_ra>
// kernel: lstm_forward.5
= control target key start
LH: loop header
LB: loop body
LE: loop exit
PB: predicated region body
PF: predicated region fallthrough
CT: control target
= control target key end

     0   :  { %s787_s1 = inlined_call_operand.vmem [shape: bf16[128,128], index: 1, kind: input, shape index: {}]   ;;  %s788_s0 = inlined_call_operand.vmem [shape: bf16[128,128], index: 0, kind: input, shape index: {}]   ;;  %s789_s2 = inlined_call_operand.vmem [shape: f32[1,128], index: 2, kind: input, shape index: {}]   ;;  %s790_s3 = inlined_call_operand.vmem [shape: f32[128,128], index: 3, kind: output, shape index: {}]  }
   0x1   :  { %v508_v0 = vld [vmem:[%s787_s1] sm:$0xff]   ;;  %v509_v1 = vld [vmem:[%s787_s1 + $0x8] sm:$0xff]   ;;  %v510_v2 = vld [vmem:[%s787_s1 + $0x10] sm:$0xff]  }
   0x2   :  { %460 = vmatprep.subr.bf16.mxu0 %v508_v0  ;;  %492 = vmatprep.subr.bf16.mxu1 %v508_v0  ;;  %v511_v3 = vld [vmem:[%s787_s1 + $0x18] sm:$0xff]   ;;  %v516_v4 = vld [vmem:[%s788_s0] sm:$0xff]   ;;  %v513_v7 = vld [vmem:[%s787_s1 + $0x28] sm:$0xff]  }
   0x3   :  { %461 = vmatpush3.bf16.msra.mxu0 %v508_v0  ;;  %500 = vmatpush3.bf16.msra.mxu1 %v508_v0  ;;  %v517_v5 = vld [vmem:[%s788_s0 + $0x20] sm:$0xff]   ;;  %v514_v8 = vld [vmem:[%s787_s1 + $0x30] sm:$0xff]   ;;  %v515_v9 = vld [vmem:[%s787_s1 + $0x38] sm:$0xff]  }
   0x4   :  { %462 = vmatprep.subr.bf16.mxu0 %v509_v1  ;;  %493 = vmatprep.subr.bf16.mxu1 %v509_v1  ;;  %v512_v6 = vld [vmem:[%s787_s1 + $0x20] sm:$0xff]   ;;  %v518_v10 = vld [vmem:[%s788_s0 + $0x8] sm:$0xff]   ;;  %v520_v12 = vld [vmem:[%s788_s0 + $0x10] sm:$0xff]  }
   0x5   :  { %476 = vmatprep.mubr.bf16.mxu0 %v516_v4  ;;  %484 = vmatprep.mubr.bf16.mxu1 %v517_v5  ;;  %v519_v11 = vld [vmem:[%s788_s0 + $0x28] sm:$0xff]   ;;  %v522_v13 = vld [vmem:[%s788_s0 + $0x30] sm:$0xff]   ;;  %v521_v14 = vld [vmem:[%s788_s0 + $0x18] sm:$0xff]  }
   0x6   :  { %v523_v15 = vld [vmem:[%s788_s0 + $0x38] sm:$0xff]   ;;  %v427_v16 = vld [vmem:[%s789_s2] ss:$0 sm:$0xff] }
   0x7   :  { %463 = vmatpush3.bf16.msra.mxu0 %v509_v1  ;;  %501 = vmatpush3.bf16.msra.mxu1 %v509_v1 }
   0x8   :  { %464 = vmatprep.subr.bf16.mxu0 %v510_v2  ;;  %494 = vmatprep.subr.bf16.mxu1 %v510_v2 }
   0xb   :  { %465 = vmatpush3.bf16.msra.mxu0 %v510_v2  ;;  %502 = vmatpush3.bf16.msra.mxu1 %v510_v2 }
   0xc   :  { %466 = vmatprep.subr.bf16.mxu0 %v511_v3  ;;  %495 = vmatprep.subr.bf16.mxu1 %v511_v3 }
   0xf   :  { %467 = vmatpush3.bf16.msra.mxu0 %v511_v3  ;;  %503 = vmatpush3.bf16.msra.mxu1 %v511_v3 }
  0x10   :  { %468 = vmatprep.subr.bf16.mxu0 %v512_v6  ;;  %496 = vmatprep.subr.bf16.mxu1 %v512_v6 }
  0x13   :  { %469 = vmatpush3.bf16.msra.mxu0 %v512_v6  ;;  %504 = vmatpush3.bf16.msra.mxu1 %v512_v6 }
  0x14   :  { %470 = vmatprep.subr.bf16.mxu0 %v513_v7  ;;  %497 = vmatprep.subr.bf16.mxu1 %v513_v7 }
  0x17   :  { %471 = vmatpush3.bf16.msra.mxu0 %v513_v7  ;;  %505 = vmatpush3.bf16.msra.mxu1 %v513_v7 }
  0x18   :  { %472 = vmatprep.subr.bf16.mxu0 %v514_v8  ;;  %498 = vmatprep.subr.bf16.mxu1 %v514_v8 }
  0x1b   :  { %473 = vmatpush3.bf16.msra.mxu0 %v514_v8  ;;  %506 = vmatpush3.bf16.msra.mxu1 %v514_v8 }
  0x1c   :  { %474 = vmatprep.subr.bf16.mxu0 %v515_v9  ;;  %499 = vmatprep.subr.bf16.mxu1 %v515_v9 }
  0x1f   :  { %475 = vmatpush3.bf16.msra.mxu0 %v515_v9  ;;  %507 = vmatpush3.bf16.msra.mxu1 %v515_v9 }
  0x22   :  { %477 = vmatmul.mubr.bf16.vlgmr.msra.gmra.mrb[0].mxu0 %v518_v10  ;;  %485 = vmatmul.mubr.bf16.vlgmr.msra.gmra.mrb[0].mxu1 %v519_v11 }
  0x23   :  { %480 = vmatprep.mubr.bf16.mxu0 %v520_v12  ;;  %488 = vmatprep.mubr.bf16.mxu1 %v522_v13 }
  0x2a   :  { %481 = vmatmul.mubr.bf16.gmra.mrb[4].mxu0 %v521_v14  ;;  %489 = vmatmul.mubr.bf16.gmra.mrb[4].mxu1 %v523_v15 }
  0xf5   :  { %v478_v17 = vpop.f32.mrb[0].mxu0  ;;  %v486_v18 = vpop.f32.mrb[0].mxu1 }
  0xf6   :  { %v193_v19 = vadd.f32 %v478_v17, %v427_v16  ;;  %v225_v20 = vadd.f32 %v486_v18, %v427_v16  ;;  %v184_v21 = vpop.f32.mrb[1].mxu0  ;;  %v216_v22 = vpop.f32.mrb[1].mxu1 }
  0xf7   :  { %v479_v23 = vpop.f32.mrb[2].mxu0  ;;  %v487_v24 = vpop.f32.mrb[2].mxu1  ;;  %v185_v27 = vadd.f32 %v427_v16, %v184_v21  ;;  %v217_v31 = vadd.f32 %v427_v16, %v216_v22 }
  0xf8   :  { %267 = vmax.xlane.f32.xlu0 %v225_v20  ;;  %v219_v25 = vpop.f32.mrb[3].mxu1  ;;  %251 = vmax.xlane.f32.xlu1 %v193_v19  ;;  %v187_v26 = vpop.f32.mrb[3].mxu0  ;;  %v196_v28 = vadd.f32 %v479_v23, %v427_v16  ;;  %v228_v32 = vadd.f32 %v487_v24, %v427_v16 }
  0xf9   :  { %v220_v39 = vadd.f32 %v427_v16, %v219_v25  ;;  %v188_v40 = vadd.f32 %v427_v16, %v187_v26 }
  0xfc   :  { %253 = vmax.xlane.f32.xlu1 %v196_v28  ;;  %247 = vmax.xlane.f32.xlu0 %v185_v27 }
  0xfd   :  { %v482_v29 = vpop.f32.mrb[4].mxu0  ;;  %v490_v30 = vpop.f32.mrb[4].mxu1 }
  0xfe   :  { %v200_v33 = vpop.f32.mrb[5].mxu0  ;;  %v232_v34 = vpop.f32.mrb[5].mxu1  ;;  %v209_v41 = vadd.f32 %v482_v29, %v427_v16  ;;  %v665_v47 = vadd.f32 %v490_v30, %v427_v16 }
  0xff   :  { %v483_v35 = vpop.f32.mrb[6].mxu0  ;;  %v491_v36 = vpop.f32.mrb[6].mxu1  ;;  %v201_v43 = vadd.f32 %v427_v16, %v200_v33  ;;  %v659_v45 = vadd.f32 %v427_v16, %v232_v34 }
 0x100   :  { %269 = vmax.xlane.f32.xlu1 %v228_v32  ;;  %263 = vmax.xlane.f32.xlu0 %v217_v31  ;;  %v203_v37 = vpop.f32.mrb[7].mxu0  ;;  %v235_v38 = vpop.f32.mrb[7].mxu1  ;;  %v212_v42 = vadd.f32 %v483_v35, %v427_v16  ;;  %v667_v48 = vadd.f32 %v491_v36, %v427_v16 }
 0x101   :  { %v204_v44 = vadd.f32 %v427_v16, %v203_v37  ;;  %v661_v46 = vadd.f32 %v427_v16, %v235_v38 }
 0x104   :  { %265 = vmax.xlane.f32.xlu1 %v220_v39  ;;  %249 = vmax.xlane.f32.xlu0 %v188_v40 }
 0x108   :  { %261 = vmax.xlane.f32.xlu1 %v212_v42  ;;  %259 = vmax.xlane.f32.xlu0 %v209_v41 }
 0x10c   :  { %257 = vmax.xlane.f32.xlu1 %v204_v44  ;;  %255 = vmax.xlane.f32.xlu0 %v201_v43 }
 0x110   :  { %273 = vmax.xlane.f32.xlu1 %v661_v46  ;;  %271 = vmax.xlane.f32.xlu0 %v659_v45 }
 0x114   :  { %277 = vmax.xlane.f32.xlu1 %v667_v48  ;;  %275 = vmax.xlane.f32.xlu0 %v665_v47 }
 0x185   :  { %v268_v49 = vpop.xlane.xlu0 %267  ;;  %v252_v50 = vpop.xlane.xlu1 %251 }
 0x186   :  { %v671_v51 = vsub.f32 %v193_v19, %v252_v50  ;;  %v673_v52 = vsub.f32 %v225_v20, %v268_v49 }
 0x188   :  { %v299_v53 = vmul.f32 1.442695, %v671_v51  ;;  %v315_v57 = vmul.f32 1.442695, %v673_v52 }
 0x189   :  { %v254_v54 = vpop.xlane.xlu1 %253  ;;  %v248_v55 = vpop.xlane.xlu0 %247 }
 0x18a   :  { %v676_v56 = vsub.f32 %v196_v28, %v254_v54  ;;  %524 = vpow2.f32 %v299_v53  ;;  %v679_v58 = vsub.f32 %v185_v27, %v248_v55 }
 0x18c   :  { %v301_v59 = vmul.f32 1.442695, %v676_v56  ;;  %v295_v0 = vmul.f32 1.442695, %v679_v58 }
 0x18d   :  { %v270_v60 = vpop.xlane.xlu1 %269  ;;  %v264_v61 = vpop.xlane.xlu0 %263 }
 0x18e   :  { %526 = vpow2.f32 %v301_v59  ;;  %v682_v62 = vsub.f32 %v228_v32, %v270_v60  ;;  %v684_v63 = vsub.f32 %v217_v31, %v264_v61 }
 0x18f   :  { %528 = vpow2.f32 %v315_v57 }
 0x190   :  { %v317_v1 = vmul.f32 1.442695, %v682_v62  ;;  %v311_v4 = vmul.f32 1.442695, %v684_v63 }
 0x191   :  { %v266_v2 = vpop.xlane.xlu1 %265  ;;  %v250_v3 = vpop.xlane.xlu0 %249 }
 0x192   :  { %530 = vpow2.f32 %v317_v1  ;;  %v689_v5 = vsub.f32 %v220_v39, %v266_v2  ;;  %v691_v6 = vsub.f32 %v188_v40, %v250_v3 }
 0x193   :  { %532 = vpow2.f32 %v295_v0 }
 0x194   :  { %v297_v7 = vmul.f32 1.442695, %v691_v6  ;;  %v525_v8 = vpop.eup %524  ;;  %534 = vpow2.f32 %v311_v4  ;;  %v313_v11 = vmul.f32 1.442695, %v689_v5 }
 0x195   :  { %v262_v9 = vpop.xlane.xlu1 %261  ;;  %v260_v10 = vpop.xlane.xlu0 %259  ;;  %331 = vadd.xlane.f32.xlu0 %v525_v8 }
 0x196   :  { %v695_v12 = vsub.f32 %v212_v42, %v262_v9  ;;  %v697_v13 = vsub.f32 %v209_v41, %v260_v10  ;;  %536 = vpow2.f32 %v297_v7 }
 0x197   :  { %538 = vpow2.f32 %v313_v11 }
 0x198   :  { %v527_v14 = vpop.eup %526  ;;  %v307_v15 = vmul.f32 1.442695, %v697_v13  ;;  %v309_v19 = vmul.f32 1.442695, %v695_v12 }
 0x199   :  { %v529_v16 = vpop.eup %528  ;;  %333 = vadd.xlane.f32.xlu1 %v527_v14  ;;  %v258_v17 = vpop.xlane.xlu1 %257 }
 0x19a   :  { %v256_v18 = vpop.xlane.xlu0 %255  ;;  %v701_v20 = vsub.f32 %v204_v44, %v258_v17  ;;  %347 = vadd.xlane.f32.xlu0 %v529_v16  ;;  %540 = vpow2.f32 %v307_v15 }
 0x19b   :  { %v703_v21 = vsub.f32 %v201_v43, %v256_v18  ;;  %542 = vpow2.f32 %v309_v19 }
 0x19c   :  { %v531_v22 = vpop.eup %530  ;;  %v305_v27 = vmul.f32 1.442695, %v701_v20 }
 0x19d   :  { %v303_v23 = vmul.f32 1.442695, %v703_v21  ;;  %v533_v24 = vpop.eup %532  ;;  %349 = vadd.xlane.f32.xlu1 %v531_v22  ;;  %v274_v25 = vpop.xlane.xlu1 %273 }
 0x19e   :  { %v272_v26 = vpop.xlane.xlu0 %271  ;;  %v708_v28 = vsub.f32 %v661_v46, %v274_v25  ;;  %327 = vadd.xlane.f32.xlu0 %v533_v24  ;;  %v535_v30 = vpop.eup %534 }
 0x19f   :  { %v711_v29 = vsub.f32 %v659_v45, %v272_v26  ;;  %544 = vpow2.f32 %v303_v23 }
 0x1a0   :  { %v537_v32 = vpop.eup %536  ;;  %546 = vpow2.f32 %v305_v27  ;;  %v321_v35 = vmul.f32 1.442695, %v708_v28 }
 0x1a1   :  { %v319_v31 = vmul.f32 1.442695, %v711_v29  ;;  %v278_v33 = vpop.xlane.xlu1 %277  ;;  %329 = vadd.xlane.f32.xlu1 %v537_v32  ;;  %v539_v38 = vpop.eup %538 }
 0x1a2   :  { %v276_v34 = vpop.xlane.xlu0 %275  ;;  %343 = vadd.xlane.f32.xlu0 %v535_v30  ;;  %v719_v37 = vsub.f32 %v667_v48, %v278_v33 }
 0x1a3   :  { %v716_v36 = vsub.f32 %v665_v47, %v276_v34  ;;  %548 = vpow2.f32 %v319_v31 }
 0x1a4   :  { %v541_v40 = vpop.eup %540  ;;  %550 = vpow2.f32 %v321_v35  ;;  %v325_v41 = vmul.f32 1.442695, %v719_v37 }
 0x1a5   :  { %v323_v39 = vmul.f32 1.442695, %v716_v36  ;;  %345 = vadd.xlane.f32.xlu1 %v539_v38  ;;  %v543_v42 = vpop.eup %542 }
 0x1a6   :  { %339 = vadd.xlane.f32.xlu0 %v541_v40 }
 0x1a7   :  { %552 = vpow2.f32 %v323_v39 }
 0x1a8   :  { %554 = vpow2.f32 %v325_v41 }
 0x1a9   :  { %v545_v43 = vpop.eup %544  ;;  %341 = vadd.xlane.f32.xlu1 %v543_v42 }
 0x1aa   :  { %335 = vadd.xlane.f32.xlu0 %v545_v43  ;;  %v547_v44 = vpop.eup %546 }
 0x1ad   :  { %v549_v45 = vpop.eup %548  ;;  %337 = vadd.xlane.f32.xlu1 %v547_v44 }
 0x1ae   :  { %351 = vadd.xlane.f32.xlu0 %v549_v45  ;;  %v551_v46 = vpop.eup %550 }
 0x1b1   :  { %v553_v47 = vpop.eup %552  ;;  %353 = vadd.xlane.f32.xlu1 %v551_v46 }
 0x1b2   :  { %355 = vadd.xlane.f32.xlu0 %v553_v47  ;;  %v555_v48 = vpop.eup %554 }
 0x1b5   :  { %357 = vadd.xlane.f32.xlu1 %v555_v48 }
 0x222   :  { %v332_v49 = vpop.xlane.xlu0 %331 }
 0x223   :  { %556 = vlog2.f32 %v332_v49 }
 0x226   :  { %v334_v50 = vpop.xlane.xlu1 %333 }
 0x227   :  { %558 = vlog2.f32 %v334_v50  ;;  %v348_v53 = vpop.xlane.xlu0 %347 }
 0x228   :  { %560 = vlog2.f32 %v348_v53 }
 0x22a   :  { %v350_v54 = vpop.xlane.xlu1 %349 }
 0x22b   :  { %562 = vlog2.f32 %v350_v54  ;;  %v328_v55 = vpop.xlane.xlu0 %327 }
 0x22c   :  { %564 = vlog2.f32 %v328_v55 }
 0x22d   :  { %v557_v57 = vpop.eup %556 }
 0x22e   :  { %v364_v59 = vmul.f32 0.6931472, %v557_v57  ;;  %v330_v60 = vpop.xlane.xlu1 %329 }
 0x22f   :  { %v344_v61 = vpop.xlane.xlu0 %343  ;;  %566 = vlog2.f32 %v330_v60 }
 0x230   :  { %v393_v1 = vsub.f32 %v671_v51, %v364_v59  ;;  %568 = vlog2.f32 %v344_v61 }
 0x231   :  { %v559_v0 = vpop.eup %558 }
 0x232   :  { %v561_v2 = vpop.eup %560  ;;  %v366_v3 = vmul.f32 0.6931472, %v559_v0  ;;  %409 = vst [vmem:[%s790_s3 + $0x10] sm:$0xff] %v393_v1  ;;  %v346_v7 = vpop.xlane.xlu1 %345 }
 0x233   :  { %v380_v4 = vmul.f32 0.6931472, %v561_v2  ;;  %v340_v8 = vpop.xlane.xlu0 %339  ;;  %570 = vlog2.f32 %v346_v7 }
 0x234   :  { %v394_v9 = vsub.f32 %v676_v56, %v366_v3  ;;  %572 = vlog2.f32 %v340_v8 }
 0x235   :  { %v563_v10 = vpop.eup %562  ;;  %v401_v11 = vsub.f32 %v673_v52, %v380_v4 }
 0x236   :  { %v565_v14 = vpop.eup %564  ;;  %410 = vst [vmem:[%s790_s3 + $0x18] sm:$0xff] %v394_v9  ;;  %v382_v51 = vmul.f32 0.6931472, %v563_v10  ;;  %v342_v16 = vpop.xlane.xlu1 %341 }
 0x237   :  { %417 = vst [vmem:[%s790_s3 + $0x50] sm:$0xff] %v401_v11  ;;  %v360_v15 = vmul.f32 0.6931472, %v565_v14  ;;  %v336_v17 = vpop.xlane.xlu0 %335  ;;  %574 = vlog2.f32 %v342_v16 }
 0x238   :  { %v402_v56 = vsub.f32 %v682_v62, %v382_v51  ;;  %576 = vlog2.f32 %v336_v17 }
 0x239   :  { %v391_v18 = vsub.f32 %v679_v58, %v360_v15  ;;  %v567_v52 = vpop.eup %566 }
 0x23a   :  { %418 = vst [vmem:[%s790_s3 + $0x58] sm:$0xff] %v402_v56  ;;  %v569_v19 = vpop.eup %568  ;;  %v362_v22 = vmul.f32 0.6931472, %v567_v52  ;;  %v338_v23 = vpop.xlane.xlu1 %337 }
 0x23b   :  { %407 = vst [vmem:[%s790_s3] sm:$0xff] %v391_v18  ;;  %v352_v24 = vpop.xlane.xlu0 %351  ;;  %v376_v25 = vmul.f32 0.6931472, %v569_v19  ;;  %578 = vlog2.f32 %v338_v23 }
 0x23c   :  { %v392_v62 = vsub.f32 %v691_v6, %v362_v22  ;;  %580 = vlog2.f32 %v352_v24 }
 0x23d   :  { %v571_v58 = vpop.eup %570  ;;  %v399_v26 = vsub.f32 %v684_v63, %v376_v25 }
 0x23e   :  { %v573_v27 = vpop.eup %572  ;;  %408 = vst [vmem:[%s790_s3 + $0x8] sm:$0xff] %v392_v62  ;;  %v378_v30 = vmul.f32 0.6931472, %v571_v58  ;;  %v354_v31 = vpop.xlane.xlu1 %353 }
 0x23f   :  { %v356_v32 = vpop.xlane.xlu0 %355  ;;  %415 = vst [vmem:[%s790_s3 + $0x40] sm:$0xff] %v399_v26  ;;  %v372_v33 = vmul.f32 0.6931472, %v573_v27  ;;  %582 = vlog2.f32 %v354_v31 }
 0x240   :  { %v400_v6 = vsub.f32 %v689_v5, %v378_v30  ;;  %584 = vlog2.f32 %v356_v32 }
 0x241   :  { %v575_v34 = vpop.eup %574  ;;  %v397_v63 = vsub.f32 %v697_v13, %v372_v33 }
 0x242   :  { %v577_v35 = vpop.eup %576  ;;  %416 = vst [vmem:[%s790_s3 + $0x48] sm:$0xff] %v400_v6  ;;  %v374_v38 = vmul.f32 0.6931472, %v575_v34  ;;  %v358_v39 = vpop.xlane.xlu1 %357 }
 0x243   :  { %413 = vst [vmem:[%s790_s3 + $0x30] sm:$0xff] %v397_v63  ;;  %v368_v40 = vmul.f32 0.6931472, %v577_v35  ;;  %586 = vlog2.f32 %v358_v39 }
 0x244   :  { %v398_v41 = vsub.f32 %v695_v12, %v374_v38 }
 0x245   :  { %v579_v5 = vpop.eup %578  ;;  %v395_v42 = vsub.f32 %v703_v21, %v368_v40 }
 0x246   :  { %v581_v43 = vpop.eup %580  ;;  %414 = vst [vmem:[%s790_s3 + $0x38] sm:$0xff] %v398_v41  ;;  %v370_v13 = vmul.f32 0.6931472, %v579_v5 }
 0x247   :  { %411 = vst [vmem:[%s790_s3 + $0x20] sm:$0xff] %v395_v42  ;;  %v384_v44 = vmul.f32 0.6931472, %v581_v43 }
 0x248   :  { %v396_v45 = vsub.f32 %v701_v20, %v370_v13 }
 0x249   :  { %v583_v46 = vpop.eup %582  ;;  %v403_v47 = vsub.f32 %v711_v29, %v384_v44 }
 0x24a   :  { %v585_v12 = vpop.eup %584  ;;  %412 = vst [vmem:[%s790_s3 + $0x28] sm:$0xff] %v396_v45  ;;  %v386_v21 = vmul.f32 0.6931472, %v583_v46 }
 0x24b   :  { %419 = vst [vmem:[%s790_s3 + $0x60] sm:$0xff] %v403_v47  ;;  %v388_v48 = vmul.f32 0.6931472, %v585_v12 }
 0x24c   :  { %v404_v49 = vsub.f32 %v708_v28, %v386_v21 }
 0x24d   :  { %v587_v50 = vpop.eup %586  ;;  %v405_v53 = vsub.f32 %v716_v36, %v388_v48 }
 0x24e   :  { %420 = vst [vmem:[%s790_s3 + $0x68] sm:$0xff] %v404_v49  ;;  %v390_v20 = vmul.f32 0.6931472, %v587_v50 }
 0x24f   :  { %421 = vst [vmem:[%s790_s3 + $0x70] sm:$0xff] %v405_v53 }
 0x250   :  { %v406_v29 = vsub.f32 %v719_v37, %v390_v20 }
 0x252   :  { %422 = vst [vmem:[%s790_s3 + $0x78] sm:$0xff] %v406_v29 }

// kernel: lstm_forward.3
= control target key start
LH: loop header
LB: loop body
LE: loop exit
PB: predicated region body
PF: predicated region fallthrough
CT: control target
= control target key end

     0   :  { %14 = vsyncpa [#allocation6], 0  ;;  %s3499_s0 = inlined_call_operand.vmem [shape: bf16[8,16,128], index: 0, kind: input, shape index: {}]   ;;  %s3500_s1 = inlined_call_operand.hbm [shape: bf16[128,512], index: 1, kind: input, shape index: {}]   ;;  %s3501_s2 = inlined_call_operand.hbm [shape: bf16[128,512], index: 2, kind: input, shape index: {}]   ;;  %s3502_s3 = inlined_call_operand.vmem [shape: f32[1,512], index: 3, kind: input, shape index: {}]   ;;  %s3503_s4 = inlined_call_operand.vmem [shape: f32[16,128], index: 4, kind: input, shape index: {}, may-alias: {4,5}]   ;;  %s3504_s5 = inlined_call_operand.vmem [shape: f32[16,128], index: 5, kind: input, shape index: {}, may-alias: {4,5}]   ;;  %s3505_s6 = inlined_call_operand.vmem [shape: bf16[8,16,128], index: 6, kind: output, shape index: {0}]   ;;  %s3506_s7 = inlined_call_operand.vmem [shape: f32[16,128], index: 7, kind: output, shape index: {1}]   ;;  %s3507_s8 = inlined_call_operand.vmem [shape: f32[16,128], index: 8, kind: output, shape index: {2}]  }
   0x1   :  { %15 = vsyncpa [#allocation8], 0  ;;  %s2678_s27 = smov [#allocation5]   ;;  %s2630_s9 = scalar_lea.hbm %s3500_s1, 4096 }
   0x2   :  { %s23_s28 = sshll.u32 %s2678_s27, 4  ;;  %p2631_p0 = scmp.ne.s32.totalorder %s3500_s1, %s2630_s9  ;;  %s24_s28 = int_to_ptr.vmem [resolvable:$true] %s23_s28 }
   0x3   :  { %p2634_p1 = scmp.lt.u32.totalorder %s2630_s9, %s3500_s1 }
   0x5   :  { %p2636_p2 = pnand %p2634_p1, %p2631_p0 }
   0x7   :  { %2639 = shalt.err (!%p2636_p2)
}
   0x8   :  { %s2640_s14 = scalar_lea.vmem %s24_s28, 4096  ;;  %p2645_p4 = scmp.lt.s32.totalorder %s24_s28, %s24_s28 }
   0x9   :  { %p2641_p3 = scmp.ne.s32.totalorder %s24_s28, %s2640_s14  ;;  %p2646_p5 = scmp.lt.s32.totalorder %s2640_s14, %s2640_s14 }
   0xb   :  { %p2647_p6 = por %p2646_p5, %p2645_p4 }
   0xd   :  { %p2648_p7 = pnand %p2647_p6, %p2641_p3 }
   0xf   :  { %2651 = shalt.err (!%p2648_p7)
}
  0x10   :  { %s2679_s15 = smov 256   ;;  %s2680_s16 = smov 16  }
  0x11   :  { %29 = dma.hbm_to_vmem [thread:$0]  %s3500_s1, 4096, %s24_s28, [#allocation6], %s2679_s15, %s2679_s15, %s2680_s16  }
  0x12   :  { %s2681_s19 = smov [#allocation7]   ;;  %s2652_s23 = scalar_lea.hbm %s3501_s2, 4096 }
  0x13   :  { %s35_s20 = sshll.u32 %s2681_s19, 4  ;;  %p2653_p8 = scmp.ne.s32.totalorder %s3501_s2, %s2652_s23  ;;  %s36_s20 = int_to_ptr.vmem [resolvable:$true] %s35_s20 }
  0x14   :  { %p2656_p9 = scmp.lt.u32.totalorder %s2652_s23, %s3501_s2 }
  0x16   :  { %p2658_p10 = pnand %p2656_p9, %p2653_p8 }
  0x18   :  { %2661 = shalt.err (!%p2658_p10)
}
  0x19   :  { %s2662_s29 = scalar_lea.vmem %s36_s20, 4096  ;;  %p2667_p12 = scmp.lt.s32.totalorder %s36_s20, %s36_s20 }
  0x1a   :  { %p2663_p11 = scmp.ne.s32.totalorder %s36_s20, %s2662_s29  ;;  %p2668_p13 = scmp.lt.s32.totalorder %s2662_s29, %s2662_s29 }
  0x1c   :  { %p2669_p0 = por %p2668_p13, %p2667_p12 }
  0x1e   :  { %p2670_p1 = pnand %p2669_p0, %p2663_p11 }
  0x20   :  { %2673 = shalt.err (!%p2670_p1)
}
  0x21   :  { %41 = dma.hbm_to_vmem [thread:$0]  %s3501_s2, 4096, %s36_s20, [#allocation8], %s2679_s15, %s2679_s15, %s2680_s16  }
  0x22   :  { %2674 = dma.done.wait [#allocation6], 4096  }
  0x23   :  { %2675 = vsyncadd [#allocation6], 4294963200 }
  0x24   :  { %2676 = dma.done.wait [#allocation8], 4096  }
  0x25   :  { %2677 = vsyncadd [#allocation8], 4294963200  ;;  %v3508_v0 = vmov 0   ;;  %v2350_v1 = vld [vmem:[#allocation5 + $0x4] ss:$16 sps:$4 sm:$0xff]   ;;  %v2402_v43 = vld [vmem:[%s3499_s0 + $0x8] sm:$0xff]  }
  0x26   :  { %378 = vmatprep.mubr.bf16.mxu0 %v3508_v0  ;;  %491 = vmatprep.mubr.bf16.mxu1 %v3508_v0  ;;  %v2352_v2 = vld [vmem:[#allocation5 + $0xc] ss:$16 sps:$4 sm:$0xff]   ;;  %v2354_v3 = vld [vmem:[#allocation5] ss:$16 sps:$4 sm:$0xff]   ;;  %v2355_v4 = vld [vmem:[#allocation5 + $0x8] ss:$16 sps:$4 sm:$0xff]  }
  0x27   :  { %346 = vmatprep.subr.bf16.mxu0 %v2350_v1  ;;  %459 = vmatprep.subr.bf16.mxu1 %v2352_v2  ;;  %v2356_v5 = vld [vmem:[#allocation5 + $0x24] ss:$16 sps:$4 sm:$0xff]   ;;  %v2358_v6 = vld [vmem:[#allocation5 + $0x2c] ss:$16 sps:$4 sm:$0xff]   ;;  %v2360_v7 = vld [vmem:[#allocation5 + $0x20] ss:$16 sps:$4 sm:$0xff]  }
  0x28   :  { %347 = vmatpush1.bf16.msra.mxu0 %v2354_v3  ;;  %460 = vmatpush1.bf16.msra.mxu1 %v2355_v4  ;;  %v2361_v8 = vld [vmem:[#allocation5 + $0x28] ss:$16 sps:$4 sm:$0xff]   ;;  %v2362_v9 = vld [vmem:[#allocation5 + $0x44] ss:$16 sps:$4 sm:$0xff]   ;;  %v2364_v10 = vld [vmem:[#allocation5 + $0x4c] ss:$16 sps:$4 sm:$0xff]  }
  0x29   :  { %348 = vmatprep.subr.bf16.mxu0 %v2356_v5  ;;  %461 = vmatprep.subr.bf16.mxu1 %v2358_v6  ;;  %v2366_v11 = vld [vmem:[#allocation5 + $0x40] ss:$16 sps:$4 sm:$0xff]   ;;  %v2367_v12 = vld [vmem:[#allocation5 + $0x48] ss:$16 sps:$4 sm:$0xff]   ;;  %v2368_v13 = vld [vmem:[#allocation5 + $0x64] ss:$16 sps:$4 sm:$0xff]  }
  0x2a   :  { %v2370_v14 = vld [vmem:[#allocation5 + $0x6c] ss:$16 sps:$4 sm:$0xff]   ;;  %v2372_v15 = vld [vmem:[#allocation5 + $0x60] ss:$16 sps:$4 sm:$0xff]   ;;  %v2373_v16 = vld [vmem:[#allocation5 + $0x68] ss:$16 sps:$4 sm:$0xff]  }
  0x2b   :  { %v2374_v17 = vld [vmem:[#allocation5 + $0x84] ss:$16 sps:$4 sm:$0xff]   ;;  %v2376_v18 = vld [vmem:[#allocation5 + $0x8c] ss:$16 sps:$4 sm:$0xff]   ;;  %v2378_v19 = vld [vmem:[#allocation5 + $0x80] ss:$16 sps:$4 sm:$0xff]  }
  0x2c   :  { %349 = vmatpush1.bf16.msra.mxu0 %v2360_v7  ;;  %462 = vmatpush1.bf16.msra.mxu1 %v2361_v8  ;;  %v2379_v20 = vld [vmem:[#allocation5 + $0x88] ss:$16 sps:$4 sm:$0xff]   ;;  %v2380_v21 = vld [vmem:[#allocation5 + $0xa4] ss:$16 sps:$4 sm:$0xff]   ;;  %v2382_v22 = vld [vmem:[#allocation5 + $0xac] ss:$16 sps:$4 sm:$0xff]  }
  0x2d   :  { %350 = vmatprep.subr.bf16.mxu0 %v2362_v9  ;;  %463 = vmatprep.subr.bf16.mxu1 %v2364_v10  ;;  %v2384_v23 = vld [vmem:[#allocation5 + $0xa0] ss:$16 sps:$4 sm:$0xff]   ;;  %v2385_v24 = vld [vmem:[#allocation5 + $0xa8] ss:$16 sps:$4 sm:$0xff]   ;;  %v2386_v25 = vld [vmem:[#allocation5 + $0xc4] ss:$16 sps:$4 sm:$0xff]  }
  0x2e   :  { %v2388_v26 = vld [vmem:[#allocation5 + $0xcc] ss:$16 sps:$4 sm:$0xff]   ;;  %v2390_v27 = vld [vmem:[#allocation5 + $0xc0] ss:$16 sps:$4 sm:$0xff]   ;;  %v2391_v28 = vld [vmem:[#allocation5 + $0xc8] ss:$16 sps:$4 sm:$0xff]  }
  0x2f   :  { %v2392_v29 = vld [vmem:[#allocation5 + $0xe4] ss:$16 sps:$4 sm:$0xff]   ;;  %v2394_v30 = vld [vmem:[#allocation5 + $0xec] ss:$16 sps:$4 sm:$0xff]   ;;  %v2396_v31 = vld [vmem:[#allocation5 + $0xe0] ss:$16 sps:$4 sm:$0xff]  }
  0x30   :  { %351 = vmatpush1.bf16.msra.mxu0 %v2366_v11  ;;  %464 = vmatpush1.bf16.msra.mxu1 %v2367_v12  ;;  %v2397_v32 = vld [vmem:[#allocation5 + $0xe8] ss:$16 sps:$4 sm:$0xff]   ;;  %v2754_v33 = vld [vmem:[#allocation7 + $0x4] ss:$16 sps:$4 sm:$0xff]   ;;  %v2756_v34 = vld [vmem:[#allocation7 + $0xc] ss:$16 sps:$4 sm:$0xff]  }
  0x31   :  { %352 = vmatprep.subr.bf16.mxu0 %v2368_v13  ;;  %465 = vmatprep.subr.bf16.mxu1 %v2370_v14  ;;  %v2398_v35 = vld [vmem:[%s3499_s0] sm:$0xff]   ;;  %v2767_v38 = vld [vmem:[#allocation7 + $0x8] ss:$16 sps:$4 sm:$0xff]   ;;  %v2769_v39 = vld [vmem:[#allocation7 + $0x2c] ss:$16 sps:$4 sm:$0xff]   ;;  %v118_v13 = vlaneseq }
  0x32   :  { %v2761_v36 = vld [vmem:[#allocation7] ss:$16 sps:$4 sm:$0xff]   ;;  %v2764_v37 = vld [vmem:[#allocation7 + $0x24] ss:$16 sps:$4 sm:$0xff]   ;;  %v2780_v42 = vld [vmem:[#allocation7 + $0x28] ss:$16 sps:$4 sm:$0xff]  }
  0x33   :  { %v2773_v40 = vld [vmem:[#allocation7 + $0x20] ss:$16 sps:$4 sm:$0xff]   ;;  %v2777_v41 = vld [vmem:[#allocation7 + $0x44] ss:$16 sps:$4 sm:$0xff]   ;;  %v2792_v46 = vld [vmem:[#allocation7 + $0x4c] ss:$16 sps:$4 sm:$0xff]  }
  0x34   :  { %353 = vmatpush1.bf16.msra.mxu0 %v2372_v15  ;;  %466 = vmatpush1.bf16.msra.mxu1 %v2373_v16  ;;  %v2787_v44 = vld [vmem:[#allocation7 + $0x40] ss:$16 sps:$4 sm:$0xff]   ;;  %v2789_v45 = vld [vmem:[#allocation7 + $0x64] ss:$16 sps:$4 sm:$0xff]   ;;  %v2795_v47 = vld [vmem:[#allocation7 + $0x48] ss:$16 sps:$4 sm:$0xff]  }
  0x35   :  { %354 = vmatprep.subr.bf16.mxu0 %v2374_v17  ;;  %467 = vmatprep.subr.bf16.mxu1 %v2376_v18  ;;  %v2797_v48 = vld [vmem:[#allocation7 + $0x6c] ss:$16 sps:$4 sm:$0xff]   ;;  %v2802_v49 = vld [vmem:[#allocation7 + $0x60] ss:$16 sps:$4 sm:$0xff]   ;;  %v2805_v50 = vld [vmem:[#allocation7 + $0x84] ss:$16 sps:$4 sm:$0xff]  }
  0x36   :  { %v2809_v51 = vld [vmem:[#allocation7 + $0x68] ss:$16 sps:$4 sm:$0xff]   ;;  %v2408_v52 = vld [vmem:[%s3499_s0 + $0x10] sm:$0xff]   ;;  %v2818_v54 = vld [vmem:[#allocation7 + $0x8c] ss:$16 sps:$4 sm:$0xff]   ;;  %v119_v14 = vshrl.u32 %v118_v13, 7 }
  0x37   :  { %v2815_v53 = vld [vmem:[#allocation7 + $0x80] ss:$16 sps:$4 sm:$0xff]   ;;  %v2821_v55 = vld [vmem:[#allocation7 + $0xa4] ss:$16 sps:$4 sm:$0xff]   ;;  %v2824_v56 = vld [vmem:[#allocation7 + $0x88] ss:$16 sps:$4 sm:$0xff]  }
  0x38   :  { %355 = vmatpush1.bf16.msra.mxu0 %v2378_v19  ;;  %468 = vmatpush1.bf16.msra.mxu1 %v2379_v20  ;;  %v2826_v57 = vld [vmem:[#allocation7 + $0xac] ss:$16 sps:$4 sm:$0xff]   ;;  %v2831_v58 = vld [vmem:[#allocation7 + $0xa0] ss:$16 sps:$4 sm:$0xff]   ;;  %v2835_v59 = vld [vmem:[#allocation7 + $0xc4] ss:$16 sps:$4 sm:$0xff]  }
  0x39   :  { %356 = vmatprep.subr.bf16.mxu0 %v2380_v21  ;;  %469 = vmatprep.subr.bf16.mxu1 %v2382_v22  ;;  %v2838_v60 = vld [vmem:[#allocation7 + $0xa8] ss:$16 sps:$4 sm:$0xff]   ;;  %v2845_v62 = vld [vmem:[#allocation7 + $0xc0] ss:$16 sps:$4 sm:$0xff]   ;;  %v2847_v63 = vld [vmem:[#allocation7 + $0xcc] ss:$16 sps:$4 sm:$0xff]  }
  0x3a   :  { %v2415_v61 = vld [vmem:[%s3499_s0 + $0x18] sm:$0xff]   ;;  %v2851_v1 = vld [vmem:[#allocation7 + $0xe4] ss:$16 sps:$4 sm:$0xff]   ;;  %v2861_v4 = vld [vmem:[#allocation7 + $0xe0] ss:$16 sps:$4 sm:$0xff]   ;;  %v128_v15 = vsub.s32 2, %v119_v14 }
  0x3b   :  { %v2853_v2 = vld [vmem:[#allocation7 + $0xc8] ss:$16 sps:$4 sm:$0xff]   ;;  %v2855_v3 = vld [vmem:[#allocation7 + $0xec] ss:$16 sps:$4 sm:$0xff]   ;;  %v2422_v6 = vld [vmem:[%s3499_s0 + $0x20] sm:$0xff]   ;;  %v132_v16 = vsub.s32 3, %v119_v14 }
  0x3c   :  { %357 = vmatpush1.bf16.msra.mxu0 %v2384_v23  ;;  %470 = vmatpush1.bf16.msra.mxu1 %v2385_v24  ;;  %v2865_v5 = vld [vmem:[#allocation7 + $0xe8] ss:$16 sps:$4 sm:$0xff]   ;;  %v2436_v8 = vld [vmem:[%s3499_s0 + $0x30] sm:$0xff]   ;;  %v60_v10 = vld [vmem:[%s3503_s4] sm:$0xff]  ;;  %v120_v17 = vsub.s32 0, %v119_v14  ;;  %v124_v19 = vsub.s32 1, %v119_v14 }
  0x3d   :  { %358 = vmatprep.subr.bf16.mxu0 %v2386_v25  ;;  %471 = vmatprep.subr.bf16.mxu1 %v2388_v26  ;;  %v2429_v7 = vld [vmem:[%s3499_s0 + $0x28] sm:$0xff]   ;;  %v2444_v9 = vld [vmem:[%s3499_s0 + $0x38] sm:$0xff]   ;;  %v116_v18 = vld [vmem:[%s3502_s3] sm:$0xf] }
  0x3e   :  { %v61_v11 = vld [vmem:[%s3503_s4 + $0x8] sm:$0xff]  ;;  %v2935_v20 = vrot.slane %v116_v18, %v128_v15  ;;  %v2937_v21 = vrot.slane %v116_v18, %v132_v16  ;;  %v2939_v22 = vrot.slane %v116_v18, %v120_v17  ;;  %v2941_v24 = vrot.slane %v116_v18, %v124_v19 }
  0x3f   :  { %v687_v12 = vpack.c.bf16 %v61_v11, %v60_v10 }
  0x40   :  { %359 = vmatpush1.bf16.msra.mxu0 %v2390_v27  ;;  %472 = vmatpush1.bf16.msra.mxu1 %v2391_v28 }
  0x41   :  { %360 = vmatprep.subr.bf16.mxu0 %v2392_v29  ;;  %473 = vmatprep.subr.bf16.mxu1 %v2394_v30 }
  0x44   :  { %361 = vmatpush1.bf16.msra.mxu0 %v2396_v31  ;;  %474 = vmatpush1.bf16.msra.mxu1 %v2397_v32 }
  0x45   :  { %848 = vmatprep.subr.bf16.mxu0 %v2754_v33  ;;  %891 = vmatprep.subr.bf16.mxu1 %v2756_v34 }
  0x47   :  { %379 = vmatmul.mubr.bf16.vlgmr.msra.gmra.mrb[0].mxu0 %v2398_v35  ;;  %492 = vmatmul.mubr.bf16.vlgmr.msra.gmra.mrb[0].mxu1 %v2398_v35 }
  0x48   :  { %849 = vmatpush1.bf16.msra.mxu0 %v2761_v36  ;;  %388 = vmatprep.mubr.bf16.mxu0 %v3508_v0 }
  0x49   :  { %501 = vmatprep.mubr.bf16.mxu1 %v3508_v0  ;;  %850 = vmatprep.subr.bf16.mxu0 %v2764_v37 }
  0x4a   :  { %892 = vmatpush1.bf16.msra.mxu1 %v2767_v38 }
  0x4b   :  { %893 = vmatprep.subr.bf16.mxu1 %v2769_v39 }
  0x4c   :  { %851 = vmatpush1.bf16.msra.mxu0 %v2773_v40 }
  0x4d   :  { %852 = vmatprep.subr.bf16.mxu0 %v2777_v41 }
  0x4e   :  { %894 = vmatpush1.bf16.msra.mxu1 %v2780_v42 }
  0x4f   :  { %389 = vmatmul.mubr.bf16.gmra.mrb[4].mxu0 %v2402_v43  ;;  %502 = vmatmul.mubr.bf16.gmra.mrb[4].mxu1 %v2402_v43 }
  0x50   :  { %398 = vmatprep.mubr.bf16.mxu0 %v3508_v0  ;;  %511 = vmatprep.mubr.bf16.mxu1 %v3508_v0 }
  0x51   :  { %853 = vmatpush1.bf16.msra.mxu0 %v2787_v44  ;;  %895 = vmatprep.subr.bf16.mxu1 %v2792_v46 }
  0x52   :  { %854 = vmatprep.subr.bf16.mxu0 %v2789_v45  ;;  %896 = vmatpush1.bf16.msra.mxu1 %v2795_v47 }
  0x53   :  { %897 = vmatprep.subr.bf16.mxu1 %v2797_v48 }
  0x55   :  { %855 = vmatpush1.bf16.msra.mxu0 %v2802_v49 }
  0x56   :  { %856 = vmatprep.subr.bf16.mxu0 %v2805_v50  ;;  %898 = vmatpush1.bf16.msra.mxu1 %v2809_v51 }
  0x57   :  { %399 = vmatmul.mubr.bf16.gmra.mrb[8].mxu0 %v2408_v52  ;;  %512 = vmatmul.mubr.bf16.gmra.mrb[8].mxu1 %v2408_v52 }
  0x58   :  { %408 = vmatprep.mubr.bf16.mxu0 %v3508_v0  ;;  %521 = vmatprep.mubr.bf16.mxu1 %v3508_v0 }
  0x59   :  { %857 = vmatpush1.bf16.msra.mxu0 %v2815_v53  ;;  %899 = vmatprep.subr.bf16.mxu1 %v2818_v54 }
  0x5a   :  { %858 = vmatprep.subr.bf16.mxu0 %v2821_v55  ;;  %900 = vmatpush1.bf16.msra.mxu1 %v2824_v56 }
  0x5b   :  { %901 = vmatprep.subr.bf16.mxu1 %v2826_v57 }
  0x5d   :  { %859 = vmatpush1.bf16.msra.mxu0 %v2831_v58 }
  0x5e   :  { %860 = vmatprep.subr.bf16.mxu0 %v2835_v59  ;;  %902 = vmatpush1.bf16.msra.mxu1 %v2838_v60 }
  0x5f   :  { %409 = vmatmul.mubr.bf16.gmra.mrb[12].mxu0 %v2415_v61  ;;  %522 = vmatmul.mubr.bf16.gmra.mrb[12].mxu1 %v2415_v61 }
  0x60   :  { %418 = vmatprep.mubr.bf16.mxu0 %v3508_v0  ;;  %531 = vmatprep.mubr.bf16.mxu1 %v3508_v0 }
  0x61   :  { %861 = vmatpush1.bf16.msra.mxu0 %v2845_v62  ;;  %903 = vmatprep.subr.bf16.mxu1 %v2847_v63 }
  0x62   :  { %862 = vmatprep.subr.bf16.mxu0 %v2851_v1  ;;  %904 = vmatpush1.bf16.msra.mxu1 %v2853_v2 }
  0x63   :  { %905 = vmatprep.subr.bf16.mxu1 %v2855_v3 }
  0x65   :  { %863 = vmatpush1.bf16.msra.mxu0 %v2861_v4 }
  0x66   :  { %906 = vmatpush1.bf16.msra.mxu1 %v2865_v5  ;;  %1008 = vmatprep.subr.bf16.mxu0 %v2754_v33 }
  0x67   :  { %419 = vmatmul.mubr.bf16.gmra.mrb[16].mxu0 %v2422_v6  ;;  %532 = vmatmul.mubr.bf16.gmra.mrb[16].mxu1 %v2422_v6 }
  0x68   :  { %428 = vmatprep.mubr.bf16.mxu0 %v3508_v0  ;;  %541 = vmatprep.mubr.bf16.mxu1 %v3508_v0 }
  0x69   :  { %1051 = vmatprep.subr.bf16.mxu1 %v2756_v34 }
  0x6f   :  { %429 = vmatmul.mubr.bf16.gmra.mrb[20].mxu0 %v2429_v7  ;;  %542 = vmatmul.mubr.bf16.gmra.mrb[20].mxu1 %v2429_v7 }
  0x70   :  { %438 = vmatprep.mubr.bf16.mxu0 %v3508_v0  ;;  %551 = vmatprep.mubr.bf16.mxu1 %v3508_v0 }
  0x77   :  { %439 = vmatmul.mubr.bf16.gmra.mrb[24].mxu0 %v2436_v8  ;;  %552 = vmatmul.mubr.bf16.gmra.mrb[24].mxu1 %v2436_v8 }
  0x78   :  { %448 = vmatprep.mubr.bf16.mxu0 %v3508_v0  ;;  %561 = vmatprep.mubr.bf16.mxu1 %v3508_v0 }
  0x7f   :  { %449 = vmatmul.mubr.bf16.gmra.mrb[28].mxu0 %v2444_v9  ;;  %562 = vmatmul.mubr.bf16.gmra.mrb[28].mxu1 %v2444_v9 }
  0x80   :  { %880 = vmatprep.mubr.bf16.mxu0 %v3508_v0  ;;  %923 = vmatprep.mubr.bf16.mxu1 %v3508_v0 }
  0x87   :  { %881 = vmatmul.mubr.bf16.vlgmr.msra.gmra.mrb[32].mxu0 %v687_v12  ;;  %924 = vmatmul.mubr.bf16.vlgmr.msra.gmra.mrb[32].mxu1 %v687_v12 }
  0x88   :  { %1009 = vmatpush1.bf16.msra.mxu0 %v2761_v36  ;;  %1052 = vmatpush1.bf16.msra.mxu1 %v2767_v38 }
  0x89   :  { %1010 = vmatprep.subr.bf16.mxu0 %v2764_v37  ;;  %1053 = vmatprep.subr.bf16.mxu1 %v2769_v39 }
  0x8a   :  { %1040 = vmatprep.mubr.bf16.mxu0 %v3508_v0  ;;  %1083 = vmatprep.mubr.bf16.mxu1 %v3508_v0 }
  0x8c   :  { %1011 = vmatpush1.bf16.msra.mxu0 %v2773_v40  ;;  %1054 = vmatpush1.bf16.msra.mxu1 %v2780_v42 }
  0x8d   :  { %1012 = vmatprep.subr.bf16.mxu0 %v2777_v41  ;;  %1055 = vmatprep.subr.bf16.mxu1 %v2792_v46 }
  0x90   :  { %1013 = vmatpush1.bf16.msra.mxu0 %v2787_v44  ;;  %1056 = vmatpush1.bf16.msra.mxu1 %v2795_v47 }
  0x91   :  { %1014 = vmatprep.subr.bf16.mxu0 %v2789_v45  ;;  %1057 = vmatprep.subr.bf16.mxu1 %v2797_v48 }
  0x94   :  { %1015 = vmatpush1.bf16.msra.mxu0 %v2802_v49  ;;  %1058 = vmatpush1.bf16.msra.mxu1 %v2809_v51 }
  0x95   :  { %1016 = vmatprep.subr.bf16.mxu0 %v2805_v50  ;;  %1059 = vmatprep.subr.bf16.mxu1 %v2818_v54 }
  0x98   :  { %1017 = vmatpush1.bf16.msra.mxu0 %v2815_v53  ;;  %1060 = vmatpush1.bf16.msra.mxu1 %v2824_v56 }
  0x99   :  { %1018 = vmatprep.subr.bf16.mxu0 %v2821_v55  ;;  %1061 = vmatprep.subr.bf16.mxu1 %v2826_v57 }
  0x9c   :  { %1019 = vmatpush1.bf16.msra.mxu0 %v2831_v58  ;;  %1062 = vmatpush1.bf16.msra.mxu1 %v2838_v60 }
  0x9d   :  { %1020 = vmatprep.subr.bf16.mxu0 %v2835_v59  ;;  %1063 = vmatprep.subr.bf16.mxu1 %v2847_v63 }
  0xa0   :  { %1021 = vmatpush1.bf16.msra.mxu0 %v2845_v62  ;;  %1064 = vmatpush1.bf16.msra.mxu1 %v2853_v2 }
  0xa1   :  { %1022 = vmatprep.subr.bf16.mxu0 %v2851_v1  ;;  %1065 = vmatprep.subr.bf16.mxu1 %v2855_v3 }
  0xa4   :  { %1023 = vmatpush1.bf16.msra.mxu0 %v2861_v4  ;;  %1066 = vmatpush1.bf16.msra.mxu1 %v2865_v5 }
  0xa5   :  { %1169 = vmatprep.subr.bf16.mxu0 %v2754_v33  ;;  %1212 = vmatprep.subr.bf16.mxu1 %v2756_v34 }
 0x11a   :  { %v380_v23 = vpop.f32.mrb[0].mxu0  ;;  %v493_v25 = vpop.f32.mrb[0].mxu1 }
 0x11b   :  { %v382_v26 = vpop.f32.mrb[1].mxu0  ;;  %v494_v27 = vadd.f32 %v493_v25, %v2935_v20  ;;  %v495_v28 = vpop.f32.mrb[1].mxu1  ;;  %v381_v32 = vadd.f32 %v380_v23, %v2939_v22 }
 0x11c   :  { %v384_v29 = vpop.f32.mrb[2].mxu0  ;;  %v496_v30 = vadd.f32 %v495_v28, %v2937_v21  ;;  %v497_v31 = vpop.f32.mrb[2].mxu1  ;;  %v383_v6 = vadd.f32 %v382_v26, %v2941_v24 }
 0x11d   :  { %v385_v35 = vadd.f32 %v384_v29, %v2939_v22  ;;  %v386_v43 = vpop.f32.mrb[3].mxu0  ;;  %v498_v52 = vadd.f32 %v497_v31, %v2935_v20  ;;  %v499_v61 = vpop.f32.mrb[3].mxu1 }
 0x11e   :  { %v387_v7 = vadd.f32 %v386_v43, %v2941_v24  ;;  %v500_v8 = vadd.f32 %v499_v61, %v2937_v21 }
 0x11f   :  { %v2951_v9 = vpack.c.bf16 %v385_v35, %v381_v32  ;;  %v2953_v10 = vpack.c.bf16 %v498_v52, %v494_v27 }
 0x120   :  { %v2955_v11 = vpack.c.bf16 %v387_v7, %v383_v6  ;;  %v2957_v12 = vpack.c.bf16 %v500_v8, %v496_v30 }
 0x122   :  { %v390_v13 = vpop.f32.mrb[4].mxu0  ;;  %v503_v14 = vpop.f32.mrb[4].mxu1 }
 0x123   :  { %v391_v15 = vadd.f32 %v390_v13, %v2939_v22  ;;  %v392_v16 = vpop.f32.mrb[5].mxu0  ;;  %v504_v17 = vadd.f32 %v503_v14, %v2935_v20  ;;  %v505_v18 = vpop.f32.mrb[5].mxu1 }
 0x124   :  { %v393_v19 = vadd.f32 %v392_v16, %v2941_v24  ;;  %v394_v23 = vpop.f32.mrb[6].mxu0  ;;  %v506_v25 = vadd.f32 %v505_v18, %v2937_v21  ;;  %v507_v26 = vpop.f32.mrb[6].mxu1 }
 0x125   :  { %v395_v27 = vadd.f32 %v394_v23, %v2939_v22  ;;  %v396_v28 = vpop.f32.mrb[7].mxu0  ;;  %v508_v29 = vadd.f32 %v507_v26, %v2935_v20  ;;  %v509_v30 = vpop.f32.mrb[7].mxu1 }
 0x126   :  { %v397_v31 = vadd.f32 %v396_v28, %v2941_v24  ;;  %v510_v32 = vadd.f32 %v509_v30, %v2937_v21 }
 0x127   :  { %v2967_v35 = vpack.c.bf16 %v395_v27, %v391_v15  ;;  %v2969_v43 = vpack.c.bf16 %v508_v29, %v504_v17 }
 0x128   :  { %v2971_v52 = vpack.c.bf16 %v397_v31, %v393_v19  ;;  %v2973_v61 = vpack.c.bf16 %v510_v32, %v506_v25 }
 0x12a   :  { %3534 = vst [vmem:[#allocation11_spill] sm:$0xff] %v2973_v61  ;;  %v400_v6 = vpop.f32.mrb[8].mxu0  ;;  %v513_v7 = vpop.f32.mrb[8].mxu1 }
 0x12b   :  { %v401_v8 = vadd.f32 %v400_v6, %v2939_v22  ;;  %v402_v13 = vpop.f32.mrb[9].mxu0  ;;  %v514_v14 = vadd.f32 %v513_v7, %v2935_v20  ;;  %v515_v16 = vpop.f32.mrb[9].mxu1 }
 0x12c   :  { %v403_v18 = vadd.f32 %v402_v13, %v2941_v24  ;;  %v404_v23 = vpop.f32.mrb[10].mxu0  ;;  %v516_v15 = vadd.f32 %v515_v16, %v2937_v21  ;;  %v517_v26 = vpop.f32.mrb[10].mxu1 }
 0x12d   :  { %v405_v17 = vadd.f32 %v404_v23, %v2939_v22  ;;  %v406_v19 = vpop.f32.mrb[11].mxu0  ;;  %v518_v25 = vadd.f32 %v517_v26, %v2935_v20  ;;  %v519_v27 = vpop.f32.mrb[11].mxu1 }
 0x12e   :  { %v407_v28 = vadd.f32 %v406_v19, %v2941_v24  ;;  %v520_v29 = vadd.f32 %v519_v27, %v2937_v21 }
 0x12f   :  { %v2983_v30 = vpack.c.bf16 %v405_v17, %v401_v8  ;;  %v2985_v31 = vpack.c.bf16 %v518_v25, %v514_v14 }
 0x130   :  { %v2987_v32 = vpack.c.bf16 %v407_v28, %v403_v18  ;;  %v2989_v6 = vpack.c.bf16 %v520_v29, %v516_v15 }
 0x131   :  { %3535 = vst [vmem:[#allocation12_spill] sm:$0xff] %v2983_v30  ;;  %3536 = vst [vmem:[#allocation13_spill] sm:$0xff] %v2985_v31 }
 0x132   :  { %3537 = vst [vmem:[#allocation14_spill] sm:$0xff] %v2987_v32  ;;  %3538 = vst [vmem:[#allocation15_spill] sm:$0xff] %v2989_v6  ;;  %v410_v7 = vpop.f32.mrb[12].mxu0  ;;  %v523_v13 = vpop.f32.mrb[12].mxu1 }
 0x133   :  { %v411_v16 = vadd.f32 %v410_v7, %v2939_v22  ;;  %v412_v23 = vpop.f32.mrb[13].mxu0  ;;  %v524_v26 = vadd.f32 %v523_v13, %v2935_v20  ;;  %v525_v0 = vpop.f32.mrb[13].mxu1 }
 0x134   :  { %v413_v19 = vadd.f32 %v412_v23, %v2941_v24  ;;  %v414_v61 = vpop.f32.mrb[14].mxu0  ;;  %v526_v8 = vadd.f32 %v525_v0, %v2937_v21  ;;  %v527_v17 = vpop.f32.mrb[14].mxu1 }
 0x135   :  { %v415_v14 = vadd.f32 %v414_v61, %v2939_v22  ;;  %v416_v18 = vpop.f32.mrb[15].mxu0  ;;  %v528_v15 = vadd.f32 %v527_v17, %v2935_v20  ;;  %v529_v25 = vpop.f32.mrb[15].mxu1 }
 0x136   :  { %v417_v27 = vadd.f32 %v416_v18, %v2941_v24  ;;  %v530_v28 = vadd.f32 %v529_v25, %v2937_v21 }
 0x137   :  { %v2999_v29 = vpack.c.bf16 %v415_v14, %v411_v16  ;;  %v3001_v7 = vpack.c.bf16 %v528_v15, %v524_v26 }
 0x138   :  { %v3003_v13 = vpack.c.bf16 %v417_v27, %v413_v19  ;;  %v3005_v23 = vpack.c.bf16 %v530_v28, %v526_v8 }
 0x139   :  { %3539 = vst [vmem:[#allocation16_spill] sm:$0xff] %v2999_v29  ;;  %3540 = vst [vmem:[#allocation17_spill] sm:$0xff] %v3001_v7 }
 0x13a   :  { %3541 = vst [vmem:[#allocation18_spill] sm:$0xff] %v3003_v13  ;;  %3542 = vst [vmem:[#allocation19_spill] sm:$0xff] %v3005_v23  ;;  %v420_v0 = vpop.f32.mrb[16].mxu0  ;;  %v533_v6 = vpop.f32.mrb[16].mxu1 }
 0x13b   :  { %v421_v61 = vadd.f32 %v420_v0, %v2939_v22  ;;  %v422_v32 = vpop.f32.mrb[17].mxu0  ;;  %v534_v17 = vadd.f32 %v533_v6, %v2935_v20  ;;  %v535_v31 = vpop.f32.mrb[17].mxu1 }
 0x13c   :  { %v423_v18 = vadd.f32 %v422_v32, %v2941_v24  ;;  %v424_v30 = vpop.f32.mrb[18].mxu0  ;;  %v536_v16 = vadd.f32 %v535_v31, %v2937_v21  ;;  %v537_v14 = vpop.f32.mrb[18].mxu1 }
 0x13d   :  { %v425_v26 = vadd.f32 %v424_v30, %v2939_v22  ;;  %v426_v19 = vpop.f32.mrb[19].mxu0  ;;  %v538_v8 = vadd.f32 %v537_v14, %v2935_v20  ;;  %v539_v15 = vpop.f32.mrb[19].mxu1 }
 0x13e   :  { %v427_v25 = vadd.f32 %v426_v19, %v2941_v24  ;;  %v540_v27 = vadd.f32 %v539_v15, %v2937_v21 }
 0x13f   :  { %v3015_v28 = vpack.c.bf16 %v425_v26, %v421_v61  ;;  %v3017_v6 = vpack.c.bf16 %v538_v8, %v534_v17 }
 0x140   :  { %v3019_v0 = vpack.c.bf16 %v427_v25, %v423_v18  ;;  %v3021_v32 = vpack.c.bf16 %v540_v27, %v536_v16 }
 0x141   :  { %3543 = vst [vmem:[#allocation20_spill] sm:$0xff] %v3015_v28  ;;  %3544 = vst [vmem:[#allocation21_spill] sm:$0xff] %v3017_v6 }
 0x142   :  { %3545 = vst [vmem:[#allocation22_spill] sm:$0xff] %v3019_v0  ;;  %3546 = vst [vmem:[#allocation23_spill] sm:$0xff] %v3021_v32  ;;  %v430_v31 = vpop.f32.mrb[20].mxu0  ;;  %v543_v23 = vpop.f32.mrb[20].mxu1 }
 0x143   :  { %v431_v30 = vadd.f32 %v430_v31, %v2939_v22  ;;  %v432_v13 = vpop.f32.mrb[21].mxu0  ;;  %v544_v14 = vadd.f32 %v543_v23, %v2935_v20  ;;  %v545_v7 = vpop.f32.mrb[21].mxu1 }
 0x144   :  { %v433_v19 = vadd.f32 %v432_v13, %v2941_v24  ;;  %v434_v29 = vpop.f32.mrb[22].mxu0  ;;  %v546_v61 = vadd.f32 %v545_v7, %v2937_v21  ;;  %v547_v26 = vpop.f32.mrb[22].mxu1 }
 0x145   :  { %v435_v17 = vadd.f32 %v434_v29, %v2939_v22  ;;  %v436_v18 = vpop.f32.mrb[23].mxu0  ;;  %v548_v16 = vadd.f32 %v547_v26, %v2935_v20  ;;  %v549_v8 = vpop.f32.mrb[23].mxu1 }
 0x146   :  { %v437_v15 = vadd.f32 %v436_v18, %v2941_v24  ;;  %v550_v25 = vadd.f32 %v549_v8, %v2937_v21 }
 0x147   :  { %v3031_v27 = vpack.c.bf16 %v435_v17, %v431_v30  ;;  %v3033_v23 = vpack.c.bf16 %v548_v16, %v544_v14 }
 0x148   :  { %v3035_v31 = vpack.c.bf16 %v437_v15, %v433_v19  ;;  %v3037_v13 = vpack.c.bf16 %v550_v25, %v546_v61 }
 0x149   :  { %3547 = vst [vmem:[#allocation24_spill] sm:$0xff] %v3031_v27  ;;  %3548 = vst [vmem:[#allocation25_spill] sm:$0xff] %v3033_v23 }
 0x14a   :  { %3549 = vst [vmem:[#allocation26_spill] sm:$0xff] %v3035_v31  ;;  %3550 = vst [vmem:[#allocation27_spill] sm:$0xff] %v3037_v13  ;;  %v440_v7 = vpop.f32.mrb[24].mxu0  ;;  %v553_v32 = vpop.f32.mrb[24].mxu1 }
 0x14b   :  { %v441_v29 = vadd.f32 %v440_v7, %v2939_v22  ;;  %v442_v0 = vpop.f32.mrb[25].mxu0  ;;  %v554_v26 = vadd.f32 %v553_v32, %v2935_v20  ;;  %v555_v6 = vpop.f32.mrb[25].mxu1 }
 0x14c   :  { %v443_v18 = vadd.f32 %v442_v0, %v2941_v24  ;;  %v444_v28 = vpop.f32.mrb[26].mxu0  ;;  %v556_v30 = vadd.f32 %v555_v6, %v2937_v21  ;;  %v557_v17 = vpop.f32.mrb[26].mxu1 }
 0x14d   :  { %v445_v14 = vadd.f32 %v444_v28, %v2939_v22  ;;  %v446_v19 = vpop.f32.mrb[27].mxu0  ;;  %v558_v61 = vadd.f32 %v557_v17, %v2935_v20  ;;  %v559_v16 = vpop.f32.mrb[27].mxu1 }
 0x14e   :  { %v447_v8 = vadd.f32 %v446_v19, %v2941_v24  ;;  %v560_v15 = vadd.f32 %v559_v16, %v2937_v21 }
 0x14f   :  { %v3047_v25 = vpack.c.bf16 %v445_v14, %v441_v29  ;;  %v3049_v32 = vpack.c.bf16 %v558_v61, %v554_v26 }
 0x150   :  { %v3051_v7 = vpack.c.bf16 %v447_v8, %v443_v18  ;;  %v3053_v0 = vpack.c.bf16 %v560_v15, %v556_v30 }
 0x151   :  { %3551 = vst [vmem:[#allocation28_spill] sm:$0xff] %v3049_v32 }
 0x152   :  { %3552 = vst [vmem:[#allocation29_spill] sm:$0xff] %v3051_v7  ;;  %3553 = vst [vmem:[#allocation30_spill] sm:$0xff] %v3053_v0  ;;  %v450_v6 = vpop.f32.mrb[28].mxu0  ;;  %v563_v13 = vpop.f32.mrb[28].mxu1 }
 0x153   :  { %v451_v28 = vadd.f32 %v450_v6, %v2939_v22  ;;  %v452_v31 = vpop.f32.mrb[29].mxu0  ;;  %v564_v17 = vadd.f32 %v563_v13, %v2935_v20  ;;  %v565_v23 = vpop.f32.mrb[29].mxu1 }
 0x154   :  { %v453_v19 = vadd.f32 %v452_v31, %v2941_v24  ;;  %v454_v27 = vpop.f32.mrb[30].mxu0  ;;  %v566_v29 = vadd.f32 %v565_v23, %v2937_v21  ;;  %v567_v14 = vpop.f32.mrb[30].mxu1  ;;  %v679_v23 = vunpack.c.l.bf16 %v2951_v9 }
 0x155   :  { %v455_v26 = vadd.f32 %v454_v27, %v2939_v22  ;;  %v456_v18 = vpop.f32.mrb[31].mxu0  ;;  %v568_v30 = vadd.f32 %v567_v14, %v2935_v20  ;;  %v569_v61 = vpop.f32.mrb[31].mxu1  ;;  %v681_v22 = vunpack.c.l.bf16 %v2953_v10  ;;  %v680_v20 = vunpack.c.l.bf16 %v2955_v11 }
 0x156   :  { %v457_v16 = vadd.f32 %v456_v18, %v2941_v24  ;;  %v570_v8 = vadd.f32 %v569_v61, %v2937_v21  ;;  %v682_v24 = vunpack.c.l.bf16 %v2957_v12 }
 0x157   :  { %v3063_v15 = vpack.c.bf16 %v455_v26, %v451_v28  ;;  %v3065_v13 = vpack.c.bf16 %v568_v30, %v564_v17  ;;  %v683_v17 = vunpack.c.h.bf16 %v2951_v9 }
 0x158   :  { %v3067_v6 = vpack.c.bf16 %v457_v16, %v453_v19  ;;  %v3069_v31 = vpack.c.bf16 %v570_v8, %v566_v29  ;;  %v685_v19 = vunpack.c.h.bf16 %v2953_v10  ;;  %v684_v16 = vunpack.c.h.bf16 %v2955_v11 }
 0x159   :  { %3554 = vst [vmem:[#allocation31_spill] sm:$0xff] %v3063_v15  ;;  %3555 = vst [vmem:[#allocation32_spill] sm:$0xff] %v3065_v13  ;;  %v686_v8 = vunpack.c.h.bf16 %v2957_v12 }
 0x15a   :  { %3556 = vst [vmem:[#allocation33_spill] sm:$0xff] %v3067_v6  ;;  %3557 = vst [vmem:[#allocation34_spill] sm:$0xff] %v3069_v31  ;;  %v882_v27 = vpop.f32.mrb[32].mxu0  ;;  %v925_v0 = vpop.f32.mrb[32].mxu1 }
 0x15b   :  { %v934_v14 = vadd.f32 %v882_v27, %v679_v23  ;;  %v936_v21 = vadd.f32 %v925_v0, %v681_v22  ;;  %v884_v28 = vpop.f32.mrb[33].mxu0  ;;  %v927_v26 = vpop.f32.mrb[33].mxu1 }
 0x15c   :  { %v935_v29 = vadd.f32 %v884_v28, %v680_v20  ;;  %v937_v18 = vadd.f32 %v927_v26, %v682_v24  ;;  %v886_v30 = vpop.f32.mrb[34].mxu0  ;;  %v929_v61 = vpop.f32.mrb[34].mxu1 }
 0x15d   :  { %v938_v31 = vadd.f32 %v886_v30, %v683_v17  ;;  %v940_v6 = vadd.f32 %v929_v61, %v685_v19  ;;  %v888_v13 = vpop.f32.mrb[35].mxu0  ;;  %v931_v15 = vpop.f32.mrb[35].mxu1  ;;  %v65_v17 = vld [vmem:[%s3504_s5 + $0x8] sm:$0xff] }
 0x15e   :  { %v939_v23 = vadd.f32 %v888_v13, %v684_v16  ;;  %v941_v0 = vadd.f32 %v931_v15, %v686_v8 }
 0x15f   :  { %v942_v22 = vpack.c.bf16 %v938_v31, %v934_v14  ;;  %v944_v27 = vpack.c.bf16 %v940_v6, %v936_v21 }
 0x160   :  { %v943_v7 = vpack.c.bf16 %v939_v23, %v935_v29  ;;  %v945_v9 = vpack.c.bf16 %v941_v0, %v937_v18 }
 0x161   :  { %v2228_v32 = vmul.bf16 3216621497, %v942_v22 }
 0x162   :  { %v2229_v10 = vmul.bf16 3216621497, %v943_v7  ;;  %v2230_v20 = vmul.bf16 3216621497, %v945_v9 }
 0x163   :  { %2454 = vpow.bf16 %v2228_v32  ;;  %v64_v32 = vld [vmem:[%s3504_s5] sm:$0xff] }
 0x164   :  { %2456 = vpow.bf16 %v2229_v10 }
 0x165   :  { %2458 = vpow.bf16 %v2230_v20 }
 0x16e   :  { %v2455_v24 = vpop.eup %2454 }
 0x16f   :  { %v2457_v11 = vpop.eup %2456  ;;  %v950_v28 = vadd.bf16 1065369472, %v2455_v24 }
 0x170   :  { %v957_v12 = vadd.bf16 1065369472, %v2457_v11  ;;  %v2459_v26 = vpop.eup %2458 }
 0x171   :  { %2460 = vrcp.bf16 %v950_v28  ;;  %v965_v13 = vadd.bf16 1065369472, %v2459_v26  ;;  %v1001_v26 = vunpack.c.l.bf16 %v2971_v52 }
 0x172   :  { %2462 = vrcp.bf16 %v957_v12  ;;  %v3558_v12 = vmov 0  }
 0x173   :  { %2464 = vtanh.bf16 %v944_v27 }
 0x174   :  { %2466 = vrcp.bf16 %v965_v13  ;;  %v3559_v13 = vld [vmem:[#allocation11_spill] sm:$0xff] }
 0x17c   :  { %v2461_v15 = vpop.eup %2460 }
 0x17d   :  { %v2463_v31 = vpop.eup %2462  ;;  %v952_v6 = vmul.bf16 1065369472, %v2461_v15  ;;  %v1003_v15 = vunpack.c.l.bf16 %v3559_v13 }
 0x17e   :  { %v2465_v14 = vpop.eup %2464  ;;  %v959_v21 = vmul.bf16 1065369472, %v2463_v31 }
 0x17f   :  { %v972_v7 = vmul.bf16 %v2465_v14, %v952_v6  ;;  %v2467_v0 = vpop.eup %2466 }
 0x180   :  { %v968_v19 = vunpack.c.l.bf16 %v959_v21  ;;  %v969_v29 = vunpack.c.h.bf16 %v959_v21  ;;  %v967_v22 = vmul.bf16 1065369472, %v2467_v0 }
 0x181   :  { %v973_v18 = vunpack.c.l.bf16 %v972_v7  ;;  %v974_v30 = vunpack.c.h.bf16 %v972_v7  ;;  %v1004_v7 = vunpack.c.h.bf16 %v2967_v35 }
 0x182   :  { %v970_v61 = vmul.f32 %v968_v19, %v64_v32  ;;  %v971_v16 = vmul.f32 %v969_v29, %v65_v17  ;;  %v979_v27 = vunpack.c.l.bf16 %v967_v22  ;;  %v980_v10 = vunpack.c.h.bf16 %v967_v22 }
 0x183   :  { %v1005_v29 = vunpack.c.h.bf16 %v2971_v52 }
 0x184   :  { %v3085_v8 = vadd.f32 %v973_v18, %v970_v61  ;;  %v3087_v23 = vadd.f32 %v974_v30, %v971_v16  ;;  %v1007_v18 = vunpack.c.h.bf16 %v3559_v13 }
 0x186   :  { %2468 = vtanh.f32 %v3085_v8 }
 0x187   :  { %2470 = vtanh.f32 %v3087_v23 }
 0x190   :  { %v2469_v9 = vpop.eup %2468 }
 0x191   :  { %v2471_v20 = vpop.eup %2470  ;;  %v981_v24 = vmul.f32 %v2469_v9, %v979_v27 }
 0x192   :  { %v982_v11 = vmul.f32 %v2471_v20, %v980_v10 }
 0x194   :  { %v983_v28 = vpack.c.bf16 %v982_v11, %v981_v24 }
 0x196   :  { %2302 = vst [vmem:[%s3505_s6] sm:$0xff] %v983_v28   ;;  %1041 = vmatmul.mubr.bf16.vlgmr.msra.gmra.mrb[36].mxu0 %v983_v28  ;;  %1084 = vmatmul.mubr.bf16.vlgmr.msra.gmra.mrb[36].mxu1 %v983_v28 }
 0x197   :  { %1170 = vmatpush1.bf16.msra.mxu0 %v2761_v36  ;;  %1213 = vmatpush1.bf16.msra.mxu1 %v2767_v38  ;;  %v1000_v36 = vunpack.c.l.bf16 %v2967_v35 }
 0x198   :  { %1171 = vmatprep.subr.bf16.mxu0 %v2764_v37  ;;  %1214 = vmatprep.subr.bf16.mxu1 %v2769_v39  ;;  %v1002_v37 = vunpack.c.l.bf16 %v2969_v43 }
 0x199   :  { %1201 = vmatprep.mubr.bf16.mxu0 %v3558_v12  ;;  %1244 = vmatprep.mubr.bf16.mxu1 %v3558_v12 }
 0x19b   :  { %1172 = vmatpush1.bf16.msra.mxu0 %v2773_v40  ;;  %1215 = vmatpush1.bf16.msra.mxu1 %v2780_v42 }
 0x19c   :  { %1173 = vmatprep.subr.bf16.mxu0 %v2777_v41  ;;  %1216 = vmatprep.subr.bf16.mxu1 %v2792_v46 }
 0x19f   :  { %1174 = vmatpush1.bf16.msra.mxu0 %v2787_v44  ;;  %1217 = vmatpush1.bf16.msra.mxu1 %v2795_v47 }
 0x1a0   :  { %1175 = vmatprep.subr.bf16.mxu0 %v2789_v45  ;;  %1218 = vmatprep.subr.bf16.mxu1 %v2797_v48 }
 0x1a3   :  { %1176 = vmatpush1.bf16.msra.mxu0 %v2802_v49  ;;  %1219 = vmatpush1.bf16.msra.mxu1 %v2809_v51 }
 0x1a4   :  { %1177 = vmatprep.subr.bf16.mxu0 %v2805_v50  ;;  %1220 = vmatprep.subr.bf16.mxu1 %v2818_v54 }
 0x1a7   :  { %1178 = vmatpush1.bf16.msra.mxu0 %v2815_v53  ;;  %1221 = vmatpush1.bf16.msra.mxu1 %v2824_v56 }
 0x1a8   :  { %1179 = vmatprep.subr.bf16.mxu0 %v2821_v55  ;;  %1222 = vmatprep.subr.bf16.mxu1 %v2826_v57 }
 0x1ab   :  { %1180 = vmatpush1.bf16.msra.mxu0 %v2831_v58  ;;  %1223 = vmatpush1.bf16.msra.mxu1 %v2838_v60 }
 0x1ac   :  { %1181 = vmatprep.subr.bf16.mxu0 %v2835_v59  ;;  %1224 = vmatprep.subr.bf16.mxu1 %v2847_v63 }
 0x1af   :  { %1182 = vmatpush1.bf16.msra.mxu0 %v2845_v62  ;;  %1225 = vmatpush1.bf16.msra.mxu1 %v2853_v2 }
 0x1b0   :  { %1183 = vmatprep.subr.bf16.mxu0 %v2851_v1  ;;  %1226 = vmatprep.subr.bf16.mxu1 %v2855_v3 }
 0x1b3   :  { %1184 = vmatpush1.bf16.msra.mxu0 %v2861_v4  ;;  %1227 = vmatpush1.bf16.msra.mxu1 %v2865_v5 }
 0x1b4   :  { %1330 = vmatprep.subr.bf16.mxu0 %v2754_v33  ;;  %1373 = vmatprep.subr.bf16.mxu1 %v2756_v34  ;;  %v1006_v33 = vunpack.c.h.bf16 %v2969_v43 }
 0x269   :  { %v1042_v38 = vpop.f32.mrb[36].mxu0  ;;  %v1085_v39 = vpop.f32.mrb[36].mxu1 }
 0x26a   :  { %v1094_v31 = vadd.f32 %v1042_v38, %v1000_v36  ;;  %v1096_v6 = vadd.f32 %v1085_v39, %v1002_v37  ;;  %v1044_v14 = vpop.f32.mrb[37].mxu0  ;;  %v1087_v21 = vpop.f32.mrb[37].mxu1 }
 0x26b   :  { %v1095_v32 = vadd.f32 %v1044_v14, %v1001_v26  ;;  %v1097_v34 = vadd.f32 %v1087_v21, %v1003_v15  ;;  %v1046_v17 = vpop.f32.mrb[38].mxu0  ;;  %v1089_v19 = vpop.f32.mrb[38].mxu1 }
 0x26c   :  { %v1098_v30 = vadd.f32 %v1046_v17, %v1004_v7  ;;  %v1100_v61 = vadd.f32 %v1089_v19, %v1006_v33  ;;  %v1048_v16 = vpop.f32.mrb[39].mxu0  ;;  %v1091_v0 = vpop.f32.mrb[39].mxu1 }
 0x26d   :  { %v1099_v22 = vadd.f32 %v1048_v16, %v1005_v29  ;;  %v1101_v27 = vadd.f32 %v1091_v0, %v1007_v18 }
 0x26e   :  { %v1102_v9 = vpack.c.bf16 %v1098_v30, %v1094_v31  ;;  %v1104_v10 = vpack.c.bf16 %v1100_v61, %v1096_v6 }
 0x26f   :  { %v1103_v20 = vpack.c.bf16 %v1099_v22, %v1095_v32  ;;  %v1105_v35 = vpack.c.bf16 %v1101_v27, %v1097_v34 }
 0x270   :  { %v2233_v24 = vmul.bf16 3216621497, %v1102_v9 }
 0x271   :  { %v2234_v43 = vmul.bf16 3216621497, %v1103_v20  ;;  %v2235_v11 = vmul.bf16 3216621497, %v1105_v35  ;;  %v3153_v20 = vld [vmem:[#allocation7 + $0x24] ss:$16 sps:$4 sm:$0xff]  }
 0x272   :  { %2472 = vpow.bf16 %v2233_v24  ;;  %v3156_v35 = vld [vmem:[#allocation7 + $0x2c] ss:$16 sps:$4 sm:$0xff]  }
 0x273   :  { %2474 = vpow.bf16 %v2234_v43 }
 0x274   :  { %2476 = vpow.bf16 %v2235_v11 }
 0x27d   :  { %v2473_v28 = vpop.eup %2472 }
 0x27e   :  { %v2475_v52 = vpop.eup %2474  ;;  %v1110_v36 = vadd.bf16 1065369472, %v2473_v28 }
 0x27f   :  { %v1117_v37 = vadd.bf16 1065369472, %v2475_v52  ;;  %v2477_v38 = vpop.eup %2476 }
 0x280   :  { %2478 = vrcp.bf16 %v1110_v36  ;;  %v1125_v39 = vadd.bf16 1065369472, %v2477_v38 }
 0x281   :  { %2480 = vrcp.bf16 %v1117_v37 }
 0x282   :  { %2482 = vtanh.bf16 %v1104_v10 }
 0x283   :  { %2484 = vrcp.bf16 %v1125_v39 }
 0x28b   :  { %v2479_v26 = vpop.eup %2478 }
 0x28c   :  { %v2481_v13 = vpop.eup %2480  ;;  %v1112_v15 = vmul.bf16 1065369472, %v2479_v26 }
 0x28d   :  { %v2483_v31 = vpop.eup %2482  ;;  %v1119_v6 = vmul.bf16 1065369472, %v2481_v13 }
 0x28e   :  { %v1132_v14 = vmul.bf16 %v2483_v31, %v1112_v15  ;;  %v2485_v18 = vpop.eup %2484 }
 0x28f   :  { %v1128_v21 = vunpack.c.l.bf16 %v1119_v6  ;;  %v1129_v7 = vunpack.c.h.bf16 %v1119_v6  ;;  %v1127_v30 = vmul.bf16 1065369472, %v2485_v18 }
 0x290   :  { %v1133_v33 = vunpack.c.l.bf16 %v1132_v14  ;;  %v1134_v32 = vunpack.c.h.bf16 %v1132_v14 }
 0x291   :  { %v1130_v34 = vmul.f32 %v1128_v21, %v3085_v8  ;;  %v1131_v17 = vmul.f32 %v1129_v7, %v3087_v23  ;;  %v1139_v61 = vunpack.c.l.bf16 %v1127_v30  ;;  %v1140_v0 = vunpack.c.h.bf16 %v1127_v30  ;;  %v3147_v8 = vld [vmem:[#allocation7] ss:$16 sps:$4 sm:$0xff]   ;;  %v3150_v23 = vld [vmem:[#allocation7 + $0x8] ss:$16 sps:$4 sm:$0xff]  }
 0x293   :  { %v3138_v19 = vadd.f32 %v1133_v33, %v1130_v34  ;;  %v3140_v29 = vadd.f32 %v1134_v32, %v1131_v17 }
 0x295   :  { %2486 = vtanh.f32 %v3138_v19 }
 0x296   :  { %2488 = vtanh.f32 %v3140_v29 }
 0x29f   :  { %v2487_v16 = vpop.eup %2486 }
 0x2a0   :  { %v2489_v22 = vpop.eup %2488  ;;  %v1141_v27 = vmul.f32 %v2487_v16, %v1139_v61 }
 0x2a1   :  { %v1142_v9 = vmul.f32 %v2489_v22, %v1140_v0 }
 0x2a3   :  { %v1143_v10 = vpack.c.bf16 %v1142_v9, %v1141_v27 }
 0x2a5   :  { %2338 = vst [vmem:[%s3505_s6 + $0x8] sm:$0xff] %v1143_v10   ;;  %1202 = vmatmul.mubr.bf16.vlgmr.msra.gmra.mrb[40].mxu0 %v1143_v10  ;;  %1245 = vmatmul.mubr.bf16.vlgmr.msra.gmra.mrb[40].mxu1 %v1143_v10 }
 0x2a6   :  { %1331 = vmatpush1.bf16.msra.mxu0 %v3147_v8  ;;  %1374 = vmatpush1.bf16.msra.mxu1 %v3150_v23 }
 0x2a7   :  { %1332 = vmatprep.subr.bf16.mxu0 %v3153_v20  ;;  %1375 = vmatprep.subr.bf16.mxu1 %v3156_v35 }
 0x2a8   :  { %1362 = vmatprep.mubr.bf16.mxu0 %v3558_v12  ;;  %1405 = vmatprep.mubr.bf16.mxu1 %v3558_v12 }
 0x2aa   :  { %1333 = vmatpush1.bf16.msra.mxu0 %v2773_v40  ;;  %1376 = vmatpush1.bf16.msra.mxu1 %v2780_v42  ;;  %v3187_v40 = vld [vmem:[#allocation7 + $0x4] ss:$16 sps:$4 sm:$0xff]   ;;  %v3560_v42 = vld [vmem:[#allocation12_spill] sm:$0xff] }
 0x2ab   :  { %1334 = vmatprep.subr.bf16.mxu0 %v2777_v41  ;;  %1377 = vmatprep.subr.bf16.mxu1 %v2792_v46  ;;  %v3190_v41 = vld [vmem:[#allocation7 + $0xc] ss:$16 sps:$4 sm:$0xff]  }
 0x2ae   :  { %1335 = vmatpush1.bf16.msra.mxu0 %v2787_v44  ;;  %1378 = vmatpush1.bf16.msra.mxu1 %v2795_v47  ;;  %v1161_v44 = vunpack.c.l.bf16 %v3560_v42 }
 0x2af   :  { %1336 = vmatprep.subr.bf16.mxu0 %v2789_v45  ;;  %1379 = vmatprep.subr.bf16.mxu1 %v2797_v48  ;;  %v3561_v45 = vld [vmem:[#allocation13_spill] sm:$0xff] }
 0x2b0   :  { %v1163_v46 = vunpack.c.l.bf16 %v3561_v45 }
 0x2b2   :  { %1337 = vmatpush1.bf16.msra.mxu0 %v2802_v49  ;;  %1380 = vmatpush1.bf16.msra.mxu1 %v2809_v51  ;;  %v3562_v49 = vld [vmem:[#allocation14_spill] sm:$0xff]  ;;  %v3563_v51 = vld [vmem:[#allocation15_spill] sm:$0xff] }
 0x2b3   :  { %1338 = vmatprep.subr.bf16.mxu0 %v2805_v50  ;;  %1381 = vmatprep.subr.bf16.mxu1 %v2818_v54  ;;  %v1162_v50 = vunpack.c.l.bf16 %v3562_v49 }
 0x2b6   :  { %1339 = vmatpush1.bf16.msra.mxu0 %v2815_v53  ;;  %1382 = vmatpush1.bf16.msra.mxu1 %v2824_v56  ;;  %v1164_v53 = vunpack.c.l.bf16 %v3563_v51 }
 0x2b7   :  { %1340 = vmatprep.subr.bf16.mxu0 %v2821_v55  ;;  %1383 = vmatprep.subr.bf16.mxu1 %v2826_v57 }
 0x2ba   :  { %1341 = vmatpush1.bf16.msra.mxu0 %v2831_v58  ;;  %1384 = vmatpush1.bf16.msra.mxu1 %v2838_v60  ;;  %v1165_v58 = vunpack.c.h.bf16 %v3560_v42 }
 0x2bb   :  { %1342 = vmatprep.subr.bf16.mxu0 %v2835_v59  ;;  %1385 = vmatprep.subr.bf16.mxu1 %v2847_v63  ;;  %v1167_v59 = vunpack.c.h.bf16 %v3561_v45 }
 0x2be   :  { %1343 = vmatpush1.bf16.msra.mxu0 %v2845_v62  ;;  %1386 = vmatpush1.bf16.msra.mxu1 %v2853_v2  ;;  %v1166_v2 = vunpack.c.h.bf16 %v3562_v49 }
 0x2bf   :  { %1344 = vmatprep.subr.bf16.mxu0 %v2851_v1  ;;  %1387 = vmatprep.subr.bf16.mxu1 %v2855_v3  ;;  %v1168_v3 = vunpack.c.h.bf16 %v3563_v51 }
 0x2c2   :  { %1345 = vmatpush1.bf16.msra.mxu0 %v2861_v4  ;;  %1388 = vmatpush1.bf16.msra.mxu1 %v2865_v5 }
 0x2c3   :  { %1491 = vmatprep.subr.bf16.mxu0 %v3187_v40  ;;  %1534 = vmatprep.subr.bf16.mxu1 %v3190_v41 }
 0x378   :  { %v1203_v47 = vpop.f32.mrb[40].mxu0  ;;  %v1246_v48 = vpop.f32.mrb[40].mxu1 }
 0x379   :  { %v1255_v54 = vadd.f32 %v1203_v47, %v1161_v44  ;;  %v1257_v55 = vadd.f32 %v1246_v48, %v1163_v46  ;;  %v1205_v56 = vpop.f32.mrb[41].mxu0  ;;  %v1248_v57 = vpop.f32.mrb[41].mxu1 }
 0x37a   :  { %v1256_v60 = vadd.f32 %v1205_v56, %v1162_v50  ;;  %v1258_v62 = vadd.f32 %v1248_v57, %v1164_v53  ;;  %v1207_v63 = vpop.f32.mrb[42].mxu0  ;;  %v1250_v1 = vpop.f32.mrb[42].mxu1  ;;  %v3230_v56 = vld [vmem:[#allocation7 + $0x40] ss:$16 sps:$4 sm:$0xff]   ;;  %v3233_v57 = vld [vmem:[#allocation7 + $0x48] ss:$16 sps:$4 sm:$0xff]  }
 0x37b   :  { %v1259_v4 = vadd.f32 %v1207_v63, %v1165_v58  ;;  %v1261_v5 = vadd.f32 %v1250_v1, %v1167_v59  ;;  %v1209_v24 = vpop.f32.mrb[43].mxu0  ;;  %v1252_v43 = vpop.f32.mrb[43].mxu1  ;;  %v3236_v58 = vld [vmem:[#allocation7 + $0x64] ss:$16 sps:$4 sm:$0xff]   ;;  %v3239_v59 = vld [vmem:[#allocation7 + $0x6c] ss:$16 sps:$4 sm:$0xff]  }
 0x37c   :  { %v1260_v11 = vadd.f32 %v1209_v24, %v1166_v2  ;;  %v1262_v28 = vadd.f32 %v1252_v43, %v1168_v3  ;;  %v3248_v63 = vld [vmem:[#allocation7 + $0x84] ss:$16 sps:$4 sm:$0xff]   ;;  %v3251_v1 = vld [vmem:[#allocation7 + $0x8c] ss:$16 sps:$4 sm:$0xff]   ;;  %v3254_v2 = vld [vmem:[#allocation7 + $0x80] ss:$16 sps:$4 sm:$0xff]  }
 0x37d   :  { %v1263_v52 = vpack.c.bf16 %v1259_v4, %v1255_v54  ;;  %v1265_v36 = vpack.c.bf16 %v1261_v5, %v1257_v55  ;;  %v3224_v54 = vld [vmem:[#allocation7 + $0x44] ss:$16 sps:$4 sm:$0xff]   ;;  %v3227_v55 = vld [vmem:[#allocation7 + $0x4c] ss:$16 sps:$4 sm:$0xff]   ;;  %v3257_v3 = vld [vmem:[#allocation7 + $0x88] ss:$16 sps:$4 sm:$0xff]  }
 0x37e   :  { %v1264_v37 = vpack.c.bf16 %v1260_v11, %v1256_v60  ;;  %v1266_v38 = vpack.c.bf16 %v1262_v28, %v1258_v62  ;;  %v3242_v60 = vld [vmem:[#allocation7 + $0x60] ss:$16 sps:$4 sm:$0xff]   ;;  %v3245_v62 = vld [vmem:[#allocation7 + $0x68] ss:$16 sps:$4 sm:$0xff]   ;;  %v3260_v4 = vld [vmem:[#allocation7 + $0xa4] ss:$16 sps:$4 sm:$0xff]  }
 0x37f   :  { %v2240_v39 = vmul.bf16 3216621497, %v1263_v52  ;;  %v3263_v5 = vld [vmem:[#allocation7 + $0xac] ss:$16 sps:$4 sm:$0xff]   ;;  %v3266_v24 = vld [vmem:[#allocation7 + $0xa0] ss:$16 sps:$4 sm:$0xff]  }
 0x380   :  { %v2241_v26 = vmul.bf16 3216621497, %v1264_v37  ;;  %v2242_v13 = vmul.bf16 3216621497, %v1266_v38  ;;  %v3269_v43 = vld [vmem:[#allocation7 + $0xa8] ss:$16 sps:$4 sm:$0xff]  }
 0x381   :  { %2490 = vpow.bf16 %v2240_v39  ;;  %v3272_v11 = vld [vmem:[#allocation7 + $0xc4] ss:$16 sps:$4 sm:$0xff]   ;;  %v3275_v28 = vld [vmem:[#allocation7 + $0xcc] ss:$16 sps:$4 sm:$0xff]   ;;  %v3278_v52 = vld [vmem:[#allocation7 + $0xc0] ss:$16 sps:$4 sm:$0xff]  }
 0x382   :  { %2492 = vpow.bf16 %v2241_v26  ;;  %v3284_v37 = vld [vmem:[#allocation7 + $0xe4] ss:$16 sps:$4 sm:$0xff]   ;;  %v3287_v38 = vld [vmem:[#allocation7 + $0xec] ss:$16 sps:$4 sm:$0xff]   ;;  %v3290_v39 = vld [vmem:[#allocation7 + $0xe0] ss:$16 sps:$4 sm:$0xff]  }
 0x383   :  { %2494 = vpow.bf16 %v2242_v13  ;;  %v3293_v26 = vld [vmem:[#allocation7 + $0xe8] ss:$16 sps:$4 sm:$0xff]  }
 0x384   :  { %v3564_v13 = vld [vmem:[#allocation16_spill] sm:$0xff] }
 0x38c   :  { %v2491_v15 = vpop.eup %2490 }
 0x38d   :  { %v2493_v31 = vpop.eup %2492  ;;  %v1271_v6 = vadd.bf16 1065369472, %v2491_v15  ;;  %v1322_v15 = vunpack.c.l.bf16 %v3564_v13 }
 0x38e   :  { %v1278_v14 = vadd.bf16 1065369472, %v2493_v31  ;;  %v2495_v21 = vpop.eup %2494  ;;  %v3565_v31 = vld [vmem:[#allocation17_spill] sm:$0xff] }
 0x38f   :  { %2496 = vrcp.bf16 %v1271_v6  ;;  %v1286_v7 = vadd.bf16 1065369472, %v2495_v21  ;;  %v1324_v6 = vunpack.c.l.bf16 %v3565_v31 }
 0x390   :  { %2498 = vrcp.bf16 %v1278_v14 }
 0x391   :  { %2500 = vtanh.bf16 %v1265_v36  ;;  %v3281_v36 = vld [vmem:[#allocation7 + $0xc8] ss:$16 sps:$4 sm:$0xff]  }
 0x392   :  { %2502 = vrcp.bf16 %v1286_v7  ;;  %v3566_v7 = vld [vmem:[#allocation18_spill] sm:$0xff] }
 0x39a   :  { %v2497_v33 = vpop.eup %2496 }
 0x39b   :  { %v2499_v32 = vpop.eup %2498  ;;  %v1273_v34 = vmul.bf16 1065369472, %v2497_v33  ;;  %v1323_v33 = vunpack.c.l.bf16 %v3566_v7 }
 0x39c   :  { %v2501_v17 = vpop.eup %2500  ;;  %v1280_v18 = vmul.bf16 1065369472, %v2499_v32  ;;  %v3567_v32 = vld [vmem:[#allocation19_spill] sm:$0xff] }
 0x39d   :  { %v1293_v30 = vmul.bf16 %v2501_v17, %v1273_v34  ;;  %v2503_v44 = vpop.eup %2502  ;;  %v1325_v34 = vunpack.c.l.bf16 %v3567_v32 }
 0x39e   :  { %v1289_v61 = vunpack.c.l.bf16 %v1280_v18  ;;  %v1290_v16 = vunpack.c.h.bf16 %v1280_v18  ;;  %v1288_v45 = vmul.bf16 1065369472, %v2503_v44 }
 0x39f   :  { %v1294_v0 = vunpack.c.l.bf16 %v1293_v30  ;;  %v1295_v22 = vunpack.c.h.bf16 %v1293_v30 }
 0x3a0   :  { %v1291_v27 = vmul.f32 %v1289_v61, %v3138_v19  ;;  %v1292_v9 = vmul.f32 %v1290_v16, %v3140_v29  ;;  %v1300_v46 = vunpack.c.l.bf16 %v1288_v45  ;;  %v1301_v48 = vunpack.c.h.bf16 %v1288_v45  ;;  %v3218_v19 = vld [vmem:[#allocation7 + $0x20] ss:$16 sps:$4 sm:$0xff]   ;;  %v3221_v29 = vld [vmem:[#allocation7 + $0x28] ss:$16 sps:$4 sm:$0xff]  }
 0x3a1   :  { %v1326_v16 = vunpack.c.h.bf16 %v3564_v13  ;;  %v1327_v45 = vunpack.c.h.bf16 %v3566_v7 }
 0x3a2   :  { %v3203_v10 = vadd.f32 %v1294_v0, %v1291_v27  ;;  %v3205_v42 = vadd.f32 %v1295_v22, %v1292_v9  ;;  %v1328_v0 = vunpack.c.h.bf16 %v3565_v31 }
 0x3a4   :  { %2504 = vtanh.f32 %v3203_v10 }
 0x3a5   :  { %2506 = vtanh.f32 %v3205_v42 }
 0x3ae   :  { %v2505_v47 = vpop.eup %2504 }
 0x3af   :  { %v2507_v49 = vpop.eup %2506  ;;  %v1302_v50 = vmul.f32 %v2505_v47, %v1300_v46  ;;  %v1329_v46 = vunpack.c.h.bf16 %v3567_v32 }
 0x3b0   :  { %v1303_v51 = vmul.f32 %v2507_v49, %v1301_v48 }
 0x3b2   :  { %v1304_v53 = vpack.c.bf16 %v1303_v51, %v1302_v50 }
 0x3b4   :  { %2339 = vst [vmem:[%s3505_s6 + $0x10] sm:$0xff] %v1304_v53   ;;  %1363 = vmatmul.mubr.bf16.vlgmr.msra.gmra.mrb[44].mxu0 %v1304_v53  ;;  %1406 = vmatmul.mubr.bf16.vlgmr.msra.gmra.mrb[44].mxu1 %v1304_v53 }
 0x3b5   :  { %1492 = vmatpush1.bf16.msra.mxu0 %v3147_v8  ;;  %1535 = vmatpush1.bf16.msra.mxu1 %v3150_v23 }
 0x3b6   :  { %1493 = vmatprep.subr.bf16.mxu0 %v3153_v20  ;;  %1536 = vmatprep.subr.bf16.mxu1 %v3156_v35 }
 0x3b7   :  { %1523 = vmatprep.mubr.bf16.mxu0 %v3558_v12  ;;  %1566 = vmatprep.mubr.bf16.mxu1 %v3558_v12 }
 0x3b9   :  { %1494 = vmatpush1.bf16.msra.mxu0 %v3218_v19  ;;  %1537 = vmatpush1.bf16.msra.mxu1 %v3221_v29 }
 0x3ba   :  { %1495 = vmatprep.subr.bf16.mxu0 %v3224_v54  ;;  %1538 = vmatprep.subr.bf16.mxu1 %v3227_v55 }
 0x3bd   :  { %1496 = vmatpush1.bf16.msra.mxu0 %v3230_v56  ;;  %1539 = vmatpush1.bf16.msra.mxu1 %v3233_v57 }
 0x3be   :  { %1497 = vmatprep.subr.bf16.mxu0 %v3236_v58  ;;  %1540 = vmatprep.subr.bf16.mxu1 %v3239_v59 }
 0x3c1   :  { %1498 = vmatpush1.bf16.msra.mxu0 %v3242_v60  ;;  %1541 = vmatpush1.bf16.msra.mxu1 %v3245_v62 }
 0x3c2   :  { %1499 = vmatprep.subr.bf16.mxu0 %v3248_v63  ;;  %1542 = vmatprep.subr.bf16.mxu1 %v3251_v1 }
 0x3c5   :  { %1500 = vmatpush1.bf16.msra.mxu0 %v3254_v2  ;;  %1543 = vmatpush1.bf16.msra.mxu1 %v3257_v3 }
 0x3c6   :  { %1501 = vmatprep.subr.bf16.mxu0 %v3260_v4  ;;  %1544 = vmatprep.subr.bf16.mxu1 %v3263_v5 }
 0x3c9   :  { %1502 = vmatpush1.bf16.msra.mxu0 %v3266_v24  ;;  %1545 = vmatpush1.bf16.msra.mxu1 %v3269_v43 }
 0x3ca   :  { %1503 = vmatprep.subr.bf16.mxu0 %v3272_v11  ;;  %1546 = vmatprep.subr.bf16.mxu1 %v3275_v28 }
 0x3cd   :  { %1504 = vmatpush1.bf16.msra.mxu0 %v3278_v52  ;;  %1547 = vmatpush1.bf16.msra.mxu1 %v3281_v36 }
 0x3ce   :  { %1505 = vmatprep.subr.bf16.mxu0 %v3284_v37  ;;  %1548 = vmatprep.subr.bf16.mxu1 %v3287_v38 }
 0x3d1   :  { %1506 = vmatpush1.bf16.msra.mxu0 %v3290_v39  ;;  %1549 = vmatpush1.bf16.msra.mxu1 %v3293_v26 }
 0x3d2   :  { %1652 = vmatprep.subr.bf16.mxu0 %v3187_v40  ;;  %1695 = vmatprep.subr.bf16.mxu1 %v3190_v41 }
 0x487   :  { %v1364_v14 = vpop.f32.mrb[44].mxu0  ;;  %v1407_v21 = vpop.f32.mrb[44].mxu1 }
 0x488   :  { %v1416_v17 = vadd.f32 %v1364_v14, %v1322_v15  ;;  %v1418_v18 = vadd.f32 %v1407_v21, %v1324_v6  ;;  %v1366_v30 = vpop.f32.mrb[45].mxu0  ;;  %v1409_v61 = vpop.f32.mrb[45].mxu1 }
 0x489   :  { %v1417_v22 = vadd.f32 %v1366_v30, %v1323_v33  ;;  %v1419_v27 = vadd.f32 %v1409_v61, %v1325_v34  ;;  %v1368_v9 = vpop.f32.mrb[46].mxu0  ;;  %v1411_v44 = vpop.f32.mrb[46].mxu1 }
 0x48a   :  { %v1420_v47 = vadd.f32 %v1368_v9, %v1326_v16  ;;  %v1422_v48 = vadd.f32 %v1411_v44, %v1328_v0  ;;  %v1370_v49 = vpop.f32.mrb[47].mxu0  ;;  %v1413_v50 = vpop.f32.mrb[47].mxu1 }
 0x48b   :  { %v1421_v51 = vadd.f32 %v1370_v49, %v1327_v45  ;;  %v1423_v53 = vadd.f32 %v1413_v50, %v1329_v46 }
 0x48c   :  { %v1424_v15 = vpack.c.bf16 %v1420_v47, %v1416_v17  ;;  %v1426_v6 = vpack.c.bf16 %v1422_v48, %v1418_v18 }
 0x48d   :  { %v1425_v14 = vpack.c.bf16 %v1421_v51, %v1417_v22  ;;  %v1427_v13 = vpack.c.bf16 %v1423_v53, %v1419_v27 }
 0x48e   :  { %v2247_v21 = vmul.bf16 3216621497, %v1424_v15 }
 0x48f   :  { %v2248_v31 = vmul.bf16 3216621497, %v1425_v14  ;;  %v2249_v33 = vmul.bf16 3216621497, %v1427_v13 }
 0x490   :  { %2508 = vpow.bf16 %v2247_v21 }
 0x491   :  { %2510 = vpow.bf16 %v2248_v31 }
 0x492   :  { %2512 = vpow.bf16 %v2249_v33 }
 0x49b   :  { %v2509_v34 = vpop.eup %2508 }
 0x49c   :  { %v2511_v7 = vpop.eup %2510  ;;  %v1432_v30 = vadd.bf16 1065369472, %v2509_v34 }
 0x49d   :  { %v1439_v32 = vadd.bf16 1065369472, %v2511_v7  ;;  %v2513_v61 = vpop.eup %2512  ;;  %v3569_v7 = vld [vmem:[#allocation21_spill] sm:$0xff] }
 0x49e   :  { %2514 = vrcp.bf16 %v1432_v30  ;;  %v1447_v16 = vadd.bf16 1065369472, %v2513_v61  ;;  %v1485_v30 = vunpack.c.l.bf16 %v3569_v7 }
 0x49f   :  { %2516 = vrcp.bf16 %v1439_v32 }
 0x4a0   :  { %2518 = vtanh.bf16 %v1426_v6 }
 0x4a1   :  { %2520 = vrcp.bf16 %v1447_v16  ;;  %v3570_v16 = vld [vmem:[#allocation22_spill] sm:$0xff] }
 0x4a9   :  { %v2515_v0 = vpop.eup %2514 }
 0x4aa   :  { %v2517_v17 = vpop.eup %2516  ;;  %v1434_v18 = vmul.bf16 1065369472, %v2515_v0  ;;  %v1484_v0 = vunpack.c.l.bf16 %v3570_v16 }
 0x4ab   :  { %v2519_v22 = vpop.eup %2518  ;;  %v1441_v27 = vmul.bf16 1065369472, %v2517_v17  ;;  %v3571_v17 = vld [vmem:[#allocation23_spill] sm:$0xff] }
 0x4ac   :  { %v1454_v9 = vmul.bf16 %v2519_v22, %v1434_v18  ;;  %v2521_v53 = vpop.eup %2520  ;;  %v1486_v18 = vunpack.c.l.bf16 %v3571_v17 }
 0x4ad   :  { %v1450_v44 = vunpack.c.l.bf16 %v1441_v27  ;;  %v1451_v45 = vunpack.c.h.bf16 %v1441_v27  ;;  %v1449_v15 = vmul.bf16 1065369472, %v2521_v53 }
 0x4ae   :  { %v1455_v46 = vunpack.c.l.bf16 %v1454_v9  ;;  %v1456_v47 = vunpack.c.h.bf16 %v1454_v9 }
 0x4af   :  { %v1452_v48 = vmul.f32 %v1450_v44, %v3203_v10  ;;  %v1453_v49 = vmul.f32 %v1451_v45, %v3205_v42  ;;  %v1461_v6 = vunpack.c.l.bf16 %v1449_v15  ;;  %v1462_v13 = vunpack.c.h.bf16 %v1449_v15  ;;  %v3568_v10 = vld [vmem:[#allocation20_spill] sm:$0xff] }
 0x4b0   :  { %v1483_v42 = vunpack.c.l.bf16 %v3568_v10  ;;  %v1487_v45 = vunpack.c.h.bf16 %v3568_v10  ;;  %v1488_v15 = vunpack.c.h.bf16 %v3570_v16 }
 0x4b1   :  { %v3308_v50 = vadd.f32 %v1455_v46, %v1452_v48  ;;  %v3310_v51 = vadd.f32 %v1456_v47, %v1453_v49  ;;  %v1489_v46 = vunpack.c.h.bf16 %v3569_v7 }
 0x4b3   :  { %2522 = vtanh.f32 %v3308_v50 }
 0x4b4   :  { %2524 = vtanh.f32 %v3310_v51 }
 0x4bd   :  { %v2523_v14 = vpop.eup %2522 }
 0x4be   :  { %v2525_v21 = vpop.eup %2524  ;;  %v1463_v31 = vmul.f32 %v2523_v14, %v1461_v6  ;;  %v1490_v6 = vunpack.c.h.bf16 %v3571_v17 }
 0x4bf   :  { %v1464_v33 = vmul.f32 %v2525_v21, %v1462_v13 }
 0x4c1   :  { %v1465_v34 = vpack.c.bf16 %v1464_v33, %v1463_v31 }
 0x4c3   :  { %2340 = vst [vmem:[%s3505_s6 + $0x18] sm:$0xff] %v1465_v34   ;;  %1524 = vmatmul.mubr.bf16.vlgmr.msra.gmra.mrb[48].mxu0 %v1465_v34  ;;  %1567 = vmatmul.mubr.bf16.vlgmr.msra.gmra.mrb[48].mxu1 %v1465_v34 }
 0x4c4   :  { %1653 = vmatpush1.bf16.msra.mxu0 %v3147_v8  ;;  %1696 = vmatpush1.bf16.msra.mxu1 %v3150_v23 }
 0x4c5   :  { %1654 = vmatprep.subr.bf16.mxu0 %v3153_v20  ;;  %1697 = vmatprep.subr.bf16.mxu1 %v3156_v35 }
 0x4c6   :  { %1684 = vmatprep.mubr.bf16.mxu0 %v3558_v12  ;;  %1727 = vmatprep.mubr.bf16.mxu1 %v3558_v12 }
 0x4c8   :  { %1655 = vmatpush1.bf16.msra.mxu0 %v3218_v19  ;;  %1698 = vmatpush1.bf16.msra.mxu1 %v3221_v29 }
 0x4c9   :  { %1656 = vmatprep.subr.bf16.mxu0 %v3224_v54  ;;  %1699 = vmatprep.subr.bf16.mxu1 %v3227_v55 }
 0x4cc   :  { %1657 = vmatpush1.bf16.msra.mxu0 %v3230_v56  ;;  %1700 = vmatpush1.bf16.msra.mxu1 %v3233_v57 }
 0x4cd   :  { %1658 = vmatprep.subr.bf16.mxu0 %v3236_v58  ;;  %1701 = vmatprep.subr.bf16.mxu1 %v3239_v59 }
 0x4d0   :  { %1659 = vmatpush1.bf16.msra.mxu0 %v3242_v60  ;;  %1702 = vmatpush1.bf16.msra.mxu1 %v3245_v62 }
 0x4d1   :  { %1660 = vmatprep.subr.bf16.mxu0 %v3248_v63  ;;  %1703 = vmatprep.subr.bf16.mxu1 %v3251_v1 }
 0x4d4   :  { %1661 = vmatpush1.bf16.msra.mxu0 %v3254_v2  ;;  %1704 = vmatpush1.bf16.msra.mxu1 %v3257_v3 }
 0x4d5   :  { %1662 = vmatprep.subr.bf16.mxu0 %v3260_v4  ;;  %1705 = vmatprep.subr.bf16.mxu1 %v3263_v5 }
 0x4d8   :  { %1663 = vmatpush1.bf16.msra.mxu0 %v3266_v24  ;;  %1706 = vmatpush1.bf16.msra.mxu1 %v3269_v43 }
 0x4d9   :  { %1664 = vmatprep.subr.bf16.mxu0 %v3272_v11  ;;  %1707 = vmatprep.subr.bf16.mxu1 %v3275_v28 }
 0x4dc   :  { %1665 = vmatpush1.bf16.msra.mxu0 %v3278_v52  ;;  %1708 = vmatpush1.bf16.msra.mxu1 %v3281_v36 }
 0x4dd   :  { %1666 = vmatprep.subr.bf16.mxu0 %v3284_v37  ;;  %1709 = vmatprep.subr.bf16.mxu1 %v3287_v38 }
 0x4e0   :  { %1667 = vmatpush1.bf16.msra.mxu0 %v3290_v39  ;;  %1710 = vmatpush1.bf16.msra.mxu1 %v3293_v26 }
 0x4e1   :  { %1813 = vmatprep.subr.bf16.mxu0 %v3187_v40  ;;  %1856 = vmatprep.subr.bf16.mxu1 %v3190_v41 }
 0x596   :  { %v1525_v32 = vpop.f32.mrb[48].mxu0  ;;  %v1568_v61 = vpop.f32.mrb[48].mxu1 }
 0x597   :  { %v1577_v22 = vadd.f32 %v1525_v32, %v1483_v42  ;;  %v1579_v27 = vadd.f32 %v1568_v61, %v1485_v30  ;;  %v1527_v9 = vpop.f32.mrb[49].mxu0  ;;  %v1570_v44 = vpop.f32.mrb[49].mxu1 }
 0x598   :  { %v1578_v47 = vadd.f32 %v1527_v9, %v1484_v0  ;;  %v1580_v48 = vadd.f32 %v1570_v44, %v1486_v18  ;;  %v1529_v49 = vpop.f32.mrb[50].mxu0  ;;  %v1572_v53 = vpop.f32.mrb[50].mxu1 }
 0x599   :  { %v1581_v14 = vadd.f32 %v1529_v49, %v1487_v45  ;;  %v1583_v13 = vadd.f32 %v1572_v53, %v1489_v46  ;;  %v1531_v21 = vpop.f32.mrb[51].mxu0  ;;  %v1574_v31 = vpop.f32.mrb[51].mxu1 }
 0x59a   :  { %v1582_v33 = vadd.f32 %v1531_v21, %v1488_v15  ;;  %v1584_v34 = vadd.f32 %v1574_v31, %v1490_v6 }
 0x59b   :  { %v1585_v42 = vpack.c.bf16 %v1581_v14, %v1577_v22  ;;  %v1587_v30 = vpack.c.bf16 %v1583_v13, %v1579_v27 }
 0x59c   :  { %v1586_v32 = vpack.c.bf16 %v1582_v33, %v1578_v47  ;;  %v1588_v10 = vpack.c.bf16 %v1584_v34, %v1580_v48 }
 0x59d   :  { %v2254_v61 = vmul.bf16 3216621497, %v1585_v42 }
 0x59e   :  { %v2255_v7 = vmul.bf16 3216621497, %v1586_v32  ;;  %v2256_v0 = vmul.bf16 3216621497, %v1588_v10 }
 0x59f   :  { %2526 = vpow.bf16 %v2254_v61 }
 0x5a0   :  { %2528 = vpow.bf16 %v2255_v7 }
 0x5a1   :  { %2530 = vpow.bf16 %v2256_v0 }
 0x5aa   :  { %v2527_v18 = vpop.eup %2526 }
 0x5ab   :  { %v2529_v16 = vpop.eup %2528  ;;  %v1593_v9 = vadd.bf16 1065369472, %v2527_v18 }
 0x5ac   :  { %v1600_v17 = vadd.bf16 1065369472, %v2529_v16  ;;  %v2531_v44 = vpop.eup %2530  ;;  %v3573_v16 = vld [vmem:[#allocation25_spill] sm:$0xff] }
 0x5ad   :  { %2532 = vrcp.bf16 %v1593_v9  ;;  %v1608_v45 = vadd.bf16 1065369472, %v2531_v44  ;;  %v1646_v9 = vunpack.c.l.bf16 %v3573_v16 }
 0x5ae   :  { %2534 = vrcp.bf16 %v1600_v17 }
 0x5af   :  { %2536 = vtanh.bf16 %v1587_v30 }
 0x5b0   :  { %2538 = vrcp.bf16 %v1608_v45  ;;  %v3574_v45 = vld [vmem:[#allocation26_spill] sm:$0xff] }
 0x5b8   :  { %v2533_v46 = vpop.eup %2532 }
 0x5b9   :  { %v2535_v22 = vpop.eup %2534  ;;  %v1595_v27 = vmul.bf16 1065369472, %v2533_v46  ;;  %v1645_v46 = vunpack.c.l.bf16 %v3574_v45 }
 0x5ba   :  { %v2537_v47 = vpop.eup %2536  ;;  %v1602_v48 = vmul.bf16 1065369472, %v2535_v22  ;;  %v3575_v22 = vld [vmem:[#allocation27_spill] sm:$0xff] }
 0x5bb   :  { %v1615_v49 = vmul.bf16 %v2537_v47, %v1595_v27  ;;  %v2539_v34 = vpop.eup %2538  ;;  %v1647_v27 = vunpack.c.l.bf16 %v3575_v22 }
 0x5bc   :  { %v1611_v53 = vunpack.c.l.bf16 %v1602_v48  ;;  %v1612_v15 = vunpack.c.h.bf16 %v1602_v48  ;;  %v1610_v42 = vmul.bf16 1065369472, %v2539_v34  ;;  %v1651_v34 = vunpack.c.h.bf16 %v3575_v22 }
 0x5bd   :  { %v1616_v6 = vunpack.c.l.bf16 %v1615_v49  ;;  %v1617_v14 = vunpack.c.h.bf16 %v1615_v49 }
 0x5be   :  { %v1613_v13 = vmul.f32 %v1611_v53, %v3308_v50  ;;  %v1614_v21 = vmul.f32 %v1612_v15, %v3310_v51  ;;  %v1622_v30 = vunpack.c.l.bf16 %v1610_v42  ;;  %v1623_v10 = vunpack.c.h.bf16 %v1610_v42  ;;  %v3572_v50 = vld [vmem:[#allocation24_spill] sm:$0xff] }
 0x5bf   :  { %v1644_v51 = vunpack.c.l.bf16 %v3572_v50  ;;  %v1648_v15 = vunpack.c.h.bf16 %v3572_v50 }
 0x5c0   :  { %v3361_v31 = vadd.f32 %v1616_v6, %v1613_v13  ;;  %v3363_v33 = vadd.f32 %v1617_v14, %v1614_v21  ;;  %v1649_v21 = vunpack.c.h.bf16 %v3574_v45 }
 0x5c2   :  { %2540 = vtanh.f32 %v3361_v31 }
 0x5c3   :  { %2542 = vtanh.f32 %v3363_v33 }
 0x5cc   :  { %v2541_v32 = vpop.eup %2540 }
 0x5cd   :  { %v2543_v61 = vpop.eup %2542  ;;  %v1624_v7 = vmul.f32 %v2541_v32, %v1622_v30 }
 0x5ce   :  { %v1625_v0 = vmul.f32 %v2543_v61, %v1623_v10 }
 0x5d0   :  { %v1626_v18 = vpack.c.bf16 %v1625_v0, %v1624_v7 }
 0x5d2   :  { %2341 = vst [vmem:[%s3505_s6 + $0x20] sm:$0xff] %v1626_v18   ;;  %1685 = vmatmul.mubr.bf16.vlgmr.msra.gmra.mrb[52].mxu0 %v1626_v18  ;;  %1728 = vmatmul.mubr.bf16.vlgmr.msra.gmra.mrb[52].mxu1 %v1626_v18 }
 0x5d3   :  { %1814 = vmatpush1.bf16.msra.mxu0 %v3147_v8  ;;  %1857 = vmatpush1.bf16.msra.mxu1 %v3150_v23 }
 0x5d4   :  { %1815 = vmatprep.subr.bf16.mxu0 %v3153_v20  ;;  %1858 = vmatprep.subr.bf16.mxu1 %v3156_v35 }
 0x5d5   :  { %1845 = vmatprep.mubr.bf16.mxu0 %v3558_v12  ;;  %1888 = vmatprep.mubr.bf16.mxu1 %v3558_v12 }
 0x5d7   :  { %1816 = vmatpush1.bf16.msra.mxu0 %v3218_v19  ;;  %1859 = vmatpush1.bf16.msra.mxu1 %v3221_v29 }
 0x5d8   :  { %1817 = vmatprep.subr.bf16.mxu0 %v3224_v54  ;;  %1860 = vmatprep.subr.bf16.mxu1 %v3227_v55 }
 0x5db   :  { %1818 = vmatpush1.bf16.msra.mxu0 %v3230_v56  ;;  %1861 = vmatpush1.bf16.msra.mxu1 %v3233_v57 }
 0x5dc   :  { %1819 = vmatprep.subr.bf16.mxu0 %v3236_v58  ;;  %1862 = vmatprep.subr.bf16.mxu1 %v3239_v59 }
 0x5df   :  { %1820 = vmatpush1.bf16.msra.mxu0 %v3242_v60  ;;  %1863 = vmatpush1.bf16.msra.mxu1 %v3245_v62 }
 0x5e0   :  { %1821 = vmatprep.subr.bf16.mxu0 %v3248_v63  ;;  %1864 = vmatprep.subr.bf16.mxu1 %v3251_v1 }
 0x5e3   :  { %1822 = vmatpush1.bf16.msra.mxu0 %v3254_v2  ;;  %1865 = vmatpush1.bf16.msra.mxu1 %v3257_v3 }
 0x5e4   :  { %1823 = vmatprep.subr.bf16.mxu0 %v3260_v4  ;;  %1866 = vmatprep.subr.bf16.mxu1 %v3263_v5 }
 0x5e7   :  { %1824 = vmatpush1.bf16.msra.mxu0 %v3266_v24  ;;  %1867 = vmatpush1.bf16.msra.mxu1 %v3269_v43 }
 0x5e8   :  { %1825 = vmatprep.subr.bf16.mxu0 %v3272_v11  ;;  %1868 = vmatprep.subr.bf16.mxu1 %v3275_v28 }
 0x5eb   :  { %1826 = vmatpush1.bf16.msra.mxu0 %v3278_v52  ;;  %1869 = vmatpush1.bf16.msra.mxu1 %v3281_v36 }
 0x5ec   :  { %1827 = vmatprep.subr.bf16.mxu0 %v3284_v37  ;;  %1870 = vmatprep.subr.bf16.mxu1 %v3287_v38 }
 0x5ef   :  { %1828 = vmatpush1.bf16.msra.mxu0 %v3290_v39  ;;  %1871 = vmatpush1.bf16.msra.mxu1 %v3293_v26 }
 0x5f0   :  { %1974 = vmatprep.subr.bf16.mxu0 %v3187_v40  ;;  %2017 = vmatprep.subr.bf16.mxu1 %v3190_v41  ;;  %v1650_v40 = vunpack.c.h.bf16 %v3573_v16 }
 0x6a5   :  { %v1686_v17 = vpop.f32.mrb[52].mxu0  ;;  %v1729_v44 = vpop.f32.mrb[52].mxu1 }
 0x6a6   :  { %v1738_v47 = vadd.f32 %v1686_v17, %v1644_v51  ;;  %v1740_v48 = vadd.f32 %v1729_v44, %v1646_v9  ;;  %v1688_v49 = vpop.f32.mrb[53].mxu0  ;;  %v1731_v53 = vpop.f32.mrb[53].mxu1 }
 0x6a7   :  { %v1739_v6 = vadd.f32 %v1688_v49, %v1645_v46  ;;  %v1741_v41 = vadd.f32 %v1731_v53, %v1647_v27  ;;  %v1690_v14 = vpop.f32.mrb[54].mxu0  ;;  %v1733_v13 = vpop.f32.mrb[54].mxu1 }
 0x6a8   :  { %v1742_v42 = vadd.f32 %v1690_v14, %v1648_v15  ;;  %v1744_v30 = vadd.f32 %v1733_v13, %v1650_v40  ;;  %v1692_v32 = vpop.f32.mrb[55].mxu0  ;;  %v1735_v10 = vpop.f32.mrb[55].mxu1 }
 0x6a9   :  { %v1743_v61 = vadd.f32 %v1692_v32, %v1649_v21  ;;  %v1745_v7 = vadd.f32 %v1735_v10, %v1651_v34 }
 0x6aa   :  { %v1746_v0 = vpack.c.bf16 %v1742_v42, %v1738_v47  ;;  %v1748_v18 = vpack.c.bf16 %v1744_v30, %v1740_v48 }
 0x6ab   :  { %v1747_v51 = vpack.c.bf16 %v1743_v61, %v1739_v6  ;;  %v1749_v50 = vpack.c.bf16 %v1745_v7, %v1741_v41 }
 0x6ac   :  { %v2261_v9 = vmul.bf16 3216621497, %v1746_v0 }
 0x6ad   :  { %v2262_v16 = vmul.bf16 3216621497, %v1747_v51  ;;  %v2263_v17 = vmul.bf16 3216621497, %v1749_v50 }
 0x6ae   :  { %2544 = vpow.bf16 %v2261_v9 }
 0x6af   :  { %2546 = vpow.bf16 %v2262_v16 }
 0x6b0   :  { %2548 = vpow.bf16 %v2263_v17 }
 0x6b9   :  { %v2545_v44 = vpop.eup %2544 }
 0x6ba   :  { %v2547_v45 = vpop.eup %2546  ;;  %v1754_v46 = vadd.bf16 1065369472, %v2545_v44 }
 0x6bb   :  { %v1761_v22 = vadd.bf16 1065369472, %v2547_v45  ;;  %v2549_v27 = vpop.eup %2548 }
 0x6bc   :  { %2550 = vrcp.bf16 %v1754_v46  ;;  %v1769_v49 = vadd.bf16 1065369472, %v2549_v27 }
 0x6bd   :  { %2552 = vrcp.bf16 %v1761_v22 }
 0x6be   :  { %2554 = vtanh.bf16 %v1748_v18 }
 0x6bf   :  { %2556 = vrcp.bf16 %v1769_v49 }
 0x6c7   :  { %v2551_v53 = vpop.eup %2550 }
 0x6c8   :  { %v2553_v47 = vpop.eup %2552  ;;  %v1756_v48 = vmul.bf16 1065369472, %v2551_v53 }
 0x6c9   :  { %v2555_v15 = vpop.eup %2554  ;;  %v1763_v40 = vmul.bf16 1065369472, %v2553_v47 }
 0x6ca   :  { %v1776_v6 = vmul.bf16 %v2555_v15, %v1756_v48  ;;  %v2557_v10 = vpop.eup %2556 }
 0x6cb   :  { %v1772_v41 = vunpack.c.l.bf16 %v1763_v40  ;;  %v1773_v14 = vunpack.c.h.bf16 %v1763_v40  ;;  %v1771_v61 = vmul.bf16 1065369472, %v2557_v10 }
 0x6cc   :  { %v1777_v13 = vunpack.c.l.bf16 %v1776_v6  ;;  %v1778_v21 = vunpack.c.h.bf16 %v1776_v6 }
 0x6cd   :  { %v1774_v34 = vmul.f32 %v1772_v41, %v3361_v31  ;;  %v1775_v42 = vmul.f32 %v1773_v14, %v3363_v33  ;;  %v1783_v7 = vunpack.c.l.bf16 %v1771_v61  ;;  %v1784_v18 = vunpack.c.h.bf16 %v1771_v61 }
 0x6cf   :  { %v3414_v30 = vadd.f32 %v1777_v13, %v1774_v34  ;;  %v3416_v32 = vadd.f32 %v1778_v21, %v1775_v42 }
 0x6d1   :  { %2558 = vtanh.f32 %v3414_v30 }
 0x6d2   :  { %2560 = vtanh.f32 %v3416_v32 }
 0x6db   :  { %v2559_v0 = vpop.eup %2558 }
 0x6dc   :  { %v2561_v51 = vpop.eup %2560  ;;  %v1785_v50 = vmul.f32 %v2559_v0, %v1783_v7 }
 0x6dd   :  { %v1786_v9 = vmul.f32 %v2561_v51, %v1784_v18 }
 0x6df   :  { %v1787_v16 = vpack.c.bf16 %v1786_v9, %v1785_v50 }
 0x6e1   :  { %2342 = vst [vmem:[%s3505_s6 + $0x28] sm:$0xff] %v1787_v16   ;;  %1846 = vmatmul.mubr.bf16.vlgmr.msra.gmra.mrb[56].mxu0 %v1787_v16  ;;  %1889 = vmatmul.mubr.bf16.vlgmr.msra.gmra.mrb[56].mxu1 %v1787_v16 }
 0x6e2   :  { %1975 = vmatpush1.bf16.msra.mxu0 %v3147_v8  ;;  %2018 = vmatpush1.bf16.msra.mxu1 %v3150_v23  ;;  %v3576_v8 = vld [vmem:[#allocation28_spill] sm:$0xff] }
 0x6e3   :  { %1976 = vmatprep.subr.bf16.mxu0 %v3153_v20  ;;  %2019 = vmatprep.subr.bf16.mxu1 %v3156_v35  ;;  %v1807_v23 = vunpack.c.l.bf16 %v3576_v8 }
 0x6e4   :  { %2006 = vmatprep.mubr.bf16.mxu0 %v3558_v12  ;;  %2049 = vmatprep.mubr.bf16.mxu1 %v3558_v12  ;;  %v1805_v12 = vunpack.c.l.bf16 %v3047_v25 }
 0x6e6   :  { %1977 = vmatpush1.bf16.msra.mxu0 %v3218_v19  ;;  %2020 = vmatpush1.bf16.msra.mxu1 %v3221_v29  ;;  %v3577_v19 = vld [vmem:[#allocation29_spill] sm:$0xff] }
 0x6e7   :  { %1978 = vmatprep.subr.bf16.mxu0 %v3224_v54  ;;  %2021 = vmatprep.subr.bf16.mxu1 %v3227_v55  ;;  %v1806_v29 = vunpack.c.l.bf16 %v3577_v19  ;;  %v3578_v54 = vld [vmem:[#allocation30_spill] sm:$0xff] }
 0x6e8   :  { %v1808_v55 = vunpack.c.l.bf16 %v3578_v54 }
 0x6ea   :  { %1979 = vmatpush1.bf16.msra.mxu0 %v3230_v56  ;;  %2022 = vmatpush1.bf16.msra.mxu1 %v3233_v57 }
 0x6eb   :  { %1980 = vmatprep.subr.bf16.mxu0 %v3236_v58  ;;  %2023 = vmatprep.subr.bf16.mxu1 %v3239_v59 }
 0x6ee   :  { %1981 = vmatpush1.bf16.msra.mxu0 %v3242_v60  ;;  %2024 = vmatpush1.bf16.msra.mxu1 %v3245_v62  ;;  %v1809_v60 = vunpack.c.h.bf16 %v3047_v25  ;;  %v1811_v62 = vunpack.c.h.bf16 %v3576_v8  ;;  %v3580_v8 = vld [vmem:[#allocation32_spill] sm:$0xff] }
 0x6ef   :  { %1982 = vmatprep.subr.bf16.mxu0 %v3248_v63  ;;  %2025 = vmatprep.subr.bf16.mxu1 %v3251_v1 }
 0x6f2   :  { %1983 = vmatpush1.bf16.msra.mxu0 %v3254_v2  ;;  %2026 = vmatpush1.bf16.msra.mxu1 %v3257_v3 }
 0x6f3   :  { %1984 = vmatprep.subr.bf16.mxu0 %v3260_v4  ;;  %2027 = vmatprep.subr.bf16.mxu1 %v3263_v5  ;;  %v1810_v4 = vunpack.c.h.bf16 %v3577_v19  ;;  %v1812_v5 = vunpack.c.h.bf16 %v3578_v54  ;;  %v3581_v19 = vld [vmem:[#allocation33_spill] sm:$0xff]  ;;  %v3582_v54 = vld [vmem:[#allocation34_spill] sm:$0xff] }
 0x6f6   :  { %1985 = vmatpush1.bf16.msra.mxu0 %v3266_v24  ;;  %2028 = vmatpush1.bf16.msra.mxu1 %v3269_v43 }
 0x6f7   :  { %1986 = vmatprep.subr.bf16.mxu0 %v3272_v11  ;;  %2029 = vmatprep.subr.bf16.mxu1 %v3275_v28 }
 0x6fa   :  { %1987 = vmatpush1.bf16.msra.mxu0 %v3278_v52  ;;  %2030 = vmatpush1.bf16.msra.mxu1 %v3281_v36 }
 0x6fb   :  { %1988 = vmatprep.subr.bf16.mxu0 %v3284_v37  ;;  %2031 = vmatprep.subr.bf16.mxu1 %v3287_v38 }
 0x6fe   :  { %1989 = vmatpush1.bf16.msra.mxu0 %v3290_v39  ;;  %2032 = vmatpush1.bf16.msra.mxu1 %v3293_v26 }
 0x7b4   :  { %v1847_v20 = vpop.f32.mrb[56].mxu0  ;;  %v1890_v35 = vpop.f32.mrb[56].mxu1 }
 0x7b5   :  { %v1899_v56 = vadd.f32 %v1847_v20, %v1805_v12  ;;  %v1901_v57 = vadd.f32 %v1890_v35, %v1807_v23  ;;  %v1849_v58 = vpop.f32.mrb[57].mxu0  ;;  %v1892_v59 = vpop.f32.mrb[57].mxu1  ;;  %v1968_v23 = vunpack.c.l.bf16 %v3580_v8 }
 0x7b6   :  { %v1900_v63 = vadd.f32 %v1849_v58, %v1806_v29  ;;  %v1902_v1 = vadd.f32 %v1892_v59, %v1808_v55  ;;  %v1851_v2 = vpop.f32.mrb[58].mxu0  ;;  %v1894_v3 = vpop.f32.mrb[58].mxu1  ;;  %v1967_v29 = vunpack.c.l.bf16 %v3581_v19  ;;  %v1969_v55 = vunpack.c.l.bf16 %v3582_v54 }
 0x7b7   :  { %v1903_v24 = vadd.f32 %v1851_v2, %v1809_v60  ;;  %v1905_v43 = vadd.f32 %v1894_v3, %v1811_v62  ;;  %v1853_v11 = vpop.f32.mrb[59].mxu0  ;;  %v1896_v28 = vpop.f32.mrb[59].mxu1  ;;  %v1972_v62 = vunpack.c.h.bf16 %v3580_v8 }
 0x7b8   :  { %v1904_v52 = vadd.f32 %v1853_v11, %v1810_v4  ;;  %v1906_v36 = vadd.f32 %v1896_v28, %v1812_v5  ;;  %v1971_v4 = vunpack.c.h.bf16 %v3581_v19  ;;  %v1973_v5 = vunpack.c.h.bf16 %v3582_v54 }
 0x7b9   :  { %v1907_v37 = vpack.c.bf16 %v1903_v24, %v1899_v56  ;;  %v1909_v38 = vpack.c.bf16 %v1905_v43, %v1901_v57 }
 0x7ba   :  { %v1908_v39 = vpack.c.bf16 %v1904_v52, %v1900_v63  ;;  %v1910_v25 = vpack.c.bf16 %v1906_v36, %v1902_v1 }
 0x7bb   :  { %v2268_v26 = vmul.bf16 3216621497, %v1907_v37 }
 0x7bc   :  { %v2269_v31 = vmul.bf16 3216621497, %v1908_v39  ;;  %v2270_v33 = vmul.bf16 3216621497, %v1910_v25 }
 0x7bd   :  { %2562 = vpow.bf16 %v2268_v26 }
 0x7be   :  { %2564 = vpow.bf16 %v2269_v31 }
 0x7bf   :  { %2566 = vpow.bf16 %v2270_v33 }
 0x7c8   :  { %v2563_v17 = vpop.eup %2562 }
 0x7c9   :  { %v2565_v44 = vpop.eup %2564  ;;  %v1915_v45 = vadd.bf16 1065369472, %v2563_v17 }
 0x7ca   :  { %v1922_v46 = vadd.bf16 1065369472, %v2565_v44  ;;  %v2567_v22 = vpop.eup %2566 }
 0x7cb   :  { %2568 = vrcp.bf16 %v1915_v45  ;;  %v1930_v27 = vadd.bf16 1065369472, %v2567_v22 }
 0x7cc   :  { %2570 = vrcp.bf16 %v1922_v46 }
 0x7cd   :  { %2572 = vtanh.bf16 %v1909_v38 }
 0x7ce   :  { %2574 = vrcp.bf16 %v1930_v27 }
 0x7d6   :  { %v2569_v49 = vpop.eup %2568 }
 0x7d7   :  { %v2571_v53 = vpop.eup %2570  ;;  %v1917_v47 = vmul.bf16 1065369472, %v2569_v49 }
 0x7d8   :  { %v2573_v48 = vpop.eup %2572  ;;  %v1924_v15 = vmul.bf16 1065369472, %v2571_v53 }
 0x7d9   :  { %v1937_v40 = vmul.bf16 %v2573_v48, %v1917_v47  ;;  %v2575_v61 = vpop.eup %2574 }
 0x7da   :  { %v1933_v6 = vunpack.c.l.bf16 %v1924_v15  ;;  %v1934_v41 = vunpack.c.h.bf16 %v1924_v15  ;;  %v1932_v7 = vmul.bf16 1065369472, %v2575_v61 }
 0x7db   :  { %v1938_v14 = vunpack.c.l.bf16 %v1937_v40  ;;  %v1939_v13 = vunpack.c.h.bf16 %v1937_v40 }
 0x7dc   :  { %v1935_v21 = vmul.f32 %v1933_v6, %v3414_v30  ;;  %v1936_v34 = vmul.f32 %v1934_v41, %v3416_v32  ;;  %v1944_v0 = vunpack.c.l.bf16 %v1932_v7  ;;  %v1945_v51 = vunpack.c.h.bf16 %v1932_v7  ;;  %v3579_v30 = vld [vmem:[#allocation31_spill] sm:$0xff] }
 0x7dd   :  { %v1966_v32 = vunpack.c.l.bf16 %v3579_v30  ;;  %v1970_v60 = vunpack.c.h.bf16 %v3579_v30 }
 0x7de   :  { %v3465_v42 = vadd.f32 %v1938_v14, %v1935_v21  ;;  %v3467_v10 = vadd.f32 %v1939_v13, %v1936_v34 }
 0x7e0   :  { %2576 = vtanh.f32 %v3465_v42 }
 0x7e1   :  { %2578 = vtanh.f32 %v3467_v10 }
 0x7ea   :  { %v2577_v18 = vpop.eup %2576 }
 0x7eb   :  { %v2579_v50 = vpop.eup %2578  ;;  %v1946_v9 = vmul.f32 %v2577_v18, %v1944_v0 }
 0x7ec   :  { %v1947_v16 = vmul.f32 %v2579_v50, %v1945_v51 }
 0x7ee   :  { %v1948_v12 = vpack.c.bf16 %v1947_v16, %v1946_v9 }
 0x7f0   :  { %2343 = vst [vmem:[%s3505_s6 + $0x30] sm:$0xff] %v1948_v12   ;;  %2007 = vmatmul.mubr.bf16.vlgmr.msra.gmra.mrb[60].mxu0 %v1948_v12  ;;  %2050 = vmatmul.mubr.bf16.vlgmr.msra.gmra.mrb[60].mxu1 %v1948_v12 }
 0x8c3   :  { %v2008_v20 = vpop.f32.mrb[60].mxu0  ;;  %v2051_v35 = vpop.f32.mrb[60].mxu1 }
 0x8c4   :  { %v2060_v56 = vadd.f32 %v2008_v20, %v1966_v32  ;;  %v2062_v57 = vadd.f32 %v2051_v35, %v1968_v23  ;;  %v2010_v58 = vpop.f32.mrb[61].mxu0  ;;  %v2053_v59 = vpop.f32.mrb[61].mxu1 }
 0x8c5   :  { %v2061_v63 = vadd.f32 %v2010_v58, %v1967_v29  ;;  %v2063_v1 = vadd.f32 %v2053_v59, %v1969_v55  ;;  %v2012_v2 = vpop.f32.mrb[62].mxu0  ;;  %v2055_v3 = vpop.f32.mrb[62].mxu1 }
 0x8c6   :  { %v2064_v24 = vadd.f32 %v2012_v2, %v1970_v60  ;;  %v2066_v43 = vadd.f32 %v2055_v3, %v1972_v62  ;;  %v2014_v11 = vpop.f32.mrb[63].mxu0  ;;  %v2057_v28 = vpop.f32.mrb[63].mxu1 }
 0x8c7   :  { %v2065_v52 = vadd.f32 %v2014_v11, %v1971_v4  ;;  %v2067_v36 = vadd.f32 %v2057_v28, %v1973_v5 }
 0x8c8   :  { %v2068_v37 = vpack.c.bf16 %v2064_v24, %v2060_v56  ;;  %v2070_v38 = vpack.c.bf16 %v2066_v43, %v2062_v57 }
 0x8c9   :  { %v2069_v39 = vpack.c.bf16 %v2065_v52, %v2061_v63  ;;  %v2071_v25 = vpack.c.bf16 %v2067_v36, %v2063_v1 }
 0x8ca   :  { %v2275_v26 = vmul.bf16 3216621497, %v2068_v37 }
 0x8cb   :  { %v2276_v31 = vmul.bf16 3216621497, %v2069_v39  ;;  %v2277_v33 = vmul.bf16 3216621497, %v2071_v25 }
 0x8cc   :  { %2580 = vpow.bf16 %v2275_v26 }
 0x8cd   :  { %2582 = vpow.bf16 %v2276_v31 }
 0x8ce   :  { %2584 = vpow.bf16 %v2277_v33 }
 0x8d7   :  { %v2581_v17 = vpop.eup %2580 }
 0x8d8   :  { %v2583_v44 = vpop.eup %2582  ;;  %v2076_v45 = vadd.bf16 1065369472, %v2581_v17 }
 0x8d9   :  { %v2083_v46 = vadd.bf16 1065369472, %v2583_v44  ;;  %v2585_v22 = vpop.eup %2584 }
 0x8da   :  { %2586 = vrcp.bf16 %v2076_v45  ;;  %v2091_v27 = vadd.bf16 1065369472, %v2585_v22 }
 0x8db   :  { %2588 = vrcp.bf16 %v2083_v46 }
 0x8dc   :  { %2590 = vtanh.bf16 %v2070_v38 }
 0x8dd   :  { %2592 = vrcp.bf16 %v2091_v27 }
 0x8e5   :  { %v2587_v49 = vpop.eup %2586 }
 0x8e6   :  { %v2589_v53 = vpop.eup %2588  ;;  %v2078_v47 = vmul.bf16 1065369472, %v2587_v49 }
 0x8e7   :  { %v2591_v48 = vpop.eup %2590  ;;  %v2085_v15 = vmul.bf16 1065369472, %v2589_v53 }
 0x8e8   :  { %v2098_v40 = vmul.bf16 %v2591_v48, %v2078_v47  ;;  %v2593_v0 = vpop.eup %2592 }
 0x8e9   :  { %v2094_v6 = vunpack.c.l.bf16 %v2085_v15  ;;  %v2095_v41 = vunpack.c.h.bf16 %v2085_v15  ;;  %v2093_v18 = vmul.bf16 1065369472, %v2593_v0 }
 0x8ea   :  { %v2099_v14 = vunpack.c.l.bf16 %v2098_v40  ;;  %v2100_v13 = vunpack.c.h.bf16 %v2098_v40 }
 0x8eb   :  { %v2096_v21 = vmul.f32 %v2094_v6, %v3465_v42  ;;  %v2097_v34 = vmul.f32 %v2095_v41, %v3467_v10  ;;  %v2105_v51 = vunpack.c.l.bf16 %v2093_v18  ;;  %v2106_v9 = vunpack.c.h.bf16 %v2093_v18 }
 0x8ed   :  { %v2101_v61 = vadd.f32 %v2099_v14, %v2096_v21  ;;  %v2102_v7 = vadd.f32 %v2100_v13, %v2097_v34 }
 0x8ef   :  { %2594 = vtanh.f32 %v2101_v61  ;;  %2133 = vst [vmem:[%s3507_s8] sm:$0xff] %v2101_v61  ;;  %2134 = vst [vmem:[%s3507_s8 + $0x8] sm:$0xff] %v2102_v7 }
 0x8f0   :  { %2596 = vtanh.f32 %v2102_v7 }
 0x8f9   :  { %v2595_v50 = vpop.eup %2594 }
 0x8fa   :  { %v2597_v42 = vpop.eup %2596  ;;  %v2107_v16 = vmul.f32 %v2595_v50, %v2105_v51 }
 0x8fb   :  { %v2108_v10 = vmul.f32 %v2597_v42, %v2106_v9 }
 0x8fc   :  { %2129 = vst [vmem:[%s3506_s7] sm:$0xff] %v2107_v16 }
 0x8fd   :  { %v2336_v12 = vpack.c.bf16 %v2108_v10, %v2107_v16  ;;  %2130 = vst [vmem:[%s3506_s7 + $0x8] sm:$0xff] %v2108_v10 }
 0x8ff   :  { %2344 = vst [vmem:[%s3505_s6 + $0x38] sm:$0xff] %v2336_v12  }
 0x900   :  { %2147 = vsyncpa [#allocation6], 1 }
 0x901   :  { %2148 = vsyncpa [#allocation8], 1 }

// kernel: lstm_forward.4
= control target key start
LH: loop header
LB: loop body
LE: loop exit
PB: predicated region body
PF: predicated region fallthrough
CT: control target
= control target key end

     0   :  { %v3686_v1 = vmov 0   ;;  %s3677_s1 = inlined_call_operand.vmem [shape: bf16[128,512], index: 1, kind: input, shape index: {}]   ;;  %s3678_s0 = inlined_call_operand.vmem [shape: bf16[8,16,128], index: 0, kind: input, shape index: {}]   ;;  %s3679_s2 = inlined_call_operand.vmem [shape: bf16[128,512], index: 2, kind: input, shape index: {}]   ;;  %s3680_s4 = inlined_call_operand.vmem [shape: f32[16,128], index: 4, kind: input, shape index: {}, may-alias: {4,5}]   ;;  %s3681_s3 = inlined_call_operand.vmem [shape: f32[1,512], index: 3, kind: input, shape index: {}]   ;;  %s3682_s5 = inlined_call_operand.vmem [shape: f32[16,128], index: 5, kind: input, shape index: {}, may-alias: {4,5}]   ;;  %s3683_s6 = inlined_call_operand.vmem [shape: bf16[8,16,128], index: 6, kind: output, shape index: {0}]   ;;  %s3684_s8 = inlined_call_operand.vmem [shape: f32[16,128], index: 8, kind: output, shape index: {2}]   ;;  %s3685_s7 = inlined_call_operand.vmem [shape: f32[16,128], index: 7, kind: output, shape index: {1}]  }
   0x1   :  { %v2316_v0 = vld [vmem:[%s3677_s1 + $0x4] ss:$16 sps:$4 sm:$0xff]   ;;  %350 = vmatprep.mubr.bf16.mxu0 %v3686_v1  ;;  %463 = vmatprep.mubr.bf16.mxu1 %v3686_v1  ;;  %v2318_v2 = vld [vmem:[%s3677_s1 + $0xc] ss:$16 sps:$4 sm:$0xff]   ;;  %v2320_v3 = vld [vmem:[%s3677_s1] ss:$16 sps:$4 sm:$0xff]  }
   0x2   :  { %318 = vmatprep.subr.bf16.mxu0 %v2316_v0  ;;  %v2321_v4 = vld [vmem:[%s3677_s1 + $0x8] ss:$16 sps:$4 sm:$0xff]   ;;  %431 = vmatprep.subr.bf16.mxu1 %v2318_v2  ;;  %v2322_v5 = vld [vmem:[%s3677_s1 + $0x24] ss:$16 sps:$4 sm:$0xff]   ;;  %v2324_v6 = vld [vmem:[%s3677_s1 + $0x2c] ss:$16 sps:$4 sm:$0xff]  }
   0x3   :  { %319 = vmatpush1.bf16.msra.mxu0 %v2320_v3  ;;  %432 = vmatpush1.bf16.msra.mxu1 %v2321_v4  ;;  %v2326_v7 = vld [vmem:[%s3677_s1 + $0x20] ss:$16 sps:$4 sm:$0xff]   ;;  %v2327_v8 = vld [vmem:[%s3677_s1 + $0x28] ss:$16 sps:$4 sm:$0xff]   ;;  %v2328_v9 = vld [vmem:[%s3677_s1 + $0x44] ss:$16 sps:$4 sm:$0xff]  }
   0x4   :  { %320 = vmatprep.subr.bf16.mxu0 %v2322_v5  ;;  %433 = vmatprep.subr.bf16.mxu1 %v2324_v6  ;;  %v2330_v10 = vld [vmem:[%s3677_s1 + $0x4c] ss:$16 sps:$4 sm:$0xff]   ;;  %v2332_v11 = vld [vmem:[%s3677_s1 + $0x40] ss:$16 sps:$4 sm:$0xff]   ;;  %v2333_v12 = vld [vmem:[%s3677_s1 + $0x48] ss:$16 sps:$4 sm:$0xff]  }
   0x5   :  { %v2334_v13 = vld [vmem:[%s3677_s1 + $0x64] ss:$16 sps:$4 sm:$0xff]   ;;  %v2336_v14 = vld [vmem:[%s3677_s1 + $0x6c] ss:$16 sps:$4 sm:$0xff]   ;;  %v2338_v15 = vld [vmem:[%s3677_s1 + $0x60] ss:$16 sps:$4 sm:$0xff]  }
   0x6   :  { %v2339_v16 = vld [vmem:[%s3677_s1 + $0x68] ss:$16 sps:$4 sm:$0xff]   ;;  %v2340_v17 = vld [vmem:[%s3677_s1 + $0x84] ss:$16 sps:$4 sm:$0xff]   ;;  %v2342_v18 = vld [vmem:[%s3677_s1 + $0x8c] ss:$16 sps:$4 sm:$0xff]  }
   0x7   :  { %321 = vmatpush1.bf16.msra.mxu0 %v2326_v7  ;;  %434 = vmatpush1.bf16.msra.mxu1 %v2327_v8  ;;  %v2344_v19 = vld [vmem:[%s3677_s1 + $0x80] ss:$16 sps:$4 sm:$0xff]   ;;  %v2345_v20 = vld [vmem:[%s3677_s1 + $0x88] ss:$16 sps:$4 sm:$0xff]   ;;  %v2346_v21 = vld [vmem:[%s3677_s1 + $0xa4] ss:$16 sps:$4 sm:$0xff]  }
   0x8   :  { %322 = vmatprep.subr.bf16.mxu0 %v2328_v9  ;;  %435 = vmatprep.subr.bf16.mxu1 %v2330_v10  ;;  %v2348_v22 = vld [vmem:[%s3677_s1 + $0xac] ss:$16 sps:$4 sm:$0xff]   ;;  %v2350_v23 = vld [vmem:[%s3677_s1 + $0xa0] ss:$16 sps:$4 sm:$0xff]   ;;  %v2351_v24 = vld [vmem:[%s3677_s1 + $0xa8] ss:$16 sps:$4 sm:$0xff]  }
   0x9   :  { %v2352_v25 = vld [vmem:[%s3677_s1 + $0xc4] ss:$16 sps:$4 sm:$0xff]   ;;  %v2354_v26 = vld [vmem:[%s3677_s1 + $0xcc] ss:$16 sps:$4 sm:$0xff]   ;;  %v2356_v27 = vld [vmem:[%s3677_s1 + $0xc0] ss:$16 sps:$4 sm:$0xff]  }
   0xa   :  { %v2357_v28 = vld [vmem:[%s3677_s1 + $0xc8] ss:$16 sps:$4 sm:$0xff]   ;;  %v2358_v29 = vld [vmem:[%s3677_s1 + $0xe4] ss:$16 sps:$4 sm:$0xff]   ;;  %v2360_v30 = vld [vmem:[%s3677_s1 + $0xec] ss:$16 sps:$4 sm:$0xff]  }
   0xb   :  { %323 = vmatpush1.bf16.msra.mxu0 %v2332_v11  ;;  %436 = vmatpush1.bf16.msra.mxu1 %v2333_v12  ;;  %v2362_v31 = vld [vmem:[%s3677_s1 + $0xe0] ss:$16 sps:$4 sm:$0xff]   ;;  %v2363_v32 = vld [vmem:[%s3677_s1 + $0xe8] ss:$16 sps:$4 sm:$0xff]   ;;  %v2743_v33 = vld [vmem:[%s3679_s2 + $0x4] ss:$16 sps:$4 sm:$0xff]  }
   0xc   :  { %324 = vmatprep.subr.bf16.mxu0 %v2334_v13  ;;  %437 = vmatprep.subr.bf16.mxu1 %v2336_v14  ;;  %v2748_v34 = vld [vmem:[%s3679_s2 + $0xc] ss:$16 sps:$4 sm:$0xff]   ;;  %v2364_v35 = vld [vmem:[%s3678_s0] sm:$0xff]   ;;  %v2768_v38 = vld [vmem:[%s3679_s2 + $0x8] ss:$16 sps:$4 sm:$0xff]   ;;  %v90_v13 = vlaneseq }
   0xd   :  { %v2756_v36 = vld [vmem:[%s3679_s2] ss:$16 sps:$4 sm:$0xff]   ;;  %v2762_v37 = vld [vmem:[%s3679_s2 + $0x24] ss:$16 sps:$4 sm:$0xff]   ;;  %v2773_v39 = vld [vmem:[%s3679_s2 + $0x2c] ss:$16 sps:$4 sm:$0xff]  }
   0xe   :  { %v2780_v40 = vld [vmem:[%s3679_s2 + $0x20] ss:$16 sps:$4 sm:$0xff]   ;;  %v2787_v41 = vld [vmem:[%s3679_s2 + $0x44] ss:$16 sps:$4 sm:$0xff]   ;;  %v2793_v42 = vld [vmem:[%s3679_s2 + $0x28] ss:$16 sps:$4 sm:$0xff]  }
   0xf   :  { %325 = vmatpush1.bf16.msra.mxu0 %v2338_v15  ;;  %438 = vmatpush1.bf16.msra.mxu1 %v2339_v16  ;;  %v2368_v43 = vld [vmem:[%s3678_s0 + $0x8] sm:$0xff]   ;;  %v2803_v44 = vld [vmem:[%s3679_s2 + $0x40] ss:$16 sps:$4 sm:$0xff]   ;;  %v2808_v45 = vld [vmem:[%s3679_s2 + $0x64] ss:$16 sps:$4 sm:$0xff]   ;;  %v91_v14 = vshrl.u32 %v90_v13, 7 }
  0x10   :  { %326 = vmatprep.subr.bf16.mxu0 %v2340_v17  ;;  %439 = vmatprep.subr.bf16.mxu1 %v2342_v18  ;;  %v2814_v46 = vld [vmem:[%s3679_s2 + $0x4c] ss:$16 sps:$4 sm:$0xff]   ;;  %v2820_v47 = vld [vmem:[%s3679_s2 + $0x48] ss:$16 sps:$4 sm:$0xff]   ;;  %v2833_v49 = vld [vmem:[%s3679_s2 + $0x60] ss:$16 sps:$4 sm:$0xff]  }
  0x11   :  { %v2825_v48 = vld [vmem:[%s3679_s2 + $0x6c] ss:$16 sps:$4 sm:$0xff]   ;;  %v2839_v50 = vld [vmem:[%s3679_s2 + $0x84] ss:$16 sps:$4 sm:$0xff]   ;;  %v2846_v51 = vld [vmem:[%s3679_s2 + $0x68] ss:$16 sps:$4 sm:$0xff]  }
  0x12   :  { %v2374_v52 = vld [vmem:[%s3678_s0 + $0x10] sm:$0xff]   ;;  %v2861_v54 = vld [vmem:[%s3679_s2 + $0x8c] ss:$16 sps:$4 sm:$0xff]   ;;  %v2873_v56 = vld [vmem:[%s3679_s2 + $0x88] ss:$16 sps:$4 sm:$0xff]   ;;  %v100_v15 = vsub.s32 2, %v91_v14 }
  0x13   :  { %327 = vmatpush1.bf16.msra.mxu0 %v2344_v19  ;;  %440 = vmatpush1.bf16.msra.mxu1 %v2345_v20  ;;  %v2855_v53 = vld [vmem:[%s3679_s2 + $0x80] ss:$16 sps:$4 sm:$0xff]   ;;  %v2867_v55 = vld [vmem:[%s3679_s2 + $0xa4] ss:$16 sps:$4 sm:$0xff]   ;;  %v2878_v57 = vld [vmem:[%s3679_s2 + $0xac] ss:$16 sps:$4 sm:$0xff]  }
  0x14   :  { %328 = vmatprep.subr.bf16.mxu0 %v2346_v21  ;;  %441 = vmatprep.subr.bf16.mxu1 %v2348_v22  ;;  %v2886_v58 = vld [vmem:[%s3679_s2 + $0xa0] ss:$16 sps:$4 sm:$0xff]   ;;  %v2893_v59 = vld [vmem:[%s3679_s2 + $0xc4] ss:$16 sps:$4 sm:$0xff]   ;;  %v2899_v60 = vld [vmem:[%s3679_s2 + $0xa8] ss:$16 sps:$4 sm:$0xff]  }
  0x15   :  { %v2381_v61 = vld [vmem:[%s3678_s0 + $0x18] sm:$0xff]   ;;  %v2909_v62 = vld [vmem:[%s3679_s2 + $0xc0] ss:$16 sps:$4 sm:$0xff]   ;;  %v2921_v0 = vld [vmem:[%s3679_s2 + $0xe4] ss:$16 sps:$4 sm:$0xff]   ;;  %v104_v16 = vsub.s32 3, %v91_v14 }
  0x16   :  { %v2914_v63 = vld [vmem:[%s3679_s2 + $0xcc] ss:$16 sps:$4 sm:$0xff]   ;;  %v2926_v2 = vld [vmem:[%s3679_s2 + $0xc8] ss:$16 sps:$4 sm:$0xff]   ;;  %v2940_v4 = vld [vmem:[%s3679_s2 + $0xe0] ss:$16 sps:$4 sm:$0xff]  }
  0x17   :  { %329 = vmatpush1.bf16.msra.mxu0 %v2350_v23  ;;  %442 = vmatpush1.bf16.msra.mxu1 %v2351_v24  ;;  %v2931_v3 = vld [vmem:[%s3679_s2 + $0xec] ss:$16 sps:$4 sm:$0xff]   ;;  %v2947_v5 = vld [vmem:[%s3679_s2 + $0xe8] ss:$16 sps:$4 sm:$0xff]   ;;  %v2388_v6 = vld [vmem:[%s3678_s0 + $0x20] sm:$0xff]   ;;  %v92_v17 = vsub.s32 0, %v91_v14 }
  0x18   :  { %330 = vmatprep.subr.bf16.mxu0 %v2352_v25  ;;  %443 = vmatprep.subr.bf16.mxu1 %v2354_v26  ;;  %v2395_v7 = vld [vmem:[%s3678_s0 + $0x28] sm:$0xff]   ;;  %v2402_v8 = vld [vmem:[%s3678_s0 + $0x30] sm:$0xff]   ;;  %v2410_v9 = vld [vmem:[%s3678_s0 + $0x38] sm:$0xff]   ;;  %v96_v19 = vsub.s32 1, %v91_v14 }
  0x19   :  { %v32_v10 = vld [vmem:[%s3680_s4] sm:$0xff]  ;;  %v33_v11 = vld [vmem:[%s3680_s4 + $0x8] sm:$0xff] }
  0x1a   :  { %v659_v12 = vpack.c.bf16 %v33_v11, %v32_v10  ;;  %v88_v18 = vld [vmem:[%s3681_s3] sm:$0xf] }
  0x1b   :  { %331 = vmatpush1.bf16.msra.mxu0 %v2356_v27  ;;  %444 = vmatpush1.bf16.msra.mxu1 %v2357_v28  ;;  %v3017_v20 = vrot.slane %v88_v18, %v100_v15  ;;  %v3019_v21 = vrot.slane %v88_v18, %v104_v16  ;;  %v3021_v22 = vrot.slane %v88_v18, %v92_v17 }
  0x1c   :  { %332 = vmatprep.subr.bf16.mxu0 %v2358_v29  ;;  %445 = vmatprep.subr.bf16.mxu1 %v2360_v30  ;;  %v3023_v24 = vrot.slane %v88_v18, %v96_v19 }
  0x1f   :  { %333 = vmatpush1.bf16.msra.mxu0 %v2362_v31  ;;  %446 = vmatpush1.bf16.msra.mxu1 %v2363_v32 }
  0x20   :  { %820 = vmatprep.subr.bf16.mxu0 %v2743_v33  ;;  %863 = vmatprep.subr.bf16.mxu1 %v2748_v34 }
  0x22   :  { %351 = vmatmul.mubr.bf16.vlgmr.msra.gmra.mrb[0].mxu0 %v2364_v35  ;;  %464 = vmatmul.mubr.bf16.vlgmr.msra.gmra.mrb[0].mxu1 %v2364_v35 }
  0x23   :  { %821 = vmatpush1.bf16.msra.mxu0 %v2756_v36  ;;  %360 = vmatprep.mubr.bf16.mxu0 %v3686_v1 }
  0x24   :  { %473 = vmatprep.mubr.bf16.mxu1 %v3686_v1  ;;  %822 = vmatprep.subr.bf16.mxu0 %v2762_v37 }
  0x25   :  { %864 = vmatpush1.bf16.msra.mxu1 %v2768_v38 }
  0x26   :  { %865 = vmatprep.subr.bf16.mxu1 %v2773_v39 }
  0x27   :  { %823 = vmatpush1.bf16.msra.mxu0 %v2780_v40 }
  0x28   :  { %824 = vmatprep.subr.bf16.mxu0 %v2787_v41 }
  0x29   :  { %866 = vmatpush1.bf16.msra.mxu1 %v2793_v42 }
  0x2a   :  { %361 = vmatmul.mubr.bf16.gmra.mrb[4].mxu0 %v2368_v43  ;;  %474 = vmatmul.mubr.bf16.gmra.mrb[4].mxu1 %v2368_v43 }
  0x2b   :  { %370 = vmatprep.mubr.bf16.mxu0 %v3686_v1  ;;  %483 = vmatprep.mubr.bf16.mxu1 %v3686_v1 }
  0x2c   :  { %825 = vmatpush1.bf16.msra.mxu0 %v2803_v44  ;;  %867 = vmatprep.subr.bf16.mxu1 %v2814_v46 }
  0x2d   :  { %826 = vmatprep.subr.bf16.mxu0 %v2808_v45  ;;  %868 = vmatpush1.bf16.msra.mxu1 %v2820_v47 }
  0x2e   :  { %869 = vmatprep.subr.bf16.mxu1 %v2825_v48 }
  0x30   :  { %827 = vmatpush1.bf16.msra.mxu0 %v2833_v49 }
  0x31   :  { %828 = vmatprep.subr.bf16.mxu0 %v2839_v50  ;;  %870 = vmatpush1.bf16.msra.mxu1 %v2846_v51 }
  0x32   :  { %371 = vmatmul.mubr.bf16.gmra.mrb[8].mxu0 %v2374_v52  ;;  %484 = vmatmul.mubr.bf16.gmra.mrb[8].mxu1 %v2374_v52 }
  0x33   :  { %380 = vmatprep.mubr.bf16.mxu0 %v3686_v1  ;;  %493 = vmatprep.mubr.bf16.mxu1 %v3686_v1 }
  0x34   :  { %829 = vmatpush1.bf16.msra.mxu0 %v2855_v53  ;;  %871 = vmatprep.subr.bf16.mxu1 %v2861_v54 }
  0x35   :  { %830 = vmatprep.subr.bf16.mxu0 %v2867_v55  ;;  %872 = vmatpush1.bf16.msra.mxu1 %v2873_v56 }
  0x36   :  { %873 = vmatprep.subr.bf16.mxu1 %v2878_v57 }
  0x38   :  { %831 = vmatpush1.bf16.msra.mxu0 %v2886_v58 }
  0x39   :  { %832 = vmatprep.subr.bf16.mxu0 %v2893_v59  ;;  %874 = vmatpush1.bf16.msra.mxu1 %v2899_v60 }
  0x3a   :  { %381 = vmatmul.mubr.bf16.gmra.mrb[12].mxu0 %v2381_v61  ;;  %494 = vmatmul.mubr.bf16.gmra.mrb[12].mxu1 %v2381_v61 }
  0x3b   :  { %390 = vmatprep.mubr.bf16.mxu0 %v3686_v1  ;;  %503 = vmatprep.mubr.bf16.mxu1 %v3686_v1 }
  0x3c   :  { %833 = vmatpush1.bf16.msra.mxu0 %v2909_v62  ;;  %875 = vmatprep.subr.bf16.mxu1 %v2914_v63 }
  0x3d   :  { %834 = vmatprep.subr.bf16.mxu0 %v2921_v0  ;;  %876 = vmatpush1.bf16.msra.mxu1 %v2926_v2 }
  0x3e   :  { %877 = vmatprep.subr.bf16.mxu1 %v2931_v3 }
  0x40   :  { %835 = vmatpush1.bf16.msra.mxu0 %v2940_v4 }
  0x41   :  { %878 = vmatpush1.bf16.msra.mxu1 %v2947_v5  ;;  %980 = vmatprep.subr.bf16.mxu0 %v2743_v33 }
  0x42   :  { %391 = vmatmul.mubr.bf16.gmra.mrb[16].mxu0 %v2388_v6  ;;  %504 = vmatmul.mubr.bf16.gmra.mrb[16].mxu1 %v2388_v6 }
  0x43   :  { %400 = vmatprep.mubr.bf16.mxu0 %v3686_v1  ;;  %513 = vmatprep.mubr.bf16.mxu1 %v3686_v1 }
  0x44   :  { %1023 = vmatprep.subr.bf16.mxu1 %v2748_v34 }
  0x4a   :  { %401 = vmatmul.mubr.bf16.gmra.mrb[20].mxu0 %v2395_v7  ;;  %514 = vmatmul.mubr.bf16.gmra.mrb[20].mxu1 %v2395_v7 }
  0x4b   :  { %410 = vmatprep.mubr.bf16.mxu0 %v3686_v1  ;;  %523 = vmatprep.mubr.bf16.mxu1 %v3686_v1 }
  0x52   :  { %411 = vmatmul.mubr.bf16.gmra.mrb[24].mxu0 %v2402_v8  ;;  %524 = vmatmul.mubr.bf16.gmra.mrb[24].mxu1 %v2402_v8 }
  0x53   :  { %420 = vmatprep.mubr.bf16.mxu0 %v3686_v1  ;;  %533 = vmatprep.mubr.bf16.mxu1 %v3686_v1 }
  0x5a   :  { %421 = vmatmul.mubr.bf16.gmra.mrb[28].mxu0 %v2410_v9  ;;  %534 = vmatmul.mubr.bf16.gmra.mrb[28].mxu1 %v2410_v9 }
  0x5b   :  { %852 = vmatprep.mubr.bf16.mxu0 %v3686_v1  ;;  %895 = vmatprep.mubr.bf16.mxu1 %v3686_v1 }
  0x62   :  { %853 = vmatmul.mubr.bf16.vlgmr.msra.gmra.mrb[32].mxu0 %v659_v12  ;;  %896 = vmatmul.mubr.bf16.vlgmr.msra.gmra.mrb[32].mxu1 %v659_v12 }
  0x63   :  { %981 = vmatpush1.bf16.msra.mxu0 %v2756_v36  ;;  %1024 = vmatpush1.bf16.msra.mxu1 %v2768_v38 }
  0x64   :  { %982 = vmatprep.subr.bf16.mxu0 %v2762_v37  ;;  %1025 = vmatprep.subr.bf16.mxu1 %v2773_v39 }
  0x65   :  { %1012 = vmatprep.mubr.bf16.mxu0 %v3686_v1  ;;  %1055 = vmatprep.mubr.bf16.mxu1 %v3686_v1 }
  0x67   :  { %983 = vmatpush1.bf16.msra.mxu0 %v2780_v40  ;;  %1026 = vmatpush1.bf16.msra.mxu1 %v2793_v42 }
  0x68   :  { %984 = vmatprep.subr.bf16.mxu0 %v2787_v41  ;;  %1027 = vmatprep.subr.bf16.mxu1 %v2814_v46 }
  0x6b   :  { %985 = vmatpush1.bf16.msra.mxu0 %v2803_v44  ;;  %1028 = vmatpush1.bf16.msra.mxu1 %v2820_v47 }
  0x6c   :  { %986 = vmatprep.subr.bf16.mxu0 %v2808_v45  ;;  %1029 = vmatprep.subr.bf16.mxu1 %v2825_v48 }
  0x6f   :  { %987 = vmatpush1.bf16.msra.mxu0 %v2833_v49  ;;  %1030 = vmatpush1.bf16.msra.mxu1 %v2846_v51 }
  0x70   :  { %988 = vmatprep.subr.bf16.mxu0 %v2839_v50  ;;  %1031 = vmatprep.subr.bf16.mxu1 %v2861_v54 }
  0x73   :  { %989 = vmatpush1.bf16.msra.mxu0 %v2855_v53  ;;  %1032 = vmatpush1.bf16.msra.mxu1 %v2873_v56 }
  0x74   :  { %990 = vmatprep.subr.bf16.mxu0 %v2867_v55  ;;  %1033 = vmatprep.subr.bf16.mxu1 %v2878_v57 }
  0x77   :  { %991 = vmatpush1.bf16.msra.mxu0 %v2886_v58  ;;  %1034 = vmatpush1.bf16.msra.mxu1 %v2899_v60 }
  0x78   :  { %992 = vmatprep.subr.bf16.mxu0 %v2893_v59  ;;  %1035 = vmatprep.subr.bf16.mxu1 %v2914_v63 }
  0x7b   :  { %993 = vmatpush1.bf16.msra.mxu0 %v2909_v62  ;;  %1036 = vmatpush1.bf16.msra.mxu1 %v2926_v2 }
  0x7c   :  { %994 = vmatprep.subr.bf16.mxu0 %v2921_v0  ;;  %1037 = vmatprep.subr.bf16.mxu1 %v2931_v3 }
  0x7f   :  { %995 = vmatpush1.bf16.msra.mxu0 %v2940_v4  ;;  %1038 = vmatpush1.bf16.msra.mxu1 %v2947_v5 }
  0x80   :  { %1141 = vmatprep.subr.bf16.mxu0 %v2743_v33  ;;  %1184 = vmatprep.subr.bf16.mxu1 %v2748_v34 }
  0xf5   :  { %v352_v23 = vpop.f32.mrb[0].mxu0  ;;  %v465_v25 = vpop.f32.mrb[0].mxu1 }
  0xf6   :  { %v354_v26 = vpop.f32.mrb[1].mxu0  ;;  %v466_v27 = vadd.f32 %v465_v25, %v3017_v20  ;;  %v467_v28 = vpop.f32.mrb[1].mxu1  ;;  %v353_v32 = vadd.f32 %v352_v23, %v3021_v22 }
  0xf7   :  { %v356_v29 = vpop.f32.mrb[2].mxu0  ;;  %v468_v30 = vadd.f32 %v467_v28, %v3019_v21  ;;  %v469_v31 = vpop.f32.mrb[2].mxu1  ;;  %v355_v6 = vadd.f32 %v354_v26, %v3023_v24 }
  0xf8   :  { %v357_v35 = vadd.f32 %v356_v29, %v3021_v22  ;;  %v358_v43 = vpop.f32.mrb[3].mxu0  ;;  %v470_v52 = vadd.f32 %v469_v31, %v3017_v20  ;;  %v471_v61 = vpop.f32.mrb[3].mxu1 }
  0xf9   :  { %v359_v7 = vadd.f32 %v358_v43, %v3023_v24  ;;  %v472_v8 = vadd.f32 %v471_v61, %v3019_v21 }
  0xfa   :  { %v3033_v9 = vpack.c.bf16 %v357_v35, %v353_v32  ;;  %v3035_v10 = vpack.c.bf16 %v470_v52, %v466_v27 }
  0xfb   :  { %v3037_v11 = vpack.c.bf16 %v359_v7, %v355_v6  ;;  %v3039_v12 = vpack.c.bf16 %v472_v8, %v468_v30 }
  0xfd   :  { %v362_v13 = vpop.f32.mrb[4].mxu0  ;;  %v475_v14 = vpop.f32.mrb[4].mxu1 }
  0xfe   :  { %v363_v15 = vadd.f32 %v362_v13, %v3021_v22  ;;  %v364_v16 = vpop.f32.mrb[5].mxu0  ;;  %v476_v17 = vadd.f32 %v475_v14, %v3017_v20  ;;  %v477_v18 = vpop.f32.mrb[5].mxu1 }
  0xff   :  { %v365_v19 = vadd.f32 %v364_v16, %v3023_v24  ;;  %v366_v23 = vpop.f32.mrb[6].mxu0  ;;  %v478_v25 = vadd.f32 %v477_v18, %v3019_v21  ;;  %v479_v26 = vpop.f32.mrb[6].mxu1 }
 0x100   :  { %v367_v27 = vadd.f32 %v366_v23, %v3021_v22  ;;  %v368_v28 = vpop.f32.mrb[7].mxu0  ;;  %v480_v29 = vadd.f32 %v479_v26, %v3017_v20  ;;  %v481_v30 = vpop.f32.mrb[7].mxu1 }
 0x101   :  { %v369_v31 = vadd.f32 %v368_v28, %v3023_v24  ;;  %v482_v32 = vadd.f32 %v481_v30, %v3019_v21 }
 0x102   :  { %v3049_v35 = vpack.c.bf16 %v367_v27, %v363_v15  ;;  %v3051_v43 = vpack.c.bf16 %v480_v29, %v476_v17 }
 0x103   :  { %v3053_v52 = vpack.c.bf16 %v369_v31, %v365_v19  ;;  %v3055_v61 = vpack.c.bf16 %v482_v32, %v478_v25 }
 0x105   :  { %3712 = vst [vmem:[#allocation5_spill] sm:$0xff] %v3055_v61  ;;  %v372_v6 = vpop.f32.mrb[8].mxu0  ;;  %v485_v7 = vpop.f32.mrb[8].mxu1 }
 0x106   :  { %v373_v8 = vadd.f32 %v372_v6, %v3021_v22  ;;  %v374_v13 = vpop.f32.mrb[9].mxu0  ;;  %v486_v14 = vadd.f32 %v485_v7, %v3017_v20  ;;  %v487_v16 = vpop.f32.mrb[9].mxu1 }
 0x107   :  { %v375_v18 = vadd.f32 %v374_v13, %v3023_v24  ;;  %v376_v23 = vpop.f32.mrb[10].mxu0  ;;  %v488_v15 = vadd.f32 %v487_v16, %v3019_v21  ;;  %v489_v26 = vpop.f32.mrb[10].mxu1 }
 0x108   :  { %v377_v17 = vadd.f32 %v376_v23, %v3021_v22  ;;  %v378_v19 = vpop.f32.mrb[11].mxu0  ;;  %v490_v25 = vadd.f32 %v489_v26, %v3017_v20  ;;  %v491_v27 = vpop.f32.mrb[11].mxu1 }
 0x109   :  { %v379_v28 = vadd.f32 %v378_v19, %v3023_v24  ;;  %v492_v29 = vadd.f32 %v491_v27, %v3019_v21 }
 0x10a   :  { %v3065_v30 = vpack.c.bf16 %v377_v17, %v373_v8  ;;  %v3067_v31 = vpack.c.bf16 %v490_v25, %v486_v14 }
 0x10b   :  { %v3069_v32 = vpack.c.bf16 %v379_v28, %v375_v18  ;;  %v3071_v6 = vpack.c.bf16 %v492_v29, %v488_v15 }
 0x10c   :  { %3713 = vst [vmem:[#allocation6_spill] sm:$0xff] %v3065_v30  ;;  %3714 = vst [vmem:[#allocation7_spill] sm:$0xff] %v3067_v31 }
 0x10d   :  { %3715 = vst [vmem:[#allocation8_spill] sm:$0xff] %v3069_v32  ;;  %3716 = vst [vmem:[#allocation9_spill] sm:$0xff] %v3071_v6  ;;  %v382_v7 = vpop.f32.mrb[12].mxu0  ;;  %v495_v13 = vpop.f32.mrb[12].mxu1 }
 0x10e   :  { %v383_v16 = vadd.f32 %v382_v7, %v3021_v22  ;;  %v384_v23 = vpop.f32.mrb[13].mxu0  ;;  %v496_v26 = vadd.f32 %v495_v13, %v3017_v20  ;;  %v497_v1 = vpop.f32.mrb[13].mxu1 }
 0x10f   :  { %v385_v19 = vadd.f32 %v384_v23, %v3023_v24  ;;  %v386_v61 = vpop.f32.mrb[14].mxu0  ;;  %v498_v8 = vadd.f32 %v497_v1, %v3019_v21  ;;  %v499_v17 = vpop.f32.mrb[14].mxu1 }
 0x110   :  { %v387_v14 = vadd.f32 %v386_v61, %v3021_v22  ;;  %v388_v18 = vpop.f32.mrb[15].mxu0  ;;  %v500_v15 = vadd.f32 %v499_v17, %v3017_v20  ;;  %v501_v25 = vpop.f32.mrb[15].mxu1 }
 0x111   :  { %v389_v27 = vadd.f32 %v388_v18, %v3023_v24  ;;  %v502_v28 = vadd.f32 %v501_v25, %v3019_v21 }
 0x112   :  { %v3081_v29 = vpack.c.bf16 %v387_v14, %v383_v16  ;;  %v3083_v7 = vpack.c.bf16 %v500_v15, %v496_v26 }
 0x113   :  { %v3085_v13 = vpack.c.bf16 %v389_v27, %v385_v19  ;;  %v3087_v23 = vpack.c.bf16 %v502_v28, %v498_v8 }
 0x114   :  { %3717 = vst [vmem:[#allocation10_spill] sm:$0xff] %v3081_v29  ;;  %3718 = vst [vmem:[#allocation11_spill] sm:$0xff] %v3083_v7 }
 0x115   :  { %3719 = vst [vmem:[#allocation12_spill] sm:$0xff] %v3085_v13  ;;  %3720 = vst [vmem:[#allocation13_spill] sm:$0xff] %v3087_v23  ;;  %v392_v1 = vpop.f32.mrb[16].mxu0  ;;  %v505_v6 = vpop.f32.mrb[16].mxu1 }
 0x116   :  { %v393_v61 = vadd.f32 %v392_v1, %v3021_v22  ;;  %v394_v32 = vpop.f32.mrb[17].mxu0  ;;  %v506_v17 = vadd.f32 %v505_v6, %v3017_v20  ;;  %v507_v31 = vpop.f32.mrb[17].mxu1 }
 0x117   :  { %v395_v18 = vadd.f32 %v394_v32, %v3023_v24  ;;  %v396_v30 = vpop.f32.mrb[18].mxu0  ;;  %v508_v16 = vadd.f32 %v507_v31, %v3019_v21  ;;  %v509_v14 = vpop.f32.mrb[18].mxu1 }
 0x118   :  { %v397_v26 = vadd.f32 %v396_v30, %v3021_v22  ;;  %v398_v19 = vpop.f32.mrb[19].mxu0  ;;  %v510_v8 = vadd.f32 %v509_v14, %v3017_v20  ;;  %v511_v15 = vpop.f32.mrb[19].mxu1 }
 0x119   :  { %v399_v25 = vadd.f32 %v398_v19, %v3023_v24  ;;  %v512_v27 = vadd.f32 %v511_v15, %v3019_v21 }
 0x11a   :  { %v3097_v28 = vpack.c.bf16 %v397_v26, %v393_v61  ;;  %v3099_v6 = vpack.c.bf16 %v510_v8, %v506_v17 }
 0x11b   :  { %v3101_v1 = vpack.c.bf16 %v399_v25, %v395_v18  ;;  %v3103_v32 = vpack.c.bf16 %v512_v27, %v508_v16 }
 0x11c   :  { %3721 = vst [vmem:[#allocation14_spill] sm:$0xff] %v3097_v28  ;;  %3722 = vst [vmem:[#allocation15_spill] sm:$0xff] %v3099_v6 }
 0x11d   :  { %3723 = vst [vmem:[#allocation16_spill] sm:$0xff] %v3101_v1  ;;  %3724 = vst [vmem:[#allocation17_spill] sm:$0xff] %v3103_v32  ;;  %v402_v31 = vpop.f32.mrb[20].mxu0  ;;  %v515_v23 = vpop.f32.mrb[20].mxu1 }
 0x11e   :  { %v403_v30 = vadd.f32 %v402_v31, %v3021_v22  ;;  %v404_v13 = vpop.f32.mrb[21].mxu0  ;;  %v516_v14 = vadd.f32 %v515_v23, %v3017_v20  ;;  %v517_v7 = vpop.f32.mrb[21].mxu1 }
 0x11f   :  { %v405_v19 = vadd.f32 %v404_v13, %v3023_v24  ;;  %v406_v29 = vpop.f32.mrb[22].mxu0  ;;  %v518_v61 = vadd.f32 %v517_v7, %v3019_v21  ;;  %v519_v26 = vpop.f32.mrb[22].mxu1 }
 0x120   :  { %v407_v17 = vadd.f32 %v406_v29, %v3021_v22  ;;  %v408_v18 = vpop.f32.mrb[23].mxu0  ;;  %v520_v16 = vadd.f32 %v519_v26, %v3017_v20  ;;  %v521_v8 = vpop.f32.mrb[23].mxu1 }
 0x121   :  { %v409_v15 = vadd.f32 %v408_v18, %v3023_v24  ;;  %v522_v25 = vadd.f32 %v521_v8, %v3019_v21 }
 0x122   :  { %v3113_v27 = vpack.c.bf16 %v407_v17, %v403_v30  ;;  %v3115_v23 = vpack.c.bf16 %v520_v16, %v516_v14 }
 0x123   :  { %v3117_v31 = vpack.c.bf16 %v409_v15, %v405_v19  ;;  %v3119_v13 = vpack.c.bf16 %v522_v25, %v518_v61 }
 0x124   :  { %3725 = vst [vmem:[#allocation18_spill] sm:$0xff] %v3113_v27  ;;  %3726 = vst [vmem:[#allocation19_spill] sm:$0xff] %v3115_v23 }
 0x125   :  { %3727 = vst [vmem:[#allocation20_spill] sm:$0xff] %v3117_v31  ;;  %3728 = vst [vmem:[#allocation21_spill] sm:$0xff] %v3119_v13  ;;  %v412_v7 = vpop.f32.mrb[24].mxu0  ;;  %v525_v32 = vpop.f32.mrb[24].mxu1 }
 0x126   :  { %v413_v29 = vadd.f32 %v412_v7, %v3021_v22  ;;  %v414_v1 = vpop.f32.mrb[25].mxu0  ;;  %v526_v26 = vadd.f32 %v525_v32, %v3017_v20  ;;  %v527_v6 = vpop.f32.mrb[25].mxu1 }
 0x127   :  { %v415_v18 = vadd.f32 %v414_v1, %v3023_v24  ;;  %v416_v28 = vpop.f32.mrb[26].mxu0  ;;  %v528_v30 = vadd.f32 %v527_v6, %v3019_v21  ;;  %v529_v17 = vpop.f32.mrb[26].mxu1 }
 0x128   :  { %v417_v14 = vadd.f32 %v416_v28, %v3021_v22  ;;  %v418_v19 = vpop.f32.mrb[27].mxu0  ;;  %v530_v61 = vadd.f32 %v529_v17, %v3017_v20  ;;  %v531_v16 = vpop.f32.mrb[27].mxu1 }
 0x129   :  { %v419_v8 = vadd.f32 %v418_v19, %v3023_v24  ;;  %v532_v15 = vadd.f32 %v531_v16, %v3019_v21 }
 0x12a   :  { %v3129_v25 = vpack.c.bf16 %v417_v14, %v413_v29  ;;  %v3131_v32 = vpack.c.bf16 %v530_v61, %v526_v26 }
 0x12b   :  { %v3133_v7 = vpack.c.bf16 %v419_v8, %v415_v18  ;;  %v3135_v1 = vpack.c.bf16 %v532_v15, %v528_v30 }
 0x12c   :  { %3729 = vst [vmem:[#allocation22_spill] sm:$0xff] %v3131_v32 }
 0x12d   :  { %3730 = vst [vmem:[#allocation23_spill] sm:$0xff] %v3133_v7  ;;  %3731 = vst [vmem:[#allocation24_spill] sm:$0xff] %v3135_v1  ;;  %v422_v6 = vpop.f32.mrb[28].mxu0  ;;  %v535_v13 = vpop.f32.mrb[28].mxu1 }
 0x12e   :  { %v423_v28 = vadd.f32 %v422_v6, %v3021_v22  ;;  %v424_v31 = vpop.f32.mrb[29].mxu0  ;;  %v536_v17 = vadd.f32 %v535_v13, %v3017_v20  ;;  %v537_v23 = vpop.f32.mrb[29].mxu1 }
 0x12f   :  { %v425_v19 = vadd.f32 %v424_v31, %v3023_v24  ;;  %v426_v27 = vpop.f32.mrb[30].mxu0  ;;  %v538_v29 = vadd.f32 %v537_v23, %v3019_v21  ;;  %v539_v14 = vpop.f32.mrb[30].mxu1  ;;  %v651_v23 = vunpack.c.l.bf16 %v3033_v9 }
 0x130   :  { %v427_v26 = vadd.f32 %v426_v27, %v3021_v22  ;;  %v428_v18 = vpop.f32.mrb[31].mxu0  ;;  %v540_v30 = vadd.f32 %v539_v14, %v3017_v20  ;;  %v541_v61 = vpop.f32.mrb[31].mxu1  ;;  %v653_v22 = vunpack.c.l.bf16 %v3035_v10  ;;  %v652_v20 = vunpack.c.l.bf16 %v3037_v11 }
 0x131   :  { %v429_v16 = vadd.f32 %v428_v18, %v3023_v24  ;;  %v542_v8 = vadd.f32 %v541_v61, %v3019_v21  ;;  %v654_v24 = vunpack.c.l.bf16 %v3039_v12 }
 0x132   :  { %v3145_v15 = vpack.c.bf16 %v427_v26, %v423_v28  ;;  %v3147_v13 = vpack.c.bf16 %v540_v30, %v536_v17  ;;  %v655_v17 = vunpack.c.h.bf16 %v3033_v9 }
 0x133   :  { %v3149_v6 = vpack.c.bf16 %v429_v16, %v425_v19  ;;  %v3151_v31 = vpack.c.bf16 %v542_v8, %v538_v29  ;;  %v657_v19 = vunpack.c.h.bf16 %v3035_v10  ;;  %v656_v16 = vunpack.c.h.bf16 %v3037_v11 }
 0x134   :  { %3732 = vst [vmem:[#allocation25_spill] sm:$0xff] %v3145_v15  ;;  %3733 = vst [vmem:[#allocation26_spill] sm:$0xff] %v3147_v13  ;;  %v658_v8 = vunpack.c.h.bf16 %v3039_v12 }
 0x135   :  { %3734 = vst [vmem:[#allocation27_spill] sm:$0xff] %v3149_v6  ;;  %3735 = vst [vmem:[#allocation28_spill] sm:$0xff] %v3151_v31  ;;  %v854_v27 = vpop.f32.mrb[32].mxu0  ;;  %v897_v1 = vpop.f32.mrb[32].mxu1 }
 0x136   :  { %v906_v14 = vadd.f32 %v854_v27, %v651_v23  ;;  %v908_v21 = vadd.f32 %v897_v1, %v653_v22  ;;  %v856_v28 = vpop.f32.mrb[33].mxu0  ;;  %v899_v26 = vpop.f32.mrb[33].mxu1 }
 0x137   :  { %v907_v29 = vadd.f32 %v856_v28, %v652_v20  ;;  %v909_v18 = vadd.f32 %v899_v26, %v654_v24  ;;  %v858_v30 = vpop.f32.mrb[34].mxu0  ;;  %v901_v61 = vpop.f32.mrb[34].mxu1 }
 0x138   :  { %v910_v31 = vadd.f32 %v858_v30, %v655_v17  ;;  %v912_v6 = vadd.f32 %v901_v61, %v657_v19  ;;  %v860_v13 = vpop.f32.mrb[35].mxu0  ;;  %v903_v15 = vpop.f32.mrb[35].mxu1  ;;  %v37_v17 = vld [vmem:[%s3682_s5 + $0x8] sm:$0xff] }
 0x139   :  { %v911_v23 = vadd.f32 %v860_v13, %v656_v16  ;;  %v913_v1 = vadd.f32 %v903_v15, %v658_v8 }
 0x13a   :  { %v914_v22 = vpack.c.bf16 %v910_v31, %v906_v14  ;;  %v916_v27 = vpack.c.bf16 %v912_v6, %v908_v21 }
 0x13b   :  { %v915_v7 = vpack.c.bf16 %v911_v23, %v907_v29  ;;  %v917_v9 = vpack.c.bf16 %v913_v1, %v909_v18 }
 0x13c   :  { %v2198_v32 = vmul.bf16 3216621497, %v914_v22 }
 0x13d   :  { %v2199_v10 = vmul.bf16 3216621497, %v915_v7  ;;  %v2200_v20 = vmul.bf16 3216621497, %v917_v9 }
 0x13e   :  { %2420 = vpow.bf16 %v2198_v32  ;;  %v36_v32 = vld [vmem:[%s3682_s5] sm:$0xff] }
 0x13f   :  { %2422 = vpow.bf16 %v2199_v10 }
 0x140   :  { %2424 = vpow.bf16 %v2200_v20 }
 0x149   :  { %v2421_v24 = vpop.eup %2420 }
 0x14a   :  { %v2423_v11 = vpop.eup %2422  ;;  %v922_v28 = vadd.bf16 1065369472, %v2421_v24 }
 0x14b   :  { %v929_v12 = vadd.bf16 1065369472, %v2423_v11  ;;  %v2425_v26 = vpop.eup %2424 }
 0x14c   :  { %2426 = vrcp.bf16 %v922_v28  ;;  %v937_v13 = vadd.bf16 1065369472, %v2425_v26 }
 0x14d   :  { %2428 = vrcp.bf16 %v929_v12  ;;  %v3736_v12 = vmov 0  }
 0x14e   :  { %2430 = vtanh.bf16 %v916_v27 }
 0x14f   :  { %2432 = vrcp.bf16 %v937_v13 }
 0x157   :  { %v2427_v15 = vpop.eup %2426 }
 0x158   :  { %v2429_v31 = vpop.eup %2428  ;;  %v924_v6 = vmul.bf16 1065369472, %v2427_v15 }
 0x159   :  { %v2431_v14 = vpop.eup %2430  ;;  %v931_v21 = vmul.bf16 1065369472, %v2429_v31 }
 0x15a   :  { %v944_v7 = vmul.bf16 %v2431_v14, %v924_v6  ;;  %v2433_v1 = vpop.eup %2432  ;;  %v976_v14 = vunpack.c.h.bf16 %v3049_v35 }
 0x15b   :  { %v940_v19 = vunpack.c.l.bf16 %v931_v21  ;;  %v941_v29 = vunpack.c.h.bf16 %v931_v21  ;;  %v939_v22 = vmul.bf16 1065369472, %v2433_v1 }
 0x15c   :  { %v945_v18 = vunpack.c.l.bf16 %v944_v7  ;;  %v946_v30 = vunpack.c.h.bf16 %v944_v7 }
 0x15d   :  { %v942_v61 = vmul.f32 %v940_v19, %v36_v32  ;;  %v943_v16 = vmul.f32 %v941_v29, %v37_v17  ;;  %v951_v27 = vunpack.c.l.bf16 %v939_v22  ;;  %v952_v10 = vunpack.c.h.bf16 %v939_v22 }
 0x15e   :  { %v977_v17 = vunpack.c.h.bf16 %v3053_v52 }
 0x15f   :  { %v3167_v8 = vadd.f32 %v945_v18, %v942_v61  ;;  %v3169_v23 = vadd.f32 %v946_v30, %v943_v16 }
 0x161   :  { %2434 = vtanh.f32 %v3167_v8 }
 0x162   :  { %2436 = vtanh.f32 %v3169_v23 }
 0x16b   :  { %v2435_v9 = vpop.eup %2434 }
 0x16c   :  { %v2437_v20 = vpop.eup %2436  ;;  %v953_v24 = vmul.f32 %v2435_v9, %v951_v27 }
 0x16d   :  { %v954_v11 = vmul.f32 %v2437_v20, %v952_v10 }
 0x16f   :  { %v955_v28 = vpack.c.bf16 %v954_v11, %v953_v24 }
 0x171   :  { %2272 = vst [vmem:[%s3683_s6] sm:$0xff] %v955_v28   ;;  %1013 = vmatmul.mubr.bf16.vlgmr.msra.gmra.mrb[36].mxu0 %v955_v28  ;;  %1056 = vmatmul.mubr.bf16.vlgmr.msra.gmra.mrb[36].mxu1 %v955_v28 }
 0x172   :  { %1142 = vmatpush1.bf16.msra.mxu0 %v2756_v36  ;;  %1185 = vmatpush1.bf16.msra.mxu1 %v2768_v38  ;;  %v972_v36 = vunpack.c.l.bf16 %v3049_v35 }
 0x173   :  { %1143 = vmatprep.subr.bf16.mxu0 %v2762_v37  ;;  %1186 = vmatprep.subr.bf16.mxu1 %v2773_v39  ;;  %v974_v37 = vunpack.c.l.bf16 %v3051_v43 }
 0x174   :  { %1173 = vmatprep.mubr.bf16.mxu0 %v3736_v12  ;;  %1216 = vmatprep.mubr.bf16.mxu1 %v3736_v12 }
 0x176   :  { %1144 = vmatpush1.bf16.msra.mxu0 %v2780_v40  ;;  %1187 = vmatpush1.bf16.msra.mxu1 %v2793_v42  ;;  %v973_v40 = vunpack.c.l.bf16 %v3053_v52 }
 0x177   :  { %1145 = vmatprep.subr.bf16.mxu0 %v2787_v41  ;;  %1188 = vmatprep.subr.bf16.mxu1 %v2814_v46  ;;  %v3737_v41 = vld [vmem:[#allocation5_spill] sm:$0xff] }
 0x178   :  { %v975_v26 = vunpack.c.l.bf16 %v3737_v41  ;;  %v979_v19 = vunpack.c.h.bf16 %v3737_v41 }
 0x17a   :  { %1146 = vmatpush1.bf16.msra.mxu0 %v2803_v44  ;;  %1189 = vmatpush1.bf16.msra.mxu1 %v2820_v47 }
 0x17b   :  { %1147 = vmatprep.subr.bf16.mxu0 %v2808_v45  ;;  %1190 = vmatprep.subr.bf16.mxu1 %v2825_v48 }
 0x17e   :  { %1148 = vmatpush1.bf16.msra.mxu0 %v2833_v49  ;;  %1191 = vmatpush1.bf16.msra.mxu1 %v2846_v51 }
 0x17f   :  { %1149 = vmatprep.subr.bf16.mxu0 %v2839_v50  ;;  %1192 = vmatprep.subr.bf16.mxu1 %v2861_v54 }
 0x182   :  { %1150 = vmatpush1.bf16.msra.mxu0 %v2855_v53  ;;  %1193 = vmatpush1.bf16.msra.mxu1 %v2873_v56 }
 0x183   :  { %1151 = vmatprep.subr.bf16.mxu0 %v2867_v55  ;;  %1194 = vmatprep.subr.bf16.mxu1 %v2878_v57 }
 0x186   :  { %1152 = vmatpush1.bf16.msra.mxu0 %v2886_v58  ;;  %1195 = vmatpush1.bf16.msra.mxu1 %v2899_v60 }
 0x187   :  { %1153 = vmatprep.subr.bf16.mxu0 %v2893_v59  ;;  %1196 = vmatprep.subr.bf16.mxu1 %v2914_v63 }
 0x18a   :  { %1154 = vmatpush1.bf16.msra.mxu0 %v2909_v62  ;;  %1197 = vmatpush1.bf16.msra.mxu1 %v2926_v2 }
 0x18b   :  { %1155 = vmatprep.subr.bf16.mxu0 %v2921_v0  ;;  %1198 = vmatprep.subr.bf16.mxu1 %v2931_v3 }
 0x18e   :  { %1156 = vmatpush1.bf16.msra.mxu0 %v2940_v4  ;;  %1199 = vmatpush1.bf16.msra.mxu1 %v2947_v5 }
 0x18f   :  { %1302 = vmatprep.subr.bf16.mxu0 %v2743_v33  ;;  %1345 = vmatprep.subr.bf16.mxu1 %v2748_v34  ;;  %v978_v33 = vunpack.c.h.bf16 %v3051_v43 }
 0x244   :  { %v1014_v38 = vpop.f32.mrb[36].mxu0  ;;  %v1057_v39 = vpop.f32.mrb[36].mxu1 }
 0x245   :  { %v1066_v13 = vadd.f32 %v1014_v38, %v972_v36  ;;  %v1068_v15 = vadd.f32 %v1057_v39, %v974_v37  ;;  %v1016_v31 = vpop.f32.mrb[37].mxu0  ;;  %v1059_v6 = vpop.f32.mrb[37].mxu1 }
 0x246   :  { %v1067_v21 = vadd.f32 %v1016_v31, %v973_v40  ;;  %v1069_v34 = vadd.f32 %v1059_v6, %v975_v26  ;;  %v1018_v7 = vpop.f32.mrb[38].mxu0  ;;  %v1061_v32 = vpop.f32.mrb[38].mxu1 }
 0x247   :  { %v1070_v29 = vadd.f32 %v1018_v7, %v976_v14  ;;  %v1072_v18 = vadd.f32 %v1061_v32, %v978_v33  ;;  %v1020_v30 = vpop.f32.mrb[39].mxu0  ;;  %v1063_v61 = vpop.f32.mrb[39].mxu1 }
 0x248   :  { %v1071_v16 = vadd.f32 %v1020_v30, %v977_v17  ;;  %v1073_v1 = vadd.f32 %v1063_v61, %v979_v19 }
 0x249   :  { %v1074_v22 = vpack.c.bf16 %v1070_v29, %v1066_v13  ;;  %v1076_v27 = vpack.c.bf16 %v1072_v18, %v1068_v15 }
 0x24a   :  { %v1075_v9 = vpack.c.bf16 %v1071_v16, %v1067_v21  ;;  %v1077_v35 = vpack.c.bf16 %v1073_v1, %v1069_v34 }
 0x24b   :  { %v2203_v10 = vmul.bf16 3216621497, %v1074_v22  ;;  %v3244_v22 = vld [vmem:[%s3679_s2 + $0x24] ss:$16 sps:$4 sm:$0xff]  }
 0x24c   :  { %v2204_v43 = vmul.bf16 3216621497, %v1075_v9  ;;  %v2205_v20 = vmul.bf16 3216621497, %v1077_v35  ;;  %v3258_v9 = vld [vmem:[%s3679_s2 + $0x20] ss:$16 sps:$4 sm:$0xff]  }
 0x24d   :  { %2438 = vpow.bf16 %v2203_v10  ;;  %v3265_v35 = vld [vmem:[%s3679_s2 + $0x44] ss:$16 sps:$4 sm:$0xff]  }
 0x24e   :  { %2440 = vpow.bf16 %v2204_v43 }
 0x24f   :  { %2442 = vpow.bf16 %v2205_v20 }
 0x258   :  { %v2439_v24 = vpop.eup %2438 }
 0x259   :  { %v2441_v52 = vpop.eup %2440  ;;  %v1082_v11 = vadd.bf16 1065369472, %v2439_v24 }
 0x25a   :  { %v1089_v28 = vadd.bf16 1065369472, %v2441_v52  ;;  %v2443_v36 = vpop.eup %2442 }
 0x25b   :  { %2444 = vrcp.bf16 %v1082_v11  ;;  %v1097_v37 = vadd.bf16 1065369472, %v2443_v36 }
 0x25c   :  { %2446 = vrcp.bf16 %v1089_v28 }
 0x25d   :  { %2448 = vtanh.bf16 %v1076_v27  ;;  %v3250_v27 = vld [vmem:[%s3679_s2 + $0x2c] ss:$16 sps:$4 sm:$0xff]  }
 0x25e   :  { %2450 = vrcp.bf16 %v1097_v37 }
 0x266   :  { %v2445_v38 = vpop.eup %2444 }
 0x267   :  { %v2447_v39 = vpop.eup %2446  ;;  %v1084_v40 = vmul.bf16 1065369472, %v2445_v38 }
 0x268   :  { %v2449_v41 = vpop.eup %2448  ;;  %v1091_v26 = vmul.bf16 1065369472, %v2447_v39 }
 0x269   :  { %v1104_v13 = vmul.bf16 %v2449_v41, %v1084_v40  ;;  %v2451_v32 = vpop.eup %2450 }
 0x26a   :  { %v1100_v15 = vunpack.c.l.bf16 %v1091_v26  ;;  %v1101_v31 = vunpack.c.h.bf16 %v1091_v26  ;;  %v1099_v17 = vmul.bf16 1065369472, %v2451_v32 }
 0x26b   :  { %v1105_v6 = vunpack.c.l.bf16 %v1104_v13  ;;  %v1106_v14 = vunpack.c.h.bf16 %v1104_v13 }
 0x26c   :  { %v1102_v33 = vmul.f32 %v1100_v15, %v3167_v8  ;;  %v1103_v21 = vmul.f32 %v1101_v31, %v3169_v23  ;;  %v1111_v19 = vunpack.c.l.bf16 %v1099_v17  ;;  %v1112_v18 = vunpack.c.h.bf16 %v1099_v17  ;;  %v3232_v8 = vld [vmem:[%s3679_s2] ss:$16 sps:$4 sm:$0xff]   ;;  %v3238_v23 = vld [vmem:[%s3679_s2 + $0x8] ss:$16 sps:$4 sm:$0xff]  }
 0x26e   :  { %v3220_v34 = vadd.f32 %v1105_v6, %v1102_v33  ;;  %v3222_v7 = vadd.f32 %v1106_v14, %v1103_v21 }
 0x270   :  { %2452 = vtanh.f32 %v3220_v34 }
 0x271   :  { %2454 = vtanh.f32 %v3222_v7 }
 0x27a   :  { %v2453_v29 = vpop.eup %2452 }
 0x27b   :  { %v2455_v30 = vpop.eup %2454  ;;  %v1113_v61 = vmul.f32 %v2453_v29, %v1111_v19 }
 0x27c   :  { %v1114_v16 = vmul.f32 %v2455_v30, %v1112_v18 }
 0x27e   :  { %v1115_v1 = vpack.c.bf16 %v1114_v16, %v1113_v61 }
 0x280   :  { %2308 = vst [vmem:[%s3683_s6 + $0x8] sm:$0xff] %v1115_v1   ;;  %1174 = vmatmul.mubr.bf16.vlgmr.msra.gmra.mrb[40].mxu0 %v1115_v1  ;;  %1217 = vmatmul.mubr.bf16.vlgmr.msra.gmra.mrb[40].mxu1 %v1115_v1 }
 0x281   :  { %1303 = vmatpush1.bf16.msra.mxu0 %v3232_v8  ;;  %1346 = vmatpush1.bf16.msra.mxu1 %v3238_v23 }
 0x282   :  { %1304 = vmatprep.subr.bf16.mxu0 %v3244_v22  ;;  %1347 = vmatprep.subr.bf16.mxu1 %v3250_v27 }
 0x283   :  { %1334 = vmatprep.mubr.bf16.mxu0 %v3736_v12  ;;  %1377 = vmatprep.mubr.bf16.mxu1 %v3736_v12 }
 0x285   :  { %1305 = vmatpush1.bf16.msra.mxu0 %v3258_v9  ;;  %1348 = vmatpush1.bf16.msra.mxu1 %v2793_v42  ;;  %v3294_v42 = vld [vmem:[%s3679_s2 + $0x4] ss:$16 sps:$4 sm:$0xff]  }
 0x286   :  { %1306 = vmatprep.subr.bf16.mxu0 %v3265_v35  ;;  %1349 = vmatprep.subr.bf16.mxu1 %v2814_v46 }
 0x289   :  { %1307 = vmatpush1.bf16.msra.mxu0 %v2803_v44  ;;  %1350 = vmatpush1.bf16.msra.mxu1 %v2820_v47  ;;  %v3300_v44 = vld [vmem:[%s3679_s2 + $0xc] ss:$16 sps:$4 sm:$0xff]   ;;  %v3739_v47 = vld [vmem:[#allocation7_spill] sm:$0xff] }
 0x28a   :  { %1308 = vmatprep.subr.bf16.mxu0 %v2808_v45  ;;  %1351 = vmatprep.subr.bf16.mxu1 %v2825_v48  ;;  %v3738_v45 = vld [vmem:[#allocation6_spill] sm:$0xff]  ;;  %v1135_v48 = vunpack.c.l.bf16 %v3739_v47 }
 0x28b   :  { %v1133_v46 = vunpack.c.l.bf16 %v3738_v45 }
 0x28d   :  { %1309 = vmatpush1.bf16.msra.mxu0 %v2833_v49  ;;  %1352 = vmatpush1.bf16.msra.mxu1 %v2846_v51  ;;  %v3740_v51 = vld [vmem:[#allocation8_spill] sm:$0xff] }
 0x28e   :  { %1310 = vmatprep.subr.bf16.mxu0 %v2839_v50  ;;  %1353 = vmatprep.subr.bf16.mxu1 %v2861_v54  ;;  %v3741_v54 = vld [vmem:[#allocation9_spill] sm:$0xff] }
 0x291   :  { %1311 = vmatpush1.bf16.msra.mxu0 %v2855_v53  ;;  %1354 = vmatpush1.bf16.msra.mxu1 %v2873_v56  ;;  %v1134_v53 = vunpack.c.l.bf16 %v3740_v51 }
 0x292   :  { %1312 = vmatprep.subr.bf16.mxu0 %v2867_v55  ;;  %1355 = vmatprep.subr.bf16.mxu1 %v2878_v57  ;;  %v1136_v55 = vunpack.c.l.bf16 %v3741_v54 }
 0x295   :  { %1313 = vmatpush1.bf16.msra.mxu0 %v2886_v58  ;;  %1356 = vmatpush1.bf16.msra.mxu1 %v2899_v60  ;;  %v1137_v60 = vunpack.c.h.bf16 %v3738_v45 }
 0x296   :  { %1314 = vmatprep.subr.bf16.mxu0 %v2893_v59  ;;  %1357 = vmatprep.subr.bf16.mxu1 %v2914_v63 }
 0x299   :  { %1315 = vmatpush1.bf16.msra.mxu0 %v2909_v62  ;;  %1358 = vmatpush1.bf16.msra.mxu1 %v2926_v2  ;;  %v1139_v62 = vunpack.c.h.bf16 %v3739_v47 }
 0x29a   :  { %1316 = vmatprep.subr.bf16.mxu0 %v2921_v0  ;;  %1359 = vmatprep.subr.bf16.mxu1 %v2931_v3 }
 0x29d   :  { %1317 = vmatpush1.bf16.msra.mxu0 %v2940_v4  ;;  %1360 = vmatpush1.bf16.msra.mxu1 %v2947_v5  ;;  %v1138_v4 = vunpack.c.h.bf16 %v3740_v51  ;;  %v1140_v5 = vunpack.c.h.bf16 %v3741_v54 }
 0x29e   :  { %1463 = vmatprep.subr.bf16.mxu0 %v3294_v42  ;;  %1506 = vmatprep.subr.bf16.mxu1 %v3300_v44 }
 0x353   :  { %v1175_v49 = vpop.f32.mrb[40].mxu0  ;;  %v1218_v50 = vpop.f32.mrb[40].mxu1 }
 0x354   :  { %v1227_v56 = vadd.f32 %v1175_v49, %v1133_v46  ;;  %v1229_v57 = vadd.f32 %v1218_v50, %v1135_v48  ;;  %v1177_v58 = vpop.f32.mrb[41].mxu0  ;;  %v1220_v59 = vpop.f32.mrb[41].mxu1 }
 0x355   :  { %v1228_v63 = vadd.f32 %v1177_v58, %v1134_v53  ;;  %v1230_v0 = vadd.f32 %v1220_v59, %v1136_v55  ;;  %v1179_v2 = vpop.f32.mrb[42].mxu0  ;;  %v1222_v3 = vpop.f32.mrb[42].mxu1  ;;  %v3345_v58 = vld [vmem:[%s3679_s2 + $0x40] ss:$16 sps:$4 sm:$0xff]   ;;  %v3351_v59 = vld [vmem:[%s3679_s2 + $0x48] ss:$16 sps:$4 sm:$0xff]  }
 0x356   :  { %v1231_v10 = vadd.f32 %v1179_v2, %v1137_v60  ;;  %v1233_v43 = vadd.f32 %v1222_v3, %v1139_v62  ;;  %v1181_v20 = vpop.f32.mrb[43].mxu0  ;;  %v1224_v24 = vpop.f32.mrb[43].mxu1  ;;  %v3357_v60 = vld [vmem:[%s3679_s2 + $0x64] ss:$16 sps:$4 sm:$0xff]   ;;  %v3363_v62 = vld [vmem:[%s3679_s2 + $0x6c] ss:$16 sps:$4 sm:$0xff]  }
 0x357   :  { %v1232_v52 = vadd.f32 %v1181_v20, %v1138_v4  ;;  %v1234_v11 = vadd.f32 %v1224_v24, %v1140_v5  ;;  %v3381_v2 = vld [vmem:[%s3679_s2 + $0x84] ss:$16 sps:$4 sm:$0xff]   ;;  %v3387_v3 = vld [vmem:[%s3679_s2 + $0x8c] ss:$16 sps:$4 sm:$0xff]   ;;  %v3393_v4 = vld [vmem:[%s3679_s2 + $0x80] ss:$16 sps:$4 sm:$0xff]  }
 0x358   :  { %v1235_v28 = vpack.c.bf16 %v1231_v10, %v1227_v56  ;;  %v1237_v36 = vpack.c.bf16 %v1233_v43, %v1229_v57  ;;  %v3399_v5 = vld [vmem:[%s3679_s2 + $0x88] ss:$16 sps:$4 sm:$0xff]   ;;  %v3405_v10 = vld [vmem:[%s3679_s2 + $0xa4] ss:$16 sps:$4 sm:$0xff]   ;;  %v3411_v43 = vld [vmem:[%s3679_s2 + $0xac] ss:$16 sps:$4 sm:$0xff]  }
 0x359   :  { %v1236_v37 = vpack.c.bf16 %v1232_v52, %v1228_v63  ;;  %v1238_v38 = vpack.c.bf16 %v1234_v11, %v1230_v0  ;;  %v3369_v63 = vld [vmem:[%s3679_s2 + $0x60] ss:$16 sps:$4 sm:$0xff]   ;;  %v3375_v0 = vld [vmem:[%s3679_s2 + $0x68] ss:$16 sps:$4 sm:$0xff]   ;;  %v3429_v52 = vld [vmem:[%s3679_s2 + $0xc4] ss:$16 sps:$4 sm:$0xff]  }
 0x35a   :  { %v2210_v39 = vmul.bf16 3216621497, %v1235_v28  ;;  %v3417_v20 = vld [vmem:[%s3679_s2 + $0xa0] ss:$16 sps:$4 sm:$0xff]   ;;  %v3423_v24 = vld [vmem:[%s3679_s2 + $0xa8] ss:$16 sps:$4 sm:$0xff]  }
 0x35b   :  { %v2211_v40 = vmul.bf16 3216621497, %v1236_v37  ;;  %v2212_v41 = vmul.bf16 3216621497, %v1238_v38  ;;  %v3435_v11 = vld [vmem:[%s3679_s2 + $0xcc] ss:$16 sps:$4 sm:$0xff]  }
 0x35c   :  { %2456 = vpow.bf16 %v2210_v39  ;;  %v3441_v28 = vld [vmem:[%s3679_s2 + $0xc0] ss:$16 sps:$4 sm:$0xff]   ;;  %v3453_v37 = vld [vmem:[%s3679_s2 + $0xe4] ss:$16 sps:$4 sm:$0xff]   ;;  %v3459_v38 = vld [vmem:[%s3679_s2 + $0xec] ss:$16 sps:$4 sm:$0xff]  }
 0x35d   :  { %2458 = vpow.bf16 %v2211_v40  ;;  %v3465_v39 = vld [vmem:[%s3679_s2 + $0xe0] ss:$16 sps:$4 sm:$0xff]   ;;  %v3471_v40 = vld [vmem:[%s3679_s2 + $0xe8] ss:$16 sps:$4 sm:$0xff]  }
 0x35e   :  { %2460 = vpow.bf16 %v2212_v41  ;;  %v3742_v41 = vld [vmem:[#allocation10_spill] sm:$0xff] }
 0x367   :  { %v2457_v26 = vpop.eup %2456 }
 0x368   :  { %v2459_v13 = vpop.eup %2458  ;;  %v1243_v15 = vadd.bf16 1065369472, %v2457_v26  ;;  %v1294_v26 = vunpack.c.l.bf16 %v3742_v41 }
 0x369   :  { %v1250_v31 = vadd.bf16 1065369472, %v2459_v13  ;;  %v2461_v6 = vpop.eup %2460  ;;  %v3743_v13 = vld [vmem:[#allocation11_spill] sm:$0xff] }
 0x36a   :  { %2462 = vrcp.bf16 %v1243_v15  ;;  %v1258_v14 = vadd.bf16 1065369472, %v2461_v6  ;;  %v1296_v15 = vunpack.c.l.bf16 %v3743_v13 }
 0x36b   :  { %2464 = vrcp.bf16 %v1250_v31 }
 0x36c   :  { %2466 = vtanh.bf16 %v1237_v36  ;;  %v3447_v36 = vld [vmem:[%s3679_s2 + $0xc8] ss:$16 sps:$4 sm:$0xff]  }
 0x36d   :  { %2468 = vrcp.bf16 %v1258_v14  ;;  %v3744_v14 = vld [vmem:[#allocation12_spill] sm:$0xff] }
 0x375   :  { %v2463_v33 = vpop.eup %2462 }
 0x376   :  { %v2465_v21 = vpop.eup %2464  ;;  %v1245_v32 = vmul.bf16 1065369472, %v2463_v33  ;;  %v1295_v33 = vunpack.c.l.bf16 %v3744_v14 }
 0x377   :  { %v2467_v17 = vpop.eup %2466  ;;  %v1252_v19 = vmul.bf16 1065369472, %v2465_v21  ;;  %v3745_v21 = vld [vmem:[#allocation13_spill] sm:$0xff] }
 0x378   :  { %v1265_v29 = vmul.bf16 %v2467_v17, %v1245_v32  ;;  %v2469_v48 = vpop.eup %2468  ;;  %v1297_v32 = vunpack.c.l.bf16 %v3745_v21 }
 0x379   :  { %v1261_v18 = vunpack.c.l.bf16 %v1252_v19  ;;  %v1262_v30 = vunpack.c.h.bf16 %v1252_v19  ;;  %v1260_v49 = vmul.bf16 1065369472, %v2469_v48 }
 0x37a   :  { %v1266_v61 = vunpack.c.l.bf16 %v1265_v29  ;;  %v1267_v16 = vunpack.c.h.bf16 %v1265_v29 }
 0x37b   :  { %v1263_v1 = vmul.f32 %v1261_v18, %v3220_v34  ;;  %v1264_v45 = vmul.f32 %v1262_v30, %v3222_v7  ;;  %v1272_v50 = vunpack.c.l.bf16 %v1260_v49  ;;  %v1273_v53 = vunpack.c.h.bf16 %v1260_v49  ;;  %v3332_v34 = vld [vmem:[%s3679_s2 + $0x28] ss:$16 sps:$4 sm:$0xff]   ;;  %v3339_v7 = vld [vmem:[%s3679_s2 + $0x4c] ss:$16 sps:$4 sm:$0xff]  }
 0x37c   :  { %v1298_v30 = vunpack.c.h.bf16 %v3742_v41  ;;  %v1299_v49 = vunpack.c.h.bf16 %v3744_v14 }
 0x37d   :  { %v3313_v46 = vadd.f32 %v1266_v61, %v1263_v1  ;;  %v3315_v47 = vadd.f32 %v1267_v16, %v1264_v45  ;;  %v1300_v61 = vunpack.c.h.bf16 %v3743_v13 }
 0x37f   :  { %2470 = vtanh.f32 %v3313_v46 }
 0x380   :  { %2472 = vtanh.f32 %v3315_v47 }
 0x389   :  { %v2471_v51 = vpop.eup %2470 }
 0x38a   :  { %v2473_v54 = vpop.eup %2472  ;;  %v1274_v55 = vmul.f32 %v2471_v51, %v1272_v50  ;;  %v1301_v50 = vunpack.c.h.bf16 %v3745_v21 }
 0x38b   :  { %v1275_v56 = vmul.f32 %v2473_v54, %v1273_v53 }
 0x38d   :  { %v1276_v57 = vpack.c.bf16 %v1275_v56, %v1274_v55 }
 0x38f   :  { %2309 = vst [vmem:[%s3683_s6 + $0x10] sm:$0xff] %v1276_v57   ;;  %1335 = vmatmul.mubr.bf16.vlgmr.msra.gmra.mrb[44].mxu0 %v1276_v57  ;;  %1378 = vmatmul.mubr.bf16.vlgmr.msra.gmra.mrb[44].mxu1 %v1276_v57 }
 0x390   :  { %1464 = vmatpush1.bf16.msra.mxu0 %v3232_v8  ;;  %1507 = vmatpush1.bf16.msra.mxu1 %v3238_v23 }
 0x391   :  { %1465 = vmatprep.subr.bf16.mxu0 %v3244_v22  ;;  %1508 = vmatprep.subr.bf16.mxu1 %v3250_v27 }
 0x392   :  { %1495 = vmatprep.mubr.bf16.mxu0 %v3736_v12  ;;  %1538 = vmatprep.mubr.bf16.mxu1 %v3736_v12 }
 0x394   :  { %1466 = vmatpush1.bf16.msra.mxu0 %v3258_v9  ;;  %1509 = vmatpush1.bf16.msra.mxu1 %v3332_v34 }
 0x395   :  { %1467 = vmatprep.subr.bf16.mxu0 %v3265_v35  ;;  %1510 = vmatprep.subr.bf16.mxu1 %v3339_v7 }
 0x398   :  { %1468 = vmatpush1.bf16.msra.mxu0 %v3345_v58  ;;  %1511 = vmatpush1.bf16.msra.mxu1 %v3351_v59 }
 0x399   :  { %1469 = vmatprep.subr.bf16.mxu0 %v3357_v60  ;;  %1512 = vmatprep.subr.bf16.mxu1 %v3363_v62 }
 0x39c   :  { %1470 = vmatpush1.bf16.msra.mxu0 %v3369_v63  ;;  %1513 = vmatpush1.bf16.msra.mxu1 %v3375_v0 }
 0x39d   :  { %1471 = vmatprep.subr.bf16.mxu0 %v3381_v2  ;;  %1514 = vmatprep.subr.bf16.mxu1 %v3387_v3 }
 0x3a0   :  { %1472 = vmatpush1.bf16.msra.mxu0 %v3393_v4  ;;  %1515 = vmatpush1.bf16.msra.mxu1 %v3399_v5 }
 0x3a1   :  { %1473 = vmatprep.subr.bf16.mxu0 %v3405_v10  ;;  %1516 = vmatprep.subr.bf16.mxu1 %v3411_v43 }
 0x3a4   :  { %1474 = vmatpush1.bf16.msra.mxu0 %v3417_v20  ;;  %1517 = vmatpush1.bf16.msra.mxu1 %v3423_v24 }
 0x3a5   :  { %1475 = vmatprep.subr.bf16.mxu0 %v3429_v52  ;;  %1518 = vmatprep.subr.bf16.mxu1 %v3435_v11 }
 0x3a8   :  { %1476 = vmatpush1.bf16.msra.mxu0 %v3441_v28  ;;  %1519 = vmatpush1.bf16.msra.mxu1 %v3447_v36 }
 0x3a9   :  { %1477 = vmatprep.subr.bf16.mxu0 %v3453_v37  ;;  %1520 = vmatprep.subr.bf16.mxu1 %v3459_v38 }
 0x3ac   :  { %1478 = vmatpush1.bf16.msra.mxu0 %v3465_v39  ;;  %1521 = vmatpush1.bf16.msra.mxu1 %v3471_v40 }
 0x3ad   :  { %1624 = vmatprep.subr.bf16.mxu0 %v3294_v42  ;;  %1667 = vmatprep.subr.bf16.mxu1 %v3300_v44 }
 0x462   :  { %v1336_v31 = vpop.f32.mrb[44].mxu0  ;;  %v1379_v6 = vpop.f32.mrb[44].mxu1 }
 0x463   :  { %v1388_v17 = vadd.f32 %v1336_v31, %v1294_v26  ;;  %v1390_v19 = vadd.f32 %v1379_v6, %v1296_v15  ;;  %v1338_v29 = vpop.f32.mrb[45].mxu0  ;;  %v1381_v18 = vpop.f32.mrb[45].mxu1 }
 0x464   :  { %v1389_v16 = vadd.f32 %v1338_v29, %v1295_v33  ;;  %v1391_v1 = vadd.f32 %v1381_v18, %v1297_v32  ;;  %v1340_v45 = vpop.f32.mrb[46].mxu0  ;;  %v1383_v48 = vpop.f32.mrb[46].mxu1 }
 0x465   :  { %v1392_v51 = vadd.f32 %v1340_v45, %v1298_v30  ;;  %v1394_v53 = vadd.f32 %v1383_v48, %v1300_v61  ;;  %v1342_v54 = vpop.f32.mrb[47].mxu0  ;;  %v1385_v55 = vpop.f32.mrb[47].mxu1 }
 0x466   :  { %v1393_v56 = vadd.f32 %v1342_v54, %v1299_v49  ;;  %v1395_v57 = vadd.f32 %v1385_v55, %v1301_v50 }
 0x467   :  { %v1396_v26 = vpack.c.bf16 %v1392_v51, %v1388_v17  ;;  %v1398_v15 = vpack.c.bf16 %v1394_v53, %v1390_v19 }
 0x468   :  { %v1397_v31 = vpack.c.bf16 %v1393_v56, %v1389_v16  ;;  %v1399_v41 = vpack.c.bf16 %v1395_v57, %v1391_v1 }
 0x469   :  { %v2217_v6 = vmul.bf16 3216621497, %v1396_v26 }
 0x46a   :  { %v2218_v13 = vmul.bf16 3216621497, %v1397_v31  ;;  %v2219_v33 = vmul.bf16 3216621497, %v1399_v41 }
 0x46b   :  { %2474 = vpow.bf16 %v2217_v6 }
 0x46c   :  { %2476 = vpow.bf16 %v2218_v13 }
 0x46d   :  { %2478 = vpow.bf16 %v2219_v33 }
 0x476   :  { %v2475_v32 = vpop.eup %2474 }
 0x477   :  { %v2477_v14 = vpop.eup %2476  ;;  %v1404_v29 = vadd.bf16 1065369472, %v2475_v32 }
 0x478   :  { %v1411_v21 = vadd.bf16 1065369472, %v2477_v14  ;;  %v2479_v18 = vpop.eup %2478  ;;  %v3747_v14 = vld [vmem:[#allocation15_spill] sm:$0xff] }
 0x479   :  { %2480 = vrcp.bf16 %v1404_v29  ;;  %v1419_v30 = vadd.bf16 1065369472, %v2479_v18  ;;  %v1457_v29 = vunpack.c.l.bf16 %v3747_v14 }
 0x47a   :  { %2482 = vrcp.bf16 %v1411_v21 }
 0x47b   :  { %2484 = vtanh.bf16 %v1398_v15 }
 0x47c   :  { %2486 = vrcp.bf16 %v1419_v30  ;;  %v3748_v30 = vld [vmem:[#allocation16_spill] sm:$0xff] }
 0x484   :  { %v2481_v61 = vpop.eup %2480 }
 0x485   :  { %v2483_v17 = vpop.eup %2482  ;;  %v1406_v19 = vmul.bf16 1065369472, %v2481_v61  ;;  %v1456_v61 = vunpack.c.l.bf16 %v3748_v30 }
 0x486   :  { %v2485_v16 = vpop.eup %2484  ;;  %v1413_v1 = vmul.bf16 1065369472, %v2483_v17  ;;  %v3749_v17 = vld [vmem:[#allocation17_spill] sm:$0xff] }
 0x487   :  { %v1426_v45 = vmul.bf16 %v2485_v16, %v1406_v19  ;;  %v2487_v57 = vpop.eup %2486  ;;  %v1458_v19 = vunpack.c.l.bf16 %v3749_v17 }
 0x488   :  { %v1422_v48 = vunpack.c.l.bf16 %v1413_v1  ;;  %v1423_v49 = vunpack.c.h.bf16 %v1413_v1  ;;  %v1421_v26 = vmul.bf16 1065369472, %v2487_v57 }
 0x489   :  { %v1427_v50 = vunpack.c.l.bf16 %v1426_v45  ;;  %v1428_v51 = vunpack.c.h.bf16 %v1426_v45 }
 0x48a   :  { %v1424_v53 = vmul.f32 %v1422_v48, %v3313_v46  ;;  %v1425_v54 = vmul.f32 %v1423_v49, %v3315_v47  ;;  %v1433_v15 = vunpack.c.l.bf16 %v1421_v26  ;;  %v1434_v41 = vunpack.c.h.bf16 %v1421_v26  ;;  %v3746_v46 = vld [vmem:[#allocation14_spill] sm:$0xff] }
 0x48b   :  { %v1455_v47 = vunpack.c.l.bf16 %v3746_v46  ;;  %v1459_v49 = vunpack.c.h.bf16 %v3746_v46  ;;  %v1460_v26 = vunpack.c.h.bf16 %v3748_v30 }
 0x48c   :  { %v3486_v55 = vadd.f32 %v1427_v50, %v1424_v53  ;;  %v3488_v56 = vadd.f32 %v1428_v51, %v1425_v54  ;;  %v1461_v50 = vunpack.c.h.bf16 %v3747_v14 }
 0x48e   :  { %2488 = vtanh.f32 %v3486_v55 }
 0x48f   :  { %2490 = vtanh.f32 %v3488_v56 }
 0x498   :  { %v2489_v31 = vpop.eup %2488 }
 0x499   :  { %v2491_v6 = vpop.eup %2490  ;;  %v1435_v13 = vmul.f32 %v2489_v31, %v1433_v15  ;;  %v1462_v15 = vunpack.c.h.bf16 %v3749_v17 }
 0x49a   :  { %v1436_v33 = vmul.f32 %v2491_v6, %v1434_v41 }
 0x49c   :  { %v1437_v32 = vpack.c.bf16 %v1436_v33, %v1435_v13 }
 0x49e   :  { %2310 = vst [vmem:[%s3683_s6 + $0x18] sm:$0xff] %v1437_v32   ;;  %1496 = vmatmul.mubr.bf16.vlgmr.msra.gmra.mrb[48].mxu0 %v1437_v32  ;;  %1539 = vmatmul.mubr.bf16.vlgmr.msra.gmra.mrb[48].mxu1 %v1437_v32 }
 0x49f   :  { %1625 = vmatpush1.bf16.msra.mxu0 %v3232_v8  ;;  %1668 = vmatpush1.bf16.msra.mxu1 %v3238_v23 }
 0x4a0   :  { %1626 = vmatprep.subr.bf16.mxu0 %v3244_v22  ;;  %1669 = vmatprep.subr.bf16.mxu1 %v3250_v27 }
 0x4a1   :  { %1656 = vmatprep.mubr.bf16.mxu0 %v3736_v12  ;;  %1699 = vmatprep.mubr.bf16.mxu1 %v3736_v12 }
 0x4a3   :  { %1627 = vmatpush1.bf16.msra.mxu0 %v3258_v9  ;;  %1670 = vmatpush1.bf16.msra.mxu1 %v3332_v34 }
 0x4a4   :  { %1628 = vmatprep.subr.bf16.mxu0 %v3265_v35  ;;  %1671 = vmatprep.subr.bf16.mxu1 %v3339_v7 }
 0x4a7   :  { %1629 = vmatpush1.bf16.msra.mxu0 %v3345_v58  ;;  %1672 = vmatpush1.bf16.msra.mxu1 %v3351_v59 }
 0x4a8   :  { %1630 = vmatprep.subr.bf16.mxu0 %v3357_v60  ;;  %1673 = vmatprep.subr.bf16.mxu1 %v3363_v62 }
 0x4ab   :  { %1631 = vmatpush1.bf16.msra.mxu0 %v3369_v63  ;;  %1674 = vmatpush1.bf16.msra.mxu1 %v3375_v0 }
 0x4ac   :  { %1632 = vmatprep.subr.bf16.mxu0 %v3381_v2  ;;  %1675 = vmatprep.subr.bf16.mxu1 %v3387_v3 }
 0x4af   :  { %1633 = vmatpush1.bf16.msra.mxu0 %v3393_v4  ;;  %1676 = vmatpush1.bf16.msra.mxu1 %v3399_v5 }
 0x4b0   :  { %1634 = vmatprep.subr.bf16.mxu0 %v3405_v10  ;;  %1677 = vmatprep.subr.bf16.mxu1 %v3411_v43 }
 0x4b3   :  { %1635 = vmatpush1.bf16.msra.mxu0 %v3417_v20  ;;  %1678 = vmatpush1.bf16.msra.mxu1 %v3423_v24 }
 0x4b4   :  { %1636 = vmatprep.subr.bf16.mxu0 %v3429_v52  ;;  %1679 = vmatprep.subr.bf16.mxu1 %v3435_v11 }
 0x4b7   :  { %1637 = vmatpush1.bf16.msra.mxu0 %v3441_v28  ;;  %1680 = vmatpush1.bf16.msra.mxu1 %v3447_v36 }
 0x4b8   :  { %1638 = vmatprep.subr.bf16.mxu0 %v3453_v37  ;;  %1681 = vmatprep.subr.bf16.mxu1 %v3459_v38 }
 0x4bb   :  { %1639 = vmatpush1.bf16.msra.mxu0 %v3465_v39  ;;  %1682 = vmatpush1.bf16.msra.mxu1 %v3471_v40 }
 0x4bc   :  { %1785 = vmatprep.subr.bf16.mxu0 %v3294_v42  ;;  %1828 = vmatprep.subr.bf16.mxu1 %v3300_v44 }
 0x571   :  { %v1497_v21 = vpop.f32.mrb[48].mxu0  ;;  %v1540_v18 = vpop.f32.mrb[48].mxu1 }
 0x572   :  { %v1549_v16 = vadd.f32 %v1497_v21, %v1455_v47  ;;  %v1551_v1 = vadd.f32 %v1540_v18, %v1457_v29  ;;  %v1499_v45 = vpop.f32.mrb[49].mxu0  ;;  %v1542_v48 = vpop.f32.mrb[49].mxu1 }
 0x573   :  { %v1550_v51 = vadd.f32 %v1499_v45, %v1456_v61  ;;  %v1552_v53 = vadd.f32 %v1542_v48, %v1458_v19  ;;  %v1501_v54 = vpop.f32.mrb[50].mxu0  ;;  %v1544_v57 = vpop.f32.mrb[50].mxu1 }
 0x574   :  { %v1553_v31 = vadd.f32 %v1501_v54, %v1459_v49  ;;  %v1555_v41 = vadd.f32 %v1544_v57, %v1461_v50  ;;  %v1503_v6 = vpop.f32.mrb[51].mxu0  ;;  %v1546_v13 = vpop.f32.mrb[51].mxu1 }
 0x575   :  { %v1554_v33 = vadd.f32 %v1503_v6, %v1460_v26  ;;  %v1556_v32 = vadd.f32 %v1546_v13, %v1462_v15 }
 0x576   :  { %v1557_v47 = vpack.c.bf16 %v1553_v31, %v1549_v16  ;;  %v1559_v29 = vpack.c.bf16 %v1555_v41, %v1551_v1 }
 0x577   :  { %v1558_v21 = vpack.c.bf16 %v1554_v33, %v1550_v51  ;;  %v1560_v46 = vpack.c.bf16 %v1556_v32, %v1552_v53 }
 0x578   :  { %v2224_v18 = vmul.bf16 3216621497, %v1557_v47 }
 0x579   :  { %v2225_v14 = vmul.bf16 3216621497, %v1558_v21  ;;  %v2226_v61 = vmul.bf16 3216621497, %v1560_v46 }
 0x57a   :  { %2492 = vpow.bf16 %v2224_v18 }
 0x57b   :  { %2494 = vpow.bf16 %v2225_v14 }
 0x57c   :  { %2496 = vpow.bf16 %v2226_v61 }
 0x585   :  { %v2493_v19 = vpop.eup %2492 }
 0x586   :  { %v2495_v30 = vpop.eup %2494  ;;  %v1565_v45 = vadd.bf16 1065369472, %v2493_v19 }
 0x587   :  { %v1572_v17 = vadd.bf16 1065369472, %v2495_v30  ;;  %v2497_v48 = vpop.eup %2496  ;;  %v3751_v30 = vld [vmem:[#allocation19_spill] sm:$0xff] }
 0x588   :  { %2498 = vrcp.bf16 %v1565_v45  ;;  %v1580_v49 = vadd.bf16 1065369472, %v2497_v48  ;;  %v1618_v45 = vunpack.c.l.bf16 %v3751_v30 }
 0x589   :  { %2500 = vrcp.bf16 %v1572_v17 }
 0x58a   :  { %2502 = vtanh.bf16 %v1559_v29 }
 0x58b   :  { %2504 = vrcp.bf16 %v1580_v49  ;;  %v3752_v49 = vld [vmem:[#allocation20_spill] sm:$0xff] }
 0x593   :  { %v2499_v50 = vpop.eup %2498 }
 0x594   :  { %v2501_v16 = vpop.eup %2500  ;;  %v1567_v1 = vmul.bf16 1065369472, %v2499_v50  ;;  %v1617_v50 = vunpack.c.l.bf16 %v3752_v49 }
 0x595   :  { %v2503_v51 = vpop.eup %2502  ;;  %v1574_v53 = vmul.bf16 1065369472, %v2501_v16  ;;  %v3753_v16 = vld [vmem:[#allocation21_spill] sm:$0xff] }
 0x596   :  { %v1587_v54 = vmul.bf16 %v2503_v51, %v1567_v1  ;;  %v2505_v32 = vpop.eup %2504  ;;  %v1619_v1 = vunpack.c.l.bf16 %v3753_v16 }
 0x597   :  { %v1583_v57 = vunpack.c.l.bf16 %v1574_v53  ;;  %v1584_v26 = vunpack.c.h.bf16 %v1574_v53  ;;  %v1582_v47 = vmul.bf16 1065369472, %v2505_v32  ;;  %v1623_v32 = vunpack.c.h.bf16 %v3753_v16 }
 0x598   :  { %v1588_v15 = vunpack.c.l.bf16 %v1587_v54  ;;  %v1589_v31 = vunpack.c.h.bf16 %v1587_v54 }
 0x599   :  { %v1585_v41 = vmul.f32 %v1583_v57, %v3486_v55  ;;  %v1586_v6 = vmul.f32 %v1584_v26, %v3488_v56  ;;  %v1594_v29 = vunpack.c.l.bf16 %v1582_v47  ;;  %v1595_v46 = vunpack.c.h.bf16 %v1582_v47  ;;  %v3750_v55 = vld [vmem:[#allocation18_spill] sm:$0xff] }
 0x59a   :  { %v1616_v56 = vunpack.c.l.bf16 %v3750_v55  ;;  %v1620_v26 = vunpack.c.h.bf16 %v3750_v55 }
 0x59b   :  { %v3539_v13 = vadd.f32 %v1588_v15, %v1585_v41  ;;  %v3541_v33 = vadd.f32 %v1589_v31, %v1586_v6  ;;  %v1621_v6 = vunpack.c.h.bf16 %v3752_v49 }
 0x59d   :  { %2506 = vtanh.f32 %v3539_v13 }
 0x59e   :  { %2508 = vtanh.f32 %v3541_v33 }
 0x5a7   :  { %v2507_v21 = vpop.eup %2506 }
 0x5a8   :  { %v2509_v18 = vpop.eup %2508  ;;  %v1596_v14 = vmul.f32 %v2507_v21, %v1594_v29 }
 0x5a9   :  { %v1597_v61 = vmul.f32 %v2509_v18, %v1595_v46 }
 0x5ab   :  { %v1598_v19 = vpack.c.bf16 %v1597_v61, %v1596_v14 }
 0x5ad   :  { %2311 = vst [vmem:[%s3683_s6 + $0x20] sm:$0xff] %v1598_v19   ;;  %1657 = vmatmul.mubr.bf16.vlgmr.msra.gmra.mrb[52].mxu0 %v1598_v19  ;;  %1700 = vmatmul.mubr.bf16.vlgmr.msra.gmra.mrb[52].mxu1 %v1598_v19 }
 0x5ae   :  { %1786 = vmatpush1.bf16.msra.mxu0 %v3232_v8  ;;  %1829 = vmatpush1.bf16.msra.mxu1 %v3238_v23 }
 0x5af   :  { %1787 = vmatprep.subr.bf16.mxu0 %v3244_v22  ;;  %1830 = vmatprep.subr.bf16.mxu1 %v3250_v27 }
 0x5b0   :  { %1817 = vmatprep.mubr.bf16.mxu0 %v3736_v12  ;;  %1860 = vmatprep.mubr.bf16.mxu1 %v3736_v12 }
 0x5b2   :  { %1788 = vmatpush1.bf16.msra.mxu0 %v3258_v9  ;;  %1831 = vmatpush1.bf16.msra.mxu1 %v3332_v34 }
 0x5b3   :  { %1789 = vmatprep.subr.bf16.mxu0 %v3265_v35  ;;  %1832 = vmatprep.subr.bf16.mxu1 %v3339_v7 }
 0x5b6   :  { %1790 = vmatpush1.bf16.msra.mxu0 %v3345_v58  ;;  %1833 = vmatpush1.bf16.msra.mxu1 %v3351_v59 }
 0x5b7   :  { %1791 = vmatprep.subr.bf16.mxu0 %v3357_v60  ;;  %1834 = vmatprep.subr.bf16.mxu1 %v3363_v62 }
 0x5ba   :  { %1792 = vmatpush1.bf16.msra.mxu0 %v3369_v63  ;;  %1835 = vmatpush1.bf16.msra.mxu1 %v3375_v0 }
 0x5bb   :  { %1793 = vmatprep.subr.bf16.mxu0 %v3381_v2  ;;  %1836 = vmatprep.subr.bf16.mxu1 %v3387_v3 }
 0x5be   :  { %1794 = vmatpush1.bf16.msra.mxu0 %v3393_v4  ;;  %1837 = vmatpush1.bf16.msra.mxu1 %v3399_v5 }
 0x5bf   :  { %1795 = vmatprep.subr.bf16.mxu0 %v3405_v10  ;;  %1838 = vmatprep.subr.bf16.mxu1 %v3411_v43 }
 0x5c2   :  { %1796 = vmatpush1.bf16.msra.mxu0 %v3417_v20  ;;  %1839 = vmatpush1.bf16.msra.mxu1 %v3423_v24 }
 0x5c3   :  { %1797 = vmatprep.subr.bf16.mxu0 %v3429_v52  ;;  %1840 = vmatprep.subr.bf16.mxu1 %v3435_v11 }
 0x5c6   :  { %1798 = vmatpush1.bf16.msra.mxu0 %v3441_v28  ;;  %1841 = vmatpush1.bf16.msra.mxu1 %v3447_v36 }
 0x5c7   :  { %1799 = vmatprep.subr.bf16.mxu0 %v3453_v37  ;;  %1842 = vmatprep.subr.bf16.mxu1 %v3459_v38 }
 0x5ca   :  { %1800 = vmatpush1.bf16.msra.mxu0 %v3465_v39  ;;  %1843 = vmatpush1.bf16.msra.mxu1 %v3471_v40 }
 0x5cb   :  { %1946 = vmatprep.subr.bf16.mxu0 %v3294_v42  ;;  %1989 = vmatprep.subr.bf16.mxu1 %v3300_v44  ;;  %v1622_v42 = vunpack.c.h.bf16 %v3751_v30 }
 0x680   :  { %v1658_v17 = vpop.f32.mrb[52].mxu0  ;;  %v1701_v48 = vpop.f32.mrb[52].mxu1 }
 0x681   :  { %v1710_v51 = vadd.f32 %v1658_v17, %v1616_v56  ;;  %v1712_v53 = vadd.f32 %v1701_v48, %v1618_v45  ;;  %v1660_v54 = vpop.f32.mrb[53].mxu0  ;;  %v1703_v57 = vpop.f32.mrb[53].mxu1 }
 0x682   :  { %v1711_v15 = vadd.f32 %v1660_v54, %v1617_v50  ;;  %v1713_v44 = vadd.f32 %v1703_v57, %v1619_v1  ;;  %v1662_v31 = vpop.f32.mrb[54].mxu0  ;;  %v1705_v41 = vpop.f32.mrb[54].mxu1 }
 0x683   :  { %v1714_v47 = vadd.f32 %v1662_v31, %v1620_v26  ;;  %v1716_v29 = vadd.f32 %v1705_v41, %v1622_v42  ;;  %v1664_v21 = vpop.f32.mrb[55].mxu0  ;;  %v1707_v46 = vpop.f32.mrb[55].mxu1 }
 0x684   :  { %v1715_v18 = vadd.f32 %v1664_v21, %v1621_v6  ;;  %v1717_v14 = vadd.f32 %v1707_v46, %v1623_v32 }
 0x685   :  { %v1718_v61 = vpack.c.bf16 %v1714_v47, %v1710_v51  ;;  %v1720_v19 = vpack.c.bf16 %v1716_v29, %v1712_v53 }
 0x686   :  { %v1719_v56 = vpack.c.bf16 %v1715_v18, %v1711_v15  ;;  %v1721_v55 = vpack.c.bf16 %v1717_v14, %v1713_v44 }
 0x687   :  { %v2231_v45 = vmul.bf16 3216621497, %v1718_v61 }
 0x688   :  { %v2232_v30 = vmul.bf16 3216621497, %v1719_v56  ;;  %v2233_v17 = vmul.bf16 3216621497, %v1721_v55 }
 0x689   :  { %2510 = vpow.bf16 %v2231_v45 }
 0x68a   :  { %2512 = vpow.bf16 %v2232_v30 }
 0x68b   :  { %2514 = vpow.bf16 %v2233_v17 }
 0x694   :  { %v2511_v48 = vpop.eup %2510 }
 0x695   :  { %v2513_v49 = vpop.eup %2512  ;;  %v1726_v50 = vadd.bf16 1065369472, %v2511_v48 }
 0x696   :  { %v1733_v16 = vadd.bf16 1065369472, %v2513_v49  ;;  %v2515_v1 = vpop.eup %2514 }
 0x697   :  { %2516 = vrcp.bf16 %v1726_v50  ;;  %v1741_v54 = vadd.bf16 1065369472, %v2515_v1 }
 0x698   :  { %2518 = vrcp.bf16 %v1733_v16 }
 0x699   :  { %2520 = vtanh.bf16 %v1720_v19 }
 0x69a   :  { %2522 = vrcp.bf16 %v1741_v54 }
 0x6a2   :  { %v2517_v57 = vpop.eup %2516 }
 0x6a3   :  { %v2519_v51 = vpop.eup %2518  ;;  %v1728_v53 = vmul.bf16 1065369472, %v2517_v57 }
 0x6a4   :  { %v2521_v26 = vpop.eup %2520  ;;  %v1735_v42 = vmul.bf16 1065369472, %v2519_v51 }
 0x6a5   :  { %v1748_v15 = vmul.bf16 %v2521_v26, %v1728_v53  ;;  %v2523_v46 = vpop.eup %2522 }
 0x6a6   :  { %v1744_v44 = vunpack.c.l.bf16 %v1735_v42  ;;  %v1745_v31 = vunpack.c.h.bf16 %v1735_v42  ;;  %v1743_v18 = vmul.bf16 1065369472, %v2523_v46 }
 0x6a7   :  { %v1749_v41 = vunpack.c.l.bf16 %v1748_v15  ;;  %v1750_v6 = vunpack.c.h.bf16 %v1748_v15 }
 0x6a8   :  { %v1746_v32 = vmul.f32 %v1744_v44, %v3539_v13  ;;  %v1747_v47 = vmul.f32 %v1745_v31, %v3541_v33  ;;  %v1755_v14 = vunpack.c.l.bf16 %v1743_v18  ;;  %v1756_v19 = vunpack.c.h.bf16 %v1743_v18 }
 0x6aa   :  { %v3592_v29 = vadd.f32 %v1749_v41, %v1746_v32  ;;  %v3594_v21 = vadd.f32 %v1750_v6, %v1747_v47 }
 0x6ac   :  { %2524 = vtanh.f32 %v3592_v29 }
 0x6ad   :  { %2526 = vtanh.f32 %v3594_v21 }
 0x6b6   :  { %v2525_v61 = vpop.eup %2524 }
 0x6b7   :  { %v2527_v56 = vpop.eup %2526  ;;  %v1757_v55 = vmul.f32 %v2525_v61, %v1755_v14 }
 0x6b8   :  { %v1758_v45 = vmul.f32 %v2527_v56, %v1756_v19 }
 0x6ba   :  { %v1759_v30 = vpack.c.bf16 %v1758_v45, %v1757_v55 }
 0x6bc   :  { %2312 = vst [vmem:[%s3683_s6 + $0x28] sm:$0xff] %v1759_v30   ;;  %1818 = vmatmul.mubr.bf16.vlgmr.msra.gmra.mrb[56].mxu0 %v1759_v30  ;;  %1861 = vmatmul.mubr.bf16.vlgmr.msra.gmra.mrb[56].mxu1 %v1759_v30 }
 0x6bd   :  { %1947 = vmatpush1.bf16.msra.mxu0 %v3232_v8  ;;  %1990 = vmatpush1.bf16.msra.mxu1 %v3238_v23  ;;  %v3754_v8 = vld [vmem:[#allocation22_spill] sm:$0xff] }
 0x6be   :  { %1948 = vmatprep.subr.bf16.mxu0 %v3244_v22  ;;  %1991 = vmatprep.subr.bf16.mxu1 %v3250_v27  ;;  %v1779_v23 = vunpack.c.l.bf16 %v3754_v8 }
 0x6bf   :  { %1978 = vmatprep.mubr.bf16.mxu0 %v3736_v12  ;;  %2021 = vmatprep.mubr.bf16.mxu1 %v3736_v12  ;;  %v1777_v12 = vunpack.c.l.bf16 %v3129_v25 }
 0x6c1   :  { %1949 = vmatpush1.bf16.msra.mxu0 %v3258_v9  ;;  %1992 = vmatpush1.bf16.msra.mxu1 %v3332_v34  ;;  %v3755_v9 = vld [vmem:[#allocation23_spill] sm:$0xff]  ;;  %v3756_v34 = vld [vmem:[#allocation24_spill] sm:$0xff] }
 0x6c2   :  { %1950 = vmatprep.subr.bf16.mxu0 %v3265_v35  ;;  %1993 = vmatprep.subr.bf16.mxu1 %v3339_v7  ;;  %v1778_v35 = vunpack.c.l.bf16 %v3755_v9  ;;  %v1780_v7 = vunpack.c.l.bf16 %v3756_v34 }
 0x6c5   :  { %1951 = vmatpush1.bf16.msra.mxu0 %v3345_v58  ;;  %1994 = vmatpush1.bf16.msra.mxu1 %v3351_v59 }
 0x6c6   :  { %1952 = vmatprep.subr.bf16.mxu0 %v3357_v60  ;;  %1995 = vmatprep.subr.bf16.mxu1 %v3363_v62 }
 0x6c9   :  { %1953 = vmatpush1.bf16.msra.mxu0 %v3369_v63  ;;  %1996 = vmatpush1.bf16.msra.mxu1 %v3375_v0  ;;  %v1781_v63 = vunpack.c.h.bf16 %v3129_v25  ;;  %v1783_v0 = vunpack.c.h.bf16 %v3754_v8  ;;  %v3758_v8 = vld [vmem:[#allocation26_spill] sm:$0xff] }
 0x6ca   :  { %1954 = vmatprep.subr.bf16.mxu0 %v3381_v2  ;;  %1997 = vmatprep.subr.bf16.mxu1 %v3387_v3 }
 0x6cd   :  { %1955 = vmatpush1.bf16.msra.mxu0 %v3393_v4  ;;  %1998 = vmatpush1.bf16.msra.mxu1 %v3399_v5 }
 0x6ce   :  { %1956 = vmatprep.subr.bf16.mxu0 %v3405_v10  ;;  %1999 = vmatprep.subr.bf16.mxu1 %v3411_v43  ;;  %v1782_v10 = vunpack.c.h.bf16 %v3755_v9  ;;  %v1784_v43 = vunpack.c.h.bf16 %v3756_v34  ;;  %v3759_v9 = vld [vmem:[#allocation27_spill] sm:$0xff]  ;;  %v3760_v34 = vld [vmem:[#allocation28_spill] sm:$0xff] }
 0x6d1   :  { %1957 = vmatpush1.bf16.msra.mxu0 %v3417_v20  ;;  %2000 = vmatpush1.bf16.msra.mxu1 %v3423_v24 }
 0x6d2   :  { %1958 = vmatprep.subr.bf16.mxu0 %v3429_v52  ;;  %2001 = vmatprep.subr.bf16.mxu1 %v3435_v11 }
 0x6d5   :  { %1959 = vmatpush1.bf16.msra.mxu0 %v3441_v28  ;;  %2002 = vmatpush1.bf16.msra.mxu1 %v3447_v36 }
 0x6d6   :  { %1960 = vmatprep.subr.bf16.mxu0 %v3453_v37  ;;  %2003 = vmatprep.subr.bf16.mxu1 %v3459_v38 }
 0x6d9   :  { %1961 = vmatpush1.bf16.msra.mxu0 %v3465_v39  ;;  %2004 = vmatpush1.bf16.msra.mxu1 %v3471_v40 }
 0x78f   :  { %v1819_v22 = vpop.f32.mrb[56].mxu0  ;;  %v1862_v27 = vpop.f32.mrb[56].mxu1 }
 0x790   :  { %v1871_v58 = vadd.f32 %v1819_v22, %v1777_v12  ;;  %v1873_v59 = vadd.f32 %v1862_v27, %v1779_v23  ;;  %v1821_v60 = vpop.f32.mrb[57].mxu0  ;;  %v1864_v62 = vpop.f32.mrb[57].mxu1  ;;  %v1940_v23 = vunpack.c.l.bf16 %v3758_v8 }
 0x791   :  { %v1872_v2 = vadd.f32 %v1821_v60, %v1778_v35  ;;  %v1874_v3 = vadd.f32 %v1864_v62, %v1780_v7  ;;  %v1823_v4 = vpop.f32.mrb[58].mxu0  ;;  %v1866_v5 = vpop.f32.mrb[58].mxu1  ;;  %v1939_v35 = vunpack.c.l.bf16 %v3759_v9  ;;  %v1941_v7 = vunpack.c.l.bf16 %v3760_v34 }
 0x792   :  { %v1875_v20 = vadd.f32 %v1823_v4, %v1781_v63  ;;  %v1877_v24 = vadd.f32 %v1866_v5, %v1783_v0  ;;  %v1825_v52 = vpop.f32.mrb[59].mxu0  ;;  %v1868_v11 = vpop.f32.mrb[59].mxu1  ;;  %v1944_v0 = vunpack.c.h.bf16 %v3758_v8 }
 0x793   :  { %v1876_v28 = vadd.f32 %v1825_v52, %v1782_v10  ;;  %v1878_v36 = vadd.f32 %v1868_v11, %v1784_v43  ;;  %v1943_v10 = vunpack.c.h.bf16 %v3759_v9  ;;  %v1945_v43 = vunpack.c.h.bf16 %v3760_v34 }
 0x794   :  { %v1879_v37 = vpack.c.bf16 %v1875_v20, %v1871_v58  ;;  %v1881_v38 = vpack.c.bf16 %v1877_v24, %v1873_v59 }
 0x795   :  { %v1880_v39 = vpack.c.bf16 %v1876_v28, %v1872_v2  ;;  %v1882_v25 = vpack.c.bf16 %v1878_v36, %v1874_v3 }
 0x796   :  { %v2238_v40 = vmul.bf16 3216621497, %v1879_v37 }
 0x797   :  { %v2239_v13 = vmul.bf16 3216621497, %v1880_v39  ;;  %v2240_v33 = vmul.bf16 3216621497, %v1882_v25 }
 0x798   :  { %2528 = vpow.bf16 %v2238_v40 }
 0x799   :  { %2530 = vpow.bf16 %v2239_v13 }
 0x79a   :  { %2532 = vpow.bf16 %v2240_v33 }
 0x7a3   :  { %v2529_v17 = vpop.eup %2528 }
 0x7a4   :  { %v2531_v48 = vpop.eup %2530  ;;  %v1887_v49 = vadd.bf16 1065369472, %v2529_v17 }
 0x7a5   :  { %v1894_v50 = vadd.bf16 1065369472, %v2531_v48  ;;  %v2533_v16 = vpop.eup %2532 }
 0x7a6   :  { %2534 = vrcp.bf16 %v1887_v49  ;;  %v1902_v1 = vadd.bf16 1065369472, %v2533_v16 }
 0x7a7   :  { %2536 = vrcp.bf16 %v1894_v50 }
 0x7a8   :  { %2538 = vtanh.bf16 %v1881_v38 }
 0x7a9   :  { %2540 = vrcp.bf16 %v1902_v1 }
 0x7b1   :  { %v2535_v54 = vpop.eup %2534 }
 0x7b2   :  { %v2537_v57 = vpop.eup %2536  ;;  %v1889_v51 = vmul.bf16 1065369472, %v2535_v54 }
 0x7b3   :  { %v2539_v53 = vpop.eup %2538  ;;  %v1896_v26 = vmul.bf16 1065369472, %v2537_v57 }
 0x7b4   :  { %v1909_v42 = vmul.bf16 %v2539_v53, %v1889_v51  ;;  %v2541_v18 = vpop.eup %2540 }
 0x7b5   :  { %v1905_v15 = vunpack.c.l.bf16 %v1896_v26  ;;  %v1906_v44 = vunpack.c.h.bf16 %v1896_v26  ;;  %v1904_v14 = vmul.bf16 1065369472, %v2541_v18 }
 0x7b6   :  { %v1910_v31 = vunpack.c.l.bf16 %v1909_v42  ;;  %v1911_v41 = vunpack.c.h.bf16 %v1909_v42 }
 0x7b7   :  { %v1907_v6 = vmul.f32 %v1905_v15, %v3592_v29  ;;  %v1908_v32 = vmul.f32 %v1906_v44, %v3594_v21  ;;  %v1916_v61 = vunpack.c.l.bf16 %v1904_v14  ;;  %v1917_v56 = vunpack.c.h.bf16 %v1904_v14  ;;  %v3757_v29 = vld [vmem:[#allocation25_spill] sm:$0xff] }
 0x7b8   :  { %v1938_v21 = vunpack.c.l.bf16 %v3757_v29  ;;  %v1942_v63 = vunpack.c.h.bf16 %v3757_v29 }
 0x7b9   :  { %v3643_v47 = vadd.f32 %v1910_v31, %v1907_v6  ;;  %v3645_v46 = vadd.f32 %v1911_v41, %v1908_v32 }
 0x7bb   :  { %2542 = vtanh.f32 %v3643_v47 }
 0x7bc   :  { %2544 = vtanh.f32 %v3645_v46 }
 0x7c5   :  { %v2543_v19 = vpop.eup %2542 }
 0x7c6   :  { %v2545_v55 = vpop.eup %2544  ;;  %v1918_v45 = vmul.f32 %v2543_v19, %v1916_v61 }
 0x7c7   :  { %v1919_v30 = vmul.f32 %v2545_v55, %v1917_v56 }
 0x7c9   :  { %v1920_v12 = vpack.c.bf16 %v1919_v30, %v1918_v45 }
 0x7cb   :  { %2313 = vst [vmem:[%s3683_s6 + $0x30] sm:$0xff] %v1920_v12   ;;  %1979 = vmatmul.mubr.bf16.vlgmr.msra.gmra.mrb[60].mxu0 %v1920_v12  ;;  %2022 = vmatmul.mubr.bf16.vlgmr.msra.gmra.mrb[60].mxu1 %v1920_v12 }
 0x89e   :  { %v1980_v22 = vpop.f32.mrb[60].mxu0  ;;  %v2023_v27 = vpop.f32.mrb[60].mxu1 }
 0x89f   :  { %v2032_v58 = vadd.f32 %v1980_v22, %v1938_v21  ;;  %v2034_v59 = vadd.f32 %v2023_v27, %v1940_v23  ;;  %v1982_v60 = vpop.f32.mrb[61].mxu0  ;;  %v2025_v62 = vpop.f32.mrb[61].mxu1 }
 0x8a0   :  { %v2033_v2 = vadd.f32 %v1982_v60, %v1939_v35  ;;  %v2035_v3 = vadd.f32 %v2025_v62, %v1941_v7  ;;  %v1984_v4 = vpop.f32.mrb[62].mxu0  ;;  %v2027_v5 = vpop.f32.mrb[62].mxu1 }
 0x8a1   :  { %v2036_v20 = vadd.f32 %v1984_v4, %v1942_v63  ;;  %v2038_v24 = vadd.f32 %v2027_v5, %v1944_v0  ;;  %v1986_v52 = vpop.f32.mrb[63].mxu0  ;;  %v2029_v11 = vpop.f32.mrb[63].mxu1 }
 0x8a2   :  { %v2037_v28 = vadd.f32 %v1986_v52, %v1943_v10  ;;  %v2039_v36 = vadd.f32 %v2029_v11, %v1945_v43 }
 0x8a3   :  { %v2040_v37 = vpack.c.bf16 %v2036_v20, %v2032_v58  ;;  %v2042_v38 = vpack.c.bf16 %v2038_v24, %v2034_v59 }
 0x8a4   :  { %v2041_v39 = vpack.c.bf16 %v2037_v28, %v2033_v2  ;;  %v2043_v25 = vpack.c.bf16 %v2039_v36, %v2035_v3 }
 0x8a5   :  { %v2245_v40 = vmul.bf16 3216621497, %v2040_v37 }
 0x8a6   :  { %v2246_v13 = vmul.bf16 3216621497, %v2041_v39  ;;  %v2247_v33 = vmul.bf16 3216621497, %v2043_v25 }
 0x8a7   :  { %2546 = vpow.bf16 %v2245_v40 }
 0x8a8   :  { %2548 = vpow.bf16 %v2246_v13 }
 0x8a9   :  { %2550 = vpow.bf16 %v2247_v33 }
 0x8b2   :  { %v2547_v17 = vpop.eup %2546 }
 0x8b3   :  { %v2549_v48 = vpop.eup %2548  ;;  %v2048_v49 = vadd.bf16 1065369472, %v2547_v17 }
 0x8b4   :  { %v2055_v50 = vadd.bf16 1065369472, %v2549_v48  ;;  %v2551_v16 = vpop.eup %2550 }
 0x8b5   :  { %2552 = vrcp.bf16 %v2048_v49  ;;  %v2063_v1 = vadd.bf16 1065369472, %v2551_v16 }
 0x8b6   :  { %2554 = vrcp.bf16 %v2055_v50 }
 0x8b7   :  { %2556 = vtanh.bf16 %v2042_v38 }
 0x8b8   :  { %2558 = vrcp.bf16 %v2063_v1 }
 0x8c0   :  { %v2553_v54 = vpop.eup %2552 }
 0x8c1   :  { %v2555_v57 = vpop.eup %2554  ;;  %v2050_v51 = vmul.bf16 1065369472, %v2553_v54 }
 0x8c2   :  { %v2557_v53 = vpop.eup %2556  ;;  %v2057_v26 = vmul.bf16 1065369472, %v2555_v57 }
 0x8c3   :  { %v2070_v42 = vmul.bf16 %v2557_v53, %v2050_v51  ;;  %v2559_v61 = vpop.eup %2558 }
 0x8c4   :  { %v2066_v15 = vunpack.c.l.bf16 %v2057_v26  ;;  %v2067_v44 = vunpack.c.h.bf16 %v2057_v26  ;;  %v2065_v19 = vmul.bf16 1065369472, %v2559_v61 }
 0x8c5   :  { %v2071_v31 = vunpack.c.l.bf16 %v2070_v42  ;;  %v2072_v41 = vunpack.c.h.bf16 %v2070_v42 }
 0x8c6   :  { %v2068_v6 = vmul.f32 %v2066_v15, %v3643_v47  ;;  %v2069_v32 = vmul.f32 %v2067_v44, %v3645_v46  ;;  %v2077_v56 = vunpack.c.l.bf16 %v2065_v19  ;;  %v2078_v45 = vunpack.c.h.bf16 %v2065_v19 }
 0x8c8   :  { %v2073_v18 = vadd.f32 %v2071_v31, %v2068_v6  ;;  %v2074_v14 = vadd.f32 %v2072_v41, %v2069_v32 }
 0x8ca   :  { %2560 = vtanh.f32 %v2073_v18  ;;  %2105 = vst [vmem:[%s3684_s8] sm:$0xff] %v2073_v18  ;;  %2106 = vst [vmem:[%s3684_s8 + $0x8] sm:$0xff] %v2074_v14 }
 0x8cb   :  { %2562 = vtanh.f32 %v2074_v14 }
 0x8d4   :  { %v2561_v55 = vpop.eup %2560 }
 0x8d5   :  { %v2563_v47 = vpop.eup %2562  ;;  %v2079_v30 = vmul.f32 %v2561_v55, %v2077_v56 }
 0x8d6   :  { %v2080_v46 = vmul.f32 %v2563_v47, %v2078_v45 }
 0x8d7   :  { %2101 = vst [vmem:[%s3685_s7] sm:$0xff] %v2079_v30 }
 0x8d8   :  { %v2306_v12 = vpack.c.bf16 %v2080_v46, %v2079_v30  ;;  %2102 = vst [vmem:[%s3685_s7 + $0x8] sm:$0xff] %v2080_v46 }
 0x8da   :  { %2314 = vst [vmem:[%s3683_s6 + $0x38] sm:$0xff] %v2306_v12  }

</bundles_post_ra>
